<compile_context>
chip_gen: v6e
topology: v6e:2x2x1
jax: 0.10.0
libtpu: 0.0.40
codegen_flags: <defaults>
</compile_context>

<pallas_src>
import jax
import jax.numpy as jnp
from jax import lax
from jax.experimental import pallas as pl
from jax.experimental.pallas import tpu as pltpu

# ---------------- config (small, consistent with the module) ----------------
DIM = 32
DT_RANK = 8
DIM_INNER = 32        # must equal DIM for the reference SSM broadcasting
D_STATE = 8
NUM_CLASSES = 4
IMAGE_SIZE = 16
PATCH = 8
CHANNELS = 3
DEPTH = 2
LN_EPS = 1e-5


def _softplus(v):
    # numerically-stable softplus (matches torch.nn.Softplus, beta=1)
    return jnp.maximum(v, 0.0) + jnp.log(1.0 + jnp.exp(-jnp.abs(v)))


def _silu(v):
    return v * (1.0 / (1.0 + jnp.exp(-v)))


# --------------------------- single fused Vim kernel --------------------------
def _vim_kernel(tok_ref, wtok_ref, bpat_ref,
                lng_ref, lnb_ref, wzc_ref, bzc_ref,
                wssm_ref, bssm_ref, alogT_ref, dpar_ref,
                hg_ref, hb_ref, whead_ref, bhead_ref,
                o_ref):
    f32 = jnp.float32
    B = o_ref.shape[0]
    D = wtok_ref.shape[1]
    BS = tok_ref.shape[0]
    S = BS // B
    depth = wzc_ref.shape[0]
    N = alogT_ref.shape[1]

    # ---- patch embedding + cls token: one augmented matmul, time-major rows ----
    seq = (jnp.dot(tok_ref[...], wtok_ref[...], preferred_element_type=f32)
           + bpat_ref[...])                                  # (BS, D), row = s*B + b
    # TODO(synk): nn.Dropout(0.1) treated as identity (inference).

    # ---- DEPTH x VisionEncoderMambaBlock, statically unrolled, all in vregs ----
    for l in range(depth):
        xin = seq                                            # (BS, D) residual skip
        mu = jnp.mean(xin, axis=-1, keepdims=True)
        var = jnp.mean((xin - mu) ** 2, axis=-1, keepdims=True)
        xn = (xin - mu) * lax.rsqrt(var + LN_EPS) * lng_ref[l] + lnb_ref[l]

        # fused [proj | proj@conv_fwd | proj@conv_bwd]: one matmul
        zc = jnp.dot(xn, wzc_ref[l], preferred_element_type=f32) + bzc_ref[l]
        z1 = zc[:, :D]                                       # proj output == gate pre-act
        u2 = _softplus(zc[:, D:])                            # (BS, 2D): lanes [fwd | bwd]

        # fused block-diagonal [delta | B | C] for both directions: one matmul
        so = jnp.dot(u2, wssm_ref[l], preferred_element_type=f32) + bssm_ref[l]
        dl2 = _softplus(so[:, :2 * D])                       # (BS, 2D)  [delta_f | delta_b]
        bm2 = so[:, 2 * D:2 * D + 2 * N]                     # (BS, 2N)  [B_f | B_b]
        cm2 = so[:, 2 * D + 2 * N:2 * D + 4 * N]             # (BS, 2N)  [C_f | C_b]

        A_l = -jnp.exp(alogT_ref[l])                         # (N, D)
        A2 = jnp.concatenate([A_l, A_l], axis=1)             # (N, 2D), both directions

        # selective scan, statically unrolled; directions live on the lane axis
        h = jnp.zeros((B, N, 2 * D), f32)
        ysum_rows = []
        for t in range(S):
            r0 = t * B
            d_t = dl2[r0:r0 + B, :]                          # (B, 2D)
            u_t = u2[r0:r0 + B, :]                           # (B, 2D)
            b_t = bm2[r0:r0 + B, :]                          # (B, 2N)
            c_t = cm2[r0:r0 + B, :]                          # (B, 2N)
            da = jnp.exp(d_t[:, None, :] * A2[None, :, :])   # (B, N, 2D)
            du = d_t * u_t                                    # (B, 2D)
            bx = jnp.concatenate(
                [du[:, None, :D] * b_t[:, :N, None],
                 du[:, None, D:] * b_t[:, N:, None]], axis=2)  # (B, N, 2D)
            h = da * h + bx
            yc = (h[:, :, :D] * c_t[:, :N, None]
                  + h[:, :, D:] * c_t[:, N:, None])           # (B, N, D), fwd+bwd merged
            ysum_rows.append(jnp.sum(yc, axis=1))             # (B, D)
        ysum = jnp.concatenate(ysum_rows, axis=0)              # (BS, D), rows s*B + b

        # y_dir = scan_dir + D*u_dir ; combined + shared SiLU gate + residual
        usum = u2[:, :D] + u2[:, D:]
        seq = _silu(z1) * (ysum + dpar_ref[l] * usum) + xin

    # ---- output head: mean over sequence -> LayerNorm -> Linear ----
    m = seq[0:B, :]
    for s in range(1, S):
        m = m + seq[s * B:(s + 1) * B, :]
    m = m * (1.0 / S)                                        # (B, D)
    mu = jnp.mean(m, axis=-1, keepdims=True)
    var = jnp.mean((m - mu) ** 2, axis=-1, keepdims=True)
    hn = (m - mu) * lax.rsqrt(var + LN_EPS) * hg_ref[...] + hb_ref[...]
    o_ref[...] = (jnp.dot(hn, whead_ref[...], preferred_element_type=f32)
                  + bhead_ref[...]).astype(o_ref.dtype)


def _full_spec(shape):
    r = len(shape)
    return pl.BlockSpec(shape, lambda i, r=r: (0,) * r)


def vim_forward(x_img, params):
    B, C, H, W = x_img.shape
    p = PATCH
    hp, wp = H // p, W // p
    Sp = hp * wp
    S = Sp + 1
    pd = C * p * p
    f32 = jnp.float32
    D = params['W_patch'].shape[1]
    N = params['W_B'].shape[2]
    depth = params['W_p'].shape[0]

    # einops 'b c (h p1) (w p2) -> b (h w) (p1 p2 c)', emitted TIME-MAJOR
    # (row = patch_index*B + b) so in-kernel per-timestep slices are contiguous.
    patches = x_img.reshape(B, C, hp, p, wp, p).transpose(2, 4, 0, 3, 5, 1)
    patches = patches.reshape(Sp * B, pd).astype(f32)

    # augmented token matrix: the first B rows carry only a cls-indicator column,
    # so cls insertion happens inside the single embedding matmul.
    tok_in = jnp.concatenate(
        [jnp.concatenate([jnp.zeros((B, pd), f32), jnp.ones((B, 1), f32)], axis=1),
         jnp.concatenate([patches, jnp.zeros((Sp * B, 1), f32)], axis=1)], axis=0)
    W_tok = jnp.concatenate(
        [params['W_patch'], params['cls_token'] - params['b_patch']], axis=0)

    # ---- exact host-side weight fusions (no nonlinearity is crossed) ----
    mm = lambda a, b: jnp.einsum('lij,ljk->lik', a, b)
    Wpr, bpr = params['W_p'], params['b_p']
    Wcf, bcf = params['W_cf'], params['b_cf']
    Wcb, bcb = params['W_cb'], params['b_cb']
    W_zc = jnp.concatenate([Wpr, mm(Wpr, Wcf), mm(Wpr, Wcb)], axis=2)
    b_zc = jnp.concatenate([bpr, mm(bpr, Wcf) + bcf, mm(bpr, Wcb) + bcb], axis=2)

    W_fd = mm(params['W_delta'], params['W_dt'])             # fused delta proj (L, D, D)
    WB, WC = params['W_B'], params['W_C']
    zD = jnp.zeros_like(W_fd)
    zN = jnp.zeros_like(WB)
    top = jnp.concatenate([W_fd, zD, WB, zN, WC, zN], axis=2)
    bot = jnp.concatenate([zD, W_fd, zN, WB, zN, WC], axis=2)
    W_ssm = jnp.concatenate([top, bot], axis=1)              # (L, 2D, 2D+4N) block-diag
    b_ssm = jnp.concatenate([params['b_dt'], params['b_dt'],
                             jnp.zeros((depth, 1, 4 * N), f32)], axis=2)

    args = (tok_in, W_tok, params['b_patch'],
            params['ln_g'], params['ln_b'], W_zc, b_zc, W_ssm, b_ssm,
            params['A_logT'], params['D'],
            params['head_g'], params['head_b'],
            params['W_head'], params['b_head'])

    return pl.pallas_call(
        _vim_kernel,
        out_shape=jax.ShapeDtypeStruct((B, NUM_CLASSES), x_img.dtype),
        grid=(1,),
        in_specs=[_full_spec(a.shape) for a in args],
        out_specs=pl.BlockSpec((B, NUM_CLASSES), lambda i: (0, 0)),
        compiler_params=pltpu.CompilerParams(
            dimension_semantics=("arbitrary",)),
    )(*args)


# ------------------------------ params & driver -------------------------------
def init_params(key):
    patch_dim = CHANNELS * PATCH * PATCH
    keys = iter(jax.random.split(key, 64))

    def nrm(shape, scale=0.02):
        return scale * jax.random.normal(next(keys), shape, jnp.float32)

    def stack(fn):
        return jnp.stack([fn() for _ in range(DEPTH)], axis=0)

    params = {
        'W_patch': nrm((patch_dim, DIM)),
        'b_patch': jnp.zeros((1, DIM), jnp.float32),
        'cls_token': jax.random.normal(next(keys), (1, DIM), jnp.float32),
        'head_g': jnp.ones((1, DIM), jnp.float32),
        'head_b': jnp.zeros((1, DIM), jnp.float32),
        'W_head': nrm((DIM, NUM_CLASSES)),
        'b_head': jnp.zeros((1, NUM_CLASSES), jnp.float32),
        # per-layer params stacked on a leading DEPTH axis
        'ln_g': jnp.ones((DEPTH, 1, DIM), jnp.float32),
        'ln_b': jnp.zeros((DEPTH, 1, DIM), jnp.float32),
        'W_p': stack(lambda: nrm((DIM, DIM))),
        'b_p': stack(lambda: nrm((1, DIM))),
        'W_cf': stack(lambda: nrm((DIM, DIM))),
        'b_cf': stack(lambda: nrm((1, DIM))),
        'W_cb': stack(lambda: nrm((DIM, DIM))),
        'b_cb': stack(lambda: nrm((1, DIM))),
        'W_delta': stack(lambda: nrm((DIM, DT_RANK))),
        'W_B': stack(lambda: nrm((DIM, D_STATE))),
        'W_C': stack(lambda: nrm((DIM, D_STATE))),
        'W_dt': stack(lambda: nrm((DT_RANK, DIM_INNER))),
        'b_dt': stack(lambda: nrm((1, DIM_INNER))),
        # A_log stored pre-transposed as (DEPTH, N, ED) so ED sits on lanes
        'A_logT': jnp.tile(
            jnp.log(jnp.arange(1, D_STATE + 1, dtype=jnp.float32))[None, :, None],
            (DEPTH, 1, DIM_INNER)),
        'D': jnp.ones((DEPTH, 1, DIM_INNER), jnp.float32),
    }
    return params


if __name__ == "__main__":
    key = jax.random.PRNGKey(0)
    pkey, xkey = jax.random.split(key)
    params = init_params(pkey)
    x = jax.random.normal(xkey, (2, CHANNELS, IMAGE_SIZE, IMAGE_SIZE), jnp.float32)

    out = jax.jit(vim_forward)(x, params)
    out = jax.block_until_ready(out)
    assert out.shape == (2, NUM_CLASSES), out.shape
    assert bool(jnp.all(jnp.isfinite(out)))
    print("KERNEL_OK")
</pallas_src>

<mosaic_0001>
module attributes {stable_mosaic.version = 11 : i64} {
  func.func @_vim_kernel(%arg0: i32, %arg1: memref<10x193xf32, #tpu.memory_space<vmem>>, %arg2: memref<193x32xf32, #tpu.memory_space<vmem>>, %arg3: memref<1x32xf32, #tpu.memory_space<vmem>>, %arg4: memref<2x1x32xf32, #tpu.memory_space<vmem>>, %arg5: memref<2x1x32xf32, #tpu.memory_space<vmem>>, %arg6: memref<2x32x96xf32, #tpu.memory_space<vmem>>, %arg7: memref<2x1x96xf32, #tpu.memory_space<vmem>>, %arg8: memref<2x64x96xf32, #tpu.memory_space<vmem>>, %arg9: memref<2x1x96xf32, #tpu.memory_space<vmem>>, %arg10: memref<2x8x32xf32, #tpu.memory_space<vmem>>, %arg11: memref<2x1x32xf32, #tpu.memory_space<vmem>>, %arg12: memref<1x32xf32, #tpu.memory_space<vmem>>, %arg13: memref<1x32xf32, #tpu.memory_space<vmem>>, %arg14: memref<32x4xf32, #tpu.memory_space<vmem>>, %arg15: memref<1x4xf32, #tpu.memory_space<vmem>>, %arg16: memref<2x4xf32, #tpu.memory_space<vmem>>) attributes {dimension_semantics = [#tpu.dimension_semantics<arbitrary>], iteration_bounds = array<i64: 1>, scalar_prefetch = 0 : i64, scratch_operands = 0 : i64, tpu.core_type = #tpu.core_type<tc>, window_params = [{pipeline_mode = #tpu.pipeline_mode<synchronous>, transform_indices = @transform_0, window_bounds = array<i64: 10, 193>}, {pipeline_mode = #tpu.pipeline_mode<synchronous>, transform_indices = @transform_1, window_bounds = array<i64: 193, 32>}, {pipeline_mode = #tpu.pipeline_mode<synchronous>, transform_indices = @transform_2, window_bounds = array<i64: 1, 32>}, {pipeline_mode = #tpu.pipeline_mode<synchronous>, transform_indices = @transform_3, window_bounds = array<i64: 2, 1, 32>}, {pipeline_mode = #tpu.pipeline_mode<synchronous>, transform_indices = @transform_4, window_bounds = array<i64: 2, 1, 32>}, {pipeline_mode = #tpu.pipeline_mode<synchronous>, transform_indices = @transform_5, window_bounds = array<i64: 2, 32, 96>}, {pipeline_mode = #tpu.pipeline_mode<synchronous>, transform_indices = @transform_6, window_bounds = array<i64: 2, 1, 96>}, {pipeline_mode = #tpu.pipeline_mode<synchronous>, transform_indices = @transform_7, window_bounds = array<i64: 2, 64, 96>}, {pipeline_mode = #tpu.pipeline_mode<synchronous>, transform_indices = @transform_8, window_bounds = array<i64: 2, 1, 96>}, {pipeline_mode = #tpu.pipeline_mode<synchronous>, transform_indices = @transform_9, window_bounds = array<i64: 2, 8, 32>}, {pipeline_mode = #tpu.pipeline_mode<synchronous>, transform_indices = @transform_10, window_bounds = array<i64: 2, 1, 32>}, {pipeline_mode = #tpu.pipeline_mode<synchronous>, transform_indices = @transform_11, window_bounds = array<i64: 1, 32>}, {pipeline_mode = #tpu.pipeline_mode<synchronous>, transform_indices = @transform_12, window_bounds = array<i64: 1, 32>}, {pipeline_mode = #tpu.pipeline_mode<synchronous>, transform_indices = @transform_13, window_bounds = array<i64: 32, 4>}, {pipeline_mode = #tpu.pipeline_mode<synchronous>, transform_indices = @transform_14, window_bounds = array<i64: 1, 4>}, {pipeline_mode = #tpu.pipeline_mode<synchronous>, transform_indices = @transform_15, window_bounds = array<i64: 2, 4>}]} {
    %c0 = arith.constant 0 : index
    %c0_0 = arith.constant 0 : index
    %0 = vector.load %arg1[%c0, %c0_0] : memref<10x193xf32, #tpu.memory_space<vmem>>, vector<10x193xf32>
    %c0_1 = arith.constant 0 : index
    %c0_2 = arith.constant 0 : index
    %1 = vector.load %arg2[%c0_1, %c0_2] : memref<193x32xf32, #tpu.memory_space<vmem>>, vector<193x32xf32>
    %cst = arith.constant dense<0.000000e+00> : vector<10x32xf32>
    %2 = tpu.matmul %0, %1, %cst {dimension_numbers = #tpu.dot_dimension_numbers<[1], [0], [0], [1], [0, 0, 1, 1], [], []>} : vector<10x193xf32>, vector<193x32xf32>, vector<10x32xf32> -> vector<10x32xf32>
    %c0_3 = arith.constant 0 : index
    %c0_4 = arith.constant 0 : index
    %3 = vector.load %arg3[%c0_3, %c0_4] : memref<1x32xf32, #tpu.memory_space<vmem>>, vector<1x32xf32>
    %4 = vector.broadcast %3 : vector<1x32xf32> to vector<10x32xf32>
    %5 = arith.addf %2, %4 : vector<10x32xf32>
    %cst_5 = arith.constant dense<0.000000e+00> : vector<10xf32>
    %6 = vector.multi_reduction <add>, %5, %cst_5 [1] : vector<10x32xf32> to vector<10xf32>
    %7 = vector.shape_cast %6 : vector<10xf32> to vector<10x1xf32>
    %cst_6 = arith.constant 3.200000e+01 : f32
    %8 = vector.broadcast %cst_6 : f32 to vector<10x1xf32>
    %9 = arith.divf %7, %8 : vector<10x1xf32>
    %10 = vector.broadcast %9 : vector<10x1xf32> to vector<10x32xf32>
    %11 = arith.subf %5, %10 : vector<10x32xf32>
    %12 = arith.mulf %11, %11 : vector<10x32xf32>
    %cst_7 = arith.constant dense<0.000000e+00> : vector<10xf32>
    %13 = vector.multi_reduction <add>, %12, %cst_7 [1] : vector<10x32xf32> to vector<10xf32>
    %14 = vector.shape_cast %13 : vector<10xf32> to vector<10x1xf32>
    %cst_8 = arith.constant 3.200000e+01 : f32
    %15 = vector.broadcast %cst_8 : f32 to vector<10x1xf32>
    %16 = arith.divf %14, %15 : vector<10x1xf32>
    %17 = vector.broadcast %9 : vector<10x1xf32> to vector<10x32xf32>
    %18 = arith.subf %5, %17 : vector<10x32xf32>
    %cst_9 = arith.constant 9.99999974E-6 : f32
    %19 = vector.broadcast %cst_9 : f32 to vector<10x1xf32>
    %20 = arith.addf %16, %19 : vector<10x1xf32>
    %21 = math.rsqrt %20 : vector<10x1xf32>
    %22 = vector.broadcast %21 : vector<10x1xf32> to vector<10x32xf32>
    %23 = arith.mulf %18, %22 : vector<10x32xf32>
    %c0_10 = arith.constant 0 : index
    %c0_11 = arith.constant 0 : index
    %c0_12 = arith.constant 0 : index
    %24 = vector.load %arg4[%c0_10, %c0_11, %c0_12] : memref<2x1x32xf32, #tpu.memory_space<vmem>>, vector<1x1x32xf32>
    %25 = vector.shape_cast %24 : vector<1x1x32xf32> to vector<1x32xf32>
    %26 = vector.broadcast %25 : vector<1x32xf32> to vector<10x32xf32>
    %27 = arith.mulf %23, %26 : vector<10x32xf32>
    %c0_13 = arith.constant 0 : index
    %c0_14 = arith.constant 0 : index
    %c0_15 = arith.constant 0 : index
    %28 = vector.load %arg5[%c0_13, %c0_14, %c0_15] : memref<2x1x32xf32, #tpu.memory_space<vmem>>, vector<1x1x32xf32>
    %29 = vector.shape_cast %28 : vector<1x1x32xf32> to vector<1x32xf32>
    %30 = vector.broadcast %29 : vector<1x32xf32> to vector<10x32xf32>
    %31 = arith.addf %27, %30 : vector<10x32xf32>
    %c0_16 = arith.constant 0 : index
    %c0_17 = arith.constant 0 : index
    %c0_18 = arith.constant 0 : index
    %32 = vector.load %arg6[%c0_16, %c0_17, %c0_18] : memref<2x32x96xf32, #tpu.memory_space<vmem>>, vector<1x32x96xf32>
    %33 = vector.shape_cast %32 : vector<1x32x96xf32> to vector<32x96xf32>
    %cst_19 = arith.constant dense<0.000000e+00> : vector<10x96xf32>
    %34 = tpu.matmul %31, %33, %cst_19 {dimension_numbers = #tpu.dot_dimension_numbers<[1], [0], [0], [1], [0, 0, 1, 1], [], []>} : vector<10x32xf32>, vector<32x96xf32>, vector<10x96xf32> -> vector<10x96xf32>
    %c0_20 = arith.constant 0 : index
    %c0_21 = arith.constant 0 : index
    %c0_22 = arith.constant 0 : index
    %35 = vector.load %arg7[%c0_20, %c0_21, %c0_22] : memref<2x1x96xf32, #tpu.memory_space<vmem>>, vector<1x1x96xf32>
    %36 = vector.shape_cast %35 : vector<1x1x96xf32> to vector<1x96xf32>
    %37 = vector.broadcast %36 : vector<1x96xf32> to vector<10x96xf32>
    %38 = arith.addf %34, %37 : vector<10x96xf32>
    %39 = vector.extract_strided_slice %38 {offsets = [0, 0], sizes = [10, 32], strides = [1, 1]} : vector<10x96xf32> to vector<10x32xf32>
    %40 = vector.extract_strided_slice %38 {offsets = [0, 32], sizes = [10, 64], strides = [1, 1]} : vector<10x96xf32> to vector<10x64xf32>
    %cst_23 = arith.constant 0.000000e+00 : f32
    %41 = vector.broadcast %cst_23 : f32 to vector<10x64xf32>
    %42 = arith.maximumf %40, %41 : vector<10x64xf32>
    %43 = math.absf %40 : vector<10x64xf32>
    %cst_24 = arith.constant 0.000000e+00 : f32
    %44 = vector.broadcast %cst_24 : f32 to vector<10x64xf32>
    %45 = arith.subf %44, %43 : vector<10x64xf32>
    %46 = math.exp %45 : vector<10x64xf32>
    %cst_25 = arith.constant 1.000000e+00 : f32
    %47 = vector.broadcast %cst_25 : f32 to vector<10x64xf32>
    %48 = arith.addf %47, %46 : vector<10x64xf32>
    %49 = math.log %48 : vector<10x64xf32>
    %50 = arith.addf %42, %49 : vector<10x64xf32>
    %c0_26 = arith.constant 0 : index
    %c0_27 = arith.constant 0 : index
    %c0_28 = arith.constant 0 : index
    %51 = vector.load %arg8[%c0_26, %c0_27, %c0_28] : memref<2x64x96xf32, #tpu.memory_space<vmem>>, vector<1x64x96xf32>
    %52 = vector.shape_cast %51 : vector<1x64x96xf32> to vector<64x96xf32>
    %cst_29 = arith.constant dense<0.000000e+00> : vector<10x96xf32>
    %53 = tpu.matmul %50, %52, %cst_29 {dimension_numbers = #tpu.dot_dimension_numbers<[1], [0], [0], [1], [0, 0, 1, 1], [], []>} : vector<10x64xf32>, vector<64x96xf32>, vector<10x96xf32> -> vector<10x96xf32>
    %c0_30 = arith.constant 0 : index
    %c0_31 = arith.constant 0 : index
    %c0_32 = arith.constant 0 : index
    %54 = vector.load %arg9[%c0_30, %c0_31, %c0_32] : memref<2x1x96xf32, #tpu.memory_space<vmem>>, vector<1x1x96xf32>
    %55 = vector.shape_cast %54 : vector<1x1x96xf32> to vector<1x96xf32>
    %56 = vector.broadcast %55 : vector<1x96xf32> to vector<10x96xf32>
    %57 = arith.addf %53, %56 : vector<10x96xf32>
    %58 = vector.extract_strided_slice %57 {offsets = [0, 0], sizes = [10, 64], strides = [1, 1]} : vector<10x96xf32> to vector<10x64xf32>
    %cst_33 = arith.constant 0.000000e+00 : f32
    %59 = vector.broadcast %cst_33 : f32 to vector<10x64xf32>
    %60 = arith.maximumf %58, %59 : vector<10x64xf32>
    %61 = math.absf %58 : vector<10x64xf32>
    %cst_34 = arith.constant 0.000000e+00 : f32
    %62 = vector.broadcast %cst_34 : f32 to vector<10x64xf32>
    %63 = arith.subf %62, %61 : vector<10x64xf32>
    %64 = math.exp %63 : vector<10x64xf32>
    %cst_35 = arith.constant 1.000000e+00 : f32
    %65 = vector.broadcast %cst_35 : f32 to vector<10x64xf32>
    %66 = arith.addf %65, %64 : vector<10x64xf32>
    %67 = math.log %66 : vector<10x64xf32>
    %68 = arith.addf %60, %67 : vector<10x64xf32>
    %69 = vector.extract_strided_slice %57 {offsets = [0, 64], sizes = [10, 16], strides = [1, 1]} : vector<10x96xf32> to vector<10x16xf32>
    %70 = vector.extract_strided_slice %57 {offsets = [0, 80], sizes = [10, 16], strides = [1, 1]} : vector<10x96xf32> to vector<10x16xf32>
    %c0_36 = arith.constant 0 : index
    %c0_37 = arith.constant 0 : index
    %c0_38 = arith.constant 0 : index
    %71 = vector.load %arg10[%c0_36, %c0_37, %c0_38] : memref<2x8x32xf32, #tpu.memory_space<vmem>>, vector<1x8x32xf32>
    %72 = vector.shape_cast %71 : vector<1x8x32xf32> to vector<8x32xf32>
    %73 = math.exp %72 : vector<8x32xf32>
    %cst_39 = arith.constant 0.000000e+00 : f32
    %74 = vector.broadcast %cst_39 : f32 to vector<8x32xf32>
    %75 = arith.subf %74, %73 : vector<8x32xf32>
    %76 = tpu.concatenate %75, %75 in 1 : vector<8x32xf32>, vector<8x32xf32> -> vector<8x64xf32>
    %cst_40 = arith.constant 0.000000e+00 : f32
    %77 = vector.broadcast %cst_40 : f32 to vector<2x8x64xf32>
    %78 = vector.extract_strided_slice %68 {offsets = [0, 0], sizes = [2, 64], strides = [1, 1]} : vector<10x64xf32> to vector<2x64xf32>
    %79 = vector.extract_strided_slice %50 {offsets = [0, 0], sizes = [2, 64], strides = [1, 1]} : vector<10x64xf32> to vector<2x64xf32>
    %80 = vector.extract_strided_slice %69 {offsets = [0, 0], sizes = [2, 16], strides = [1, 1]} : vector<10x16xf32> to vector<2x16xf32>
    %81 = vector.extract_strided_slice %70 {offsets = [0, 0], sizes = [2, 16], strides = [1, 1]} : vector<10x16xf32> to vector<2x16xf32>
    %82 = vector.shape_cast %78 : vector<2x64xf32> to vector<2x1x64xf32>
    %83 = vector.shape_cast %76 : vector<8x64xf32> to vector<1x8x64xf32>
    %84 = vector.broadcast %82 : vector<2x1x64xf32> to vector<2x8x64xf32>
    %85 = vector.broadcast %83 : vector<1x8x64xf32> to vector<2x8x64xf32>
    %86 = arith.mulf %84, %85 : vector<2x8x64xf32>
    %87 = math.exp %86 : vector<2x8x64xf32>
    %88 = arith.mulf %78, %79 : vector<2x64xf32>
    %89 = vector.extract_strided_slice %88 {offsets = [0, 0], sizes = [2, 32], strides = [1, 1]} : vector<2x64xf32> to vector<2x32xf32>
    %90 = vector.shape_cast %89 : vector<2x32xf32> to vector<2x1x32xf32>
    %91 = vector.extract_strided_slice %80 {offsets = [0, 0], sizes = [2, 8], strides = [1, 1]} : vector<2x16xf32> to vector<2x8xf32>
    %92 = vector.shape_cast %91 : vector<2x8xf32> to vector<2x8x1xf32>
    %93 = vector.broadcast %90 : vector<2x1x32xf32> to vector<2x8x32xf32>
    %94 = vector.broadcast %92 : vector<2x8x1xf32> to vector<2x8x32xf32>
    %95 = arith.mulf %93, %94 : vector<2x8x32xf32>
    %96 = vector.extract_strided_slice %88 {offsets = [0, 32], sizes = [2, 32], strides = [1, 1]} : vector<2x64xf32> to vector<2x32xf32>
    %97 = vector.shape_cast %96 : vector<2x32xf32> to vector<2x1x32xf32>
    %98 = vector.extract_strided_slice %80 {offsets = [0, 8], sizes = [2, 8], strides = [1, 1]} : vector<2x16xf32> to vector<2x8xf32>
    %99 = vector.shape_cast %98 : vector<2x8xf32> to vector<2x8x1xf32>
    %100 = vector.broadcast %97 : vector<2x1x32xf32> to vector<2x8x32xf32>
    %101 = vector.broadcast %99 : vector<2x8x1xf32> to vector<2x8x32xf32>
    %102 = arith.mulf %100, %101 : vector<2x8x32xf32>
    %103 = tpu.concatenate %95, %102 in 2 : vector<2x8x32xf32>, vector<2x8x32xf32> -> vector<2x8x64xf32>
    %104 = arith.mulf %87, %77 : vector<2x8x64xf32>
    %105 = arith.addf %104, %103 : vector<2x8x64xf32>
    %106 = vector.extract_strided_slice %105 {offsets = [0, 0, 0], sizes = [2, 8, 32], strides = [1, 1, 1]} : vector<2x8x64xf32> to vector<2x8x32xf32>
    %107 = vector.extract_strided_slice %81 {offsets = [0, 0], sizes = [2, 8], strides = [1, 1]} : vector<2x16xf32> to vector<2x8xf32>
    %108 = vector.shape_cast %107 : vector<2x8xf32> to vector<2x8x1xf32>
    %109 = vector.broadcast %108 : vector<2x8x1xf32> to vector<2x8x32xf32>
    %110 = arith.mulf %106, %109 : vector<2x8x32xf32>
    %111 = vector.extract_strided_slice %105 {offsets = [0, 0, 32], sizes = [2, 8, 32], strides = [1, 1, 1]} : vector<2x8x64xf32> to vector<2x8x32xf32>
    %112 = vector.extract_strided_slice %81 {offsets = [0, 8], sizes = [2, 8], strides = [1, 1]} : vector<2x16xf32> to vector<2x8xf32>
    %113 = vector.shape_cast %112 : vector<2x8xf32> to vector<2x8x1xf32>
    %114 = vector.broadcast %113 : vector<2x8x1xf32> to vector<2x8x32xf32>
    %115 = arith.mulf %111, %114 : vector<2x8x32xf32>
    %116 = arith.addf %110, %115 : vector<2x8x32xf32>
    %cst_41 = arith.constant dense<0.000000e+00> : vector<2x32xf32>
    %117 = vector.multi_reduction <add>, %116, %cst_41 [1] : vector<2x8x32xf32> to vector<2x32xf32>
    %118 = vector.extract_strided_slice %68 {offsets = [2, 0], sizes = [2, 64], strides = [1, 1]} : vector<10x64xf32> to vector<2x64xf32>
    %119 = vector.extract_strided_slice %50 {offsets = [2, 0], sizes = [2, 64], strides = [1, 1]} : vector<10x64xf32> to vector<2x64xf32>
    %120 = vector.extract_strided_slice %69 {offsets = [2, 0], sizes = [2, 16], strides = [1, 1]} : vector<10x16xf32> to vector<2x16xf32>
    %121 = vector.extract_strided_slice %70 {offsets = [2, 0], sizes = [2, 16], strides = [1, 1]} : vector<10x16xf32> to vector<2x16xf32>
    %122 = vector.shape_cast %118 : vector<2x64xf32> to vector<2x1x64xf32>
    %123 = vector.shape_cast %76 : vector<8x64xf32> to vector<1x8x64xf32>
    %124 = vector.broadcast %122 : vector<2x1x64xf32> to vector<2x8x64xf32>
    %125 = vector.broadcast %123 : vector<1x8x64xf32> to vector<2x8x64xf32>
    %126 = arith.mulf %124, %125 : vector<2x8x64xf32>
    %127 = math.exp %126 : vector<2x8x64xf32>
    %128 = arith.mulf %118, %119 : vector<2x64xf32>
    %129 = vector.extract_strided_slice %128 {offsets = [0, 0], sizes = [2, 32], strides = [1, 1]} : vector<2x64xf32> to vector<2x32xf32>
    %130 = vector.shape_cast %129 : vector<2x32xf32> to vector<2x1x32xf32>
    %131 = vector.extract_strided_slice %120 {offsets = [0, 0], sizes = [2, 8], strides = [1, 1]} : vector<2x16xf32> to vector<2x8xf32>
    %132 = vector.shape_cast %131 : vector<2x8xf32> to vector<2x8x1xf32>
    %133 = vector.broadcast %130 : vector<2x1x32xf32> to vector<2x8x32xf32>
    %134 = vector.broadcast %132 : vector<2x8x1xf32> to vector<2x8x32xf32>
    %135 = arith.mulf %133, %134 : vector<2x8x32xf32>
    %136 = vector.extract_strided_slice %128 {offsets = [0, 32], sizes = [2, 32], strides = [1, 1]} : vector<2x64xf32> to vector<2x32xf32>
    %137 = vector.shape_cast %136 : vector<2x32xf32> to vector<2x1x32xf32>
    %138 = vector.extract_strided_slice %120 {offsets = [0, 8], sizes = [2, 8], strides = [1, 1]} : vector<2x16xf32> to vector<2x8xf32>
    %139 = vector.shape_cast %138 : vector<2x8xf32> to vector<2x8x1xf32>
    %140 = vector.broadcast %137 : vector<2x1x32xf32> to vector<2x8x32xf32>
    %141 = vector.broadcast %139 : vector<2x8x1xf32> to vector<2x8x32xf32>
    %142 = arith.mulf %140, %141 : vector<2x8x32xf32>
    %143 = tpu.concatenate %135, %142 in 2 : vector<2x8x32xf32>, vector<2x8x32xf32> -> vector<2x8x64xf32>
    %144 = arith.mulf %127, %105 : vector<2x8x64xf32>
    %145 = arith.addf %144, %143 : vector<2x8x64xf32>
    %146 = vector.extract_strided_slice %145 {offsets = [0, 0, 0], sizes = [2, 8, 32], strides = [1, 1, 1]} : vector<2x8x64xf32> to vector<2x8x32xf32>
    %147 = vector.extract_strided_slice %121 {offsets = [0, 0], sizes = [2, 8], strides = [1, 1]} : vector<2x16xf32> to vector<2x8xf32>
    %148 = vector.shape_cast %147 : vector<2x8xf32> to vector<2x8x1xf32>
    %149 = vector.broadcast %148 : vector<2x8x1xf32> to vector<2x8x32xf32>
    %150 = arith.mulf %146, %149 : vector<2x8x32xf32>
    %151 = vector.extract_strided_slice %145 {offsets = [0, 0, 32], sizes = [2, 8, 32], strides = [1, 1, 1]} : vector<2x8x64xf32> to vector<2x8x32xf32>
    %152 = vector.extract_strided_slice %121 {offsets = [0, 8], sizes = [2, 8], strides = [1, 1]} : vector<2x16xf32> to vector<2x8xf32>
    %153 = vector.shape_cast %152 : vector<2x8xf32> to vector<2x8x1xf32>
    %154 = vector.broadcast %153 : vector<2x8x1xf32> to vector<2x8x32xf32>
    %155 = arith.mulf %151, %154 : vector<2x8x32xf32>
    %156 = arith.addf %150, %155 : vector<2x8x32xf32>
    %cst_42 = arith.constant dense<0.000000e+00> : vector<2x32xf32>
    %157 = vector.multi_reduction <add>, %156, %cst_42 [1] : vector<2x8x32xf32> to vector<2x32xf32>
    %158 = vector.extract_strided_slice %68 {offsets = [4, 0], sizes = [2, 64], strides = [1, 1]} : vector<10x64xf32> to vector<2x64xf32>
    %159 = vector.extract_strided_slice %50 {offsets = [4, 0], sizes = [2, 64], strides = [1, 1]} : vector<10x64xf32> to vector<2x64xf32>
    %160 = vector.extract_strided_slice %69 {offsets = [4, 0], sizes = [2, 16], strides = [1, 1]} : vector<10x16xf32> to vector<2x16xf32>
    %161 = vector.extract_strided_slice %70 {offsets = [4, 0], sizes = [2, 16], strides = [1, 1]} : vector<10x16xf32> to vector<2x16xf32>
    %162 = vector.shape_cast %158 : vector<2x64xf32> to vector<2x1x64xf32>
    %163 = vector.shape_cast %76 : vector<8x64xf32> to vector<1x8x64xf32>
    %164 = vector.broadcast %162 : vector<2x1x64xf32> to vector<2x8x64xf32>
    %165 = vector.broadcast %163 : vector<1x8x64xf32> to vector<2x8x64xf32>
    %166 = arith.mulf %164, %165 : vector<2x8x64xf32>
    %167 = math.exp %166 : vector<2x8x64xf32>
    %168 = arith.mulf %158, %159 : vector<2x64xf32>
    %169 = vector.extract_strided_slice %168 {offsets = [0, 0], sizes = [2, 32], strides = [1, 1]} : vector<2x64xf32> to vector<2x32xf32>
    %170 = vector.shape_cast %169 : vector<2x32xf32> to vector<2x1x32xf32>
    %171 = vector.extract_strided_slice %160 {offsets = [0, 0], sizes = [2, 8], strides = [1, 1]} : vector<2x16xf32> to vector<2x8xf32>
    %172 = vector.shape_cast %171 : vector<2x8xf32> to vector<2x8x1xf32>
    %173 = vector.broadcast %170 : vector<2x1x32xf32> to vector<2x8x32xf32>
    %174 = vector.broadcast %172 : vector<2x8x1xf32> to vector<2x8x32xf32>
    %175 = arith.mulf %173, %174 : vector<2x8x32xf32>
    %176 = vector.extract_strided_slice %168 {offsets = [0, 32], sizes = [2, 32], strides = [1, 1]} : vector<2x64xf32> to vector<2x32xf32>
    %177 = vector.shape_cast %176 : vector<2x32xf32> to vector<2x1x32xf32>
    %178 = vector.extract_strided_slice %160 {offsets = [0, 8], sizes = [2, 8], strides = [1, 1]} : vector<2x16xf32> to vector<2x8xf32>
    %179 = vector.shape_cast %178 : vector<2x8xf32> to vector<2x8x1xf32>
    %180 = vector.broadcast %177 : vector<2x1x32xf32> to vector<2x8x32xf32>
    %181 = vector.broadcast %179 : vector<2x8x1xf32> to vector<2x8x32xf32>
    %182 = arith.mulf %180, %181 : vector<2x8x32xf32>
    %183 = tpu.concatenate %175, %182 in 2 : vector<2x8x32xf32>, vector<2x8x32xf32> -> vector<2x8x64xf32>
    %184 = arith.mulf %167, %145 : vector<2x8x64xf32>
    %185 = arith.addf %184, %183 : vector<2x8x64xf32>
    %186 = vector.extract_strided_slice %185 {offsets = [0, 0, 0], sizes = [2, 8, 32], strides = [1, 1, 1]} : vector<2x8x64xf32> to vector<2x8x32xf32>
    %187 = vector.extract_strided_slice %161 {offsets = [0, 0], sizes = [2, 8], strides = [1, 1]} : vector<2x16xf32> to vector<2x8xf32>
    %188 = vector.shape_cast %187 : vector<2x8xf32> to vector<2x8x1xf32>
    %189 = vector.broadcast %188 : vector<2x8x1xf32> to vector<2x8x32xf32>
    %190 = arith.mulf %186, %189 : vector<2x8x32xf32>
    %191 = vector.extract_strided_slice %185 {offsets = [0, 0, 32], sizes = [2, 8, 32], strides = [1, 1, 1]} : vector<2x8x64xf32> to vector<2x8x32xf32>
    %192 = vector.extract_strided_slice %161 {offsets = [0, 8], sizes = [2, 8], strides = [1, 1]} : vector<2x16xf32> to vector<2x8xf32>
    %193 = vector.shape_cast %192 : vector<2x8xf32> to vector<2x8x1xf32>
    %194 = vector.broadcast %193 : vector<2x8x1xf32> to vector<2x8x32xf32>
    %195 = arith.mulf %191, %194 : vector<2x8x32xf32>
    %196 = arith.addf %190, %195 : vector<2x8x32xf32>
    %cst_43 = arith.constant dense<0.000000e+00> : vector<2x32xf32>
    %197 = vector.multi_reduction <add>, %196, %cst_43 [1] : vector<2x8x32xf32> to vector<2x32xf32>
    %198 = vector.extract_strided_slice %68 {offsets = [6, 0], sizes = [2, 64], strides = [1, 1]} : vector<10x64xf32> to vector<2x64xf32>
    %199 = vector.extract_strided_slice %50 {offsets = [6, 0], sizes = [2, 64], strides = [1, 1]} : vector<10x64xf32> to vector<2x64xf32>
    %200 = vector.extract_strided_slice %69 {offsets = [6, 0], sizes = [2, 16], strides = [1, 1]} : vector<10x16xf32> to vector<2x16xf32>
    %201 = vector.extract_strided_slice %70 {offsets = [6, 0], sizes = [2, 16], strides = [1, 1]} : vector<10x16xf32> to vector<2x16xf32>
    %202 = vector.shape_cast %198 : vector<2x64xf32> to vector<2x1x64xf32>
    %203 = vector.shape_cast %76 : vector<8x64xf32> to vector<1x8x64xf32>
    %204 = vector.broadcast %202 : vector<2x1x64xf32> to vector<2x8x64xf32>
    %205 = vector.broadcast %203 : vector<1x8x64xf32> to vector<2x8x64xf32>
    %206 = arith.mulf %204, %205 : vector<2x8x64xf32>
    %207 = math.exp %206 : vector<2x8x64xf32>
    %208 = arith.mulf %198, %199 : vector<2x64xf32>
    %209 = vector.extract_strided_slice %208 {offsets = [0, 0], sizes = [2, 32], strides = [1, 1]} : vector<2x64xf32> to vector<2x32xf32>
    %210 = vector.shape_cast %209 : vector<2x32xf32> to vector<2x1x32xf32>
    %211 = vector.extract_strided_slice %200 {offsets = [0, 0], sizes = [2, 8], strides = [1, 1]} : vector<2x16xf32> to vector<2x8xf32>
    %212 = vector.shape_cast %211 : vector<2x8xf32> to vector<2x8x1xf32>
    %213 = vector.broadcast %210 : vector<2x1x32xf32> to vector<2x8x32xf32>
    %214 = vector.broadcast %212 : vector<2x8x1xf32> to vector<2x8x32xf32>
    %215 = arith.mulf %213, %214 : vector<2x8x32xf32>
    %216 = vector.extract_strided_slice %208 {offsets = [0, 32], sizes = [2, 32], strides = [1, 1]} : vector<2x64xf32> to vector<2x32xf32>
    %217 = vector.shape_cast %216 : vector<2x32xf32> to vector<2x1x32xf32>
    %218 = vector.extract_strided_slice %200 {offsets = [0, 8], sizes = [2, 8], strides = [1, 1]} : vector<2x16xf32> to vector<2x8xf32>
    %219 = vector.shape_cast %218 : vector<2x8xf32> to vector<2x8x1xf32>
    %220 = vector.broadcast %217 : vector<2x1x32xf32> to vector<2x8x32xf32>
    %221 = vector.broadcast %219 : vector<2x8x1xf32> to vector<2x8x32xf32>
    %222 = arith.mulf %220, %221 : vector<2x8x32xf32>
    %223 = tpu.concatenate %215, %222 in 2 : vector<2x8x32xf32>, vector<2x8x32xf32> -> vector<2x8x64xf32>
    %224 = arith.mulf %207, %185 : vector<2x8x64xf32>
    %225 = arith.addf %224, %223 : vector<2x8x64xf32>
    %226 = vector.extract_strided_slice %225 {offsets = [0, 0, 0], sizes = [2, 8, 32], strides = [1, 1, 1]} : vector<2x8x64xf32> to vector<2x8x32xf32>
    %227 = vector.extract_strided_slice %201 {offsets = [0, 0], sizes = [2, 8], strides = [1, 1]} : vector<2x16xf32> to vector<2x8xf32>
    %228 = vector.shape_cast %227 : vector<2x8xf32> to vector<2x8x1xf32>
    %229 = vector.broadcast %228 : vector<2x8x1xf32> to vector<2x8x32xf32>
    %230 = arith.mulf %226, %229 : vector<2x8x32xf32>
    %231 = vector.extract_strided_slice %225 {offsets = [0, 0, 32], sizes = [2, 8, 32], strides = [1, 1, 1]} : vector<2x8x64xf32> to vector<2x8x32xf32>
    %232 = vector.extract_strided_slice %201 {offsets = [0, 8], sizes = [2, 8], strides = [1, 1]} : vector<2x16xf32> to vector<2x8xf32>
    %233 = vector.shape_cast %232 : vector<2x8xf32> to vector<2x8x1xf32>
    %234 = vector.broadcast %233 : vector<2x8x1xf32> to vector<2x8x32xf32>
    %235 = arith.mulf %231, %234 : vector<2x8x32xf32>
    %236 = arith.addf %230, %235 : vector<2x8x32xf32>
    %cst_44 = arith.constant dense<0.000000e+00> : vector<2x32xf32>
    %237 = vector.multi_reduction <add>, %236, %cst_44 [1] : vector<2x8x32xf32> to vector<2x32xf32>
    %238 = vector.extract_strided_slice %68 {offsets = [8, 0], sizes = [2, 64], strides = [1, 1]} : vector<10x64xf32> to vector<2x64xf32>
    %239 = vector.extract_strided_slice %50 {offsets = [8, 0], sizes = [2, 64], strides = [1, 1]} : vector<10x64xf32> to vector<2x64xf32>
    %240 = vector.extract_strided_slice %69 {offsets = [8, 0], sizes = [2, 16], strides = [1, 1]} : vector<10x16xf32> to vector<2x16xf32>
    %241 = vector.extract_strided_slice %70 {offsets = [8, 0], sizes = [2, 16], strides = [1, 1]} : vector<10x16xf32> to vector<2x16xf32>
    %242 = vector.shape_cast %238 : vector<2x64xf32> to vector<2x1x64xf32>
    %243 = vector.shape_cast %76 : vector<8x64xf32> to vector<1x8x64xf32>
    %244 = vector.broadcast %242 : vector<2x1x64xf32> to vector<2x8x64xf32>
    %245 = vector.broadcast %243 : vector<1x8x64xf32> to vector<2x8x64xf32>
    %246 = arith.mulf %244, %245 : vector<2x8x64xf32>
    %247 = math.exp %246 : vector<2x8x64xf32>
    %248 = arith.mulf %238, %239 : vector<2x64xf32>
    %249 = vector.extract_strided_slice %248 {offsets = [0, 0], sizes = [2, 32], strides = [1, 1]} : vector<2x64xf32> to vector<2x32xf32>
    %250 = vector.shape_cast %249 : vector<2x32xf32> to vector<2x1x32xf32>
    %251 = vector.extract_strided_slice %240 {offsets = [0, 0], sizes = [2, 8], strides = [1, 1]} : vector<2x16xf32> to vector<2x8xf32>
    %252 = vector.shape_cast %251 : vector<2x8xf32> to vector<2x8x1xf32>
    %253 = vector.broadcast %250 : vector<2x1x32xf32> to vector<2x8x32xf32>
    %254 = vector.broadcast %252 : vector<2x8x1xf32> to vector<2x8x32xf32>
    %255 = arith.mulf %253, %254 : vector<2x8x32xf32>
    %256 = vector.extract_strided_slice %248 {offsets = [0, 32], sizes = [2, 32], strides = [1, 1]} : vector<2x64xf32> to vector<2x32xf32>
    %257 = vector.shape_cast %256 : vector<2x32xf32> to vector<2x1x32xf32>
    %258 = vector.extract_strided_slice %240 {offsets = [0, 8], sizes = [2, 8], strides = [1, 1]} : vector<2x16xf32> to vector<2x8xf32>
    %259 = vector.shape_cast %258 : vector<2x8xf32> to vector<2x8x1xf32>
    %260 = vector.broadcast %257 : vector<2x1x32xf32> to vector<2x8x32xf32>
    %261 = vector.broadcast %259 : vector<2x8x1xf32> to vector<2x8x32xf32>
    %262 = arith.mulf %260, %261 : vector<2x8x32xf32>
    %263 = tpu.concatenate %255, %262 in 2 : vector<2x8x32xf32>, vector<2x8x32xf32> -> vector<2x8x64xf32>
    %264 = arith.mulf %247, %225 : vector<2x8x64xf32>
    %265 = arith.addf %264, %263 : vector<2x8x64xf32>
    %266 = vector.extract_strided_slice %265 {offsets = [0, 0, 0], sizes = [2, 8, 32], strides = [1, 1, 1]} : vector<2x8x64xf32> to vector<2x8x32xf32>
    %267 = vector.extract_strided_slice %241 {offsets = [0, 0], sizes = [2, 8], strides = [1, 1]} : vector<2x16xf32> to vector<2x8xf32>
    %268 = vector.shape_cast %267 : vector<2x8xf32> to vector<2x8x1xf32>
    %269 = vector.broadcast %268 : vector<2x8x1xf32> to vector<2x8x32xf32>
    %270 = arith.mulf %266, %269 : vector<2x8x32xf32>
    %271 = vector.extract_strided_slice %265 {offsets = [0, 0, 32], sizes = [2, 8, 32], strides = [1, 1, 1]} : vector<2x8x64xf32> to vector<2x8x32xf32>
    %272 = vector.extract_strided_slice %241 {offsets = [0, 8], sizes = [2, 8], strides = [1, 1]} : vector<2x16xf32> to vector<2x8xf32>
    %273 = vector.shape_cast %272 : vector<2x8xf32> to vector<2x8x1xf32>
    %274 = vector.broadcast %273 : vector<2x8x1xf32> to vector<2x8x32xf32>
    %275 = arith.mulf %271, %274 : vector<2x8x32xf32>
    %276 = arith.addf %270, %275 : vector<2x8x32xf32>
    %cst_45 = arith.constant dense<0.000000e+00> : vector<2x32xf32>
    %277 = vector.multi_reduction <add>, %276, %cst_45 [1] : vector<2x8x32xf32> to vector<2x32xf32>
    %278 = tpu.concatenate %117, %157, %197, %237, %277 in 0 : vector<2x32xf32>, vector<2x32xf32>, vector<2x32xf32>, vector<2x32xf32>, vector<2x32xf32> -> vector<10x32xf32>
    %279 = vector.extract_strided_slice %50 {offsets = [0, 0], sizes = [10, 32], strides = [1, 1]} : vector<10x64xf32> to vector<10x32xf32>
    %280 = vector.extract_strided_slice %50 {offsets = [0, 32], sizes = [10, 32], strides = [1, 1]} : vector<10x64xf32> to vector<10x32xf32>
    %281 = arith.addf %279, %280 : vector<10x32xf32>
    %cst_46 = arith.constant 0.000000e+00 : f32
    %282 = vector.broadcast %cst_46 : f32 to vector<10x32xf32>
    %283 = arith.subf %282, %39 : vector<10x32xf32>
    %284 = math.exp %283 : vector<10x32xf32>
    %cst_47 = arith.constant 1.000000e+00 : f32
    %285 = vector.broadcast %cst_47 : f32 to vector<10x32xf32>
    %286 = arith.addf %285, %284 : vector<10x32xf32>
    %cst_48 = arith.constant 1.000000e+00 : f32
    %287 = vector.broadcast %cst_48 : f32 to vector<10x32xf32>
    %288 = arith.divf %287, %286 : vector<10x32xf32>
    %289 = arith.mulf %39, %288 : vector<10x32xf32>
    %c0_49 = arith.constant 0 : index
    %c0_50 = arith.constant 0 : index
    %c0_51 = arith.constant 0 : index
    %290 = vector.load %arg11[%c0_49, %c0_50, %c0_51] : memref<2x1x32xf32, #tpu.memory_space<vmem>>, vector<1x1x32xf32>
    %291 = vector.shape_cast %290 : vector<1x1x32xf32> to vector<1x32xf32>
    %292 = vector.broadcast %291 : vector<1x32xf32> to vector<10x32xf32>
    %293 = arith.mulf %292, %281 : vector<10x32xf32>
    %294 = arith.addf %278, %293 : vector<10x32xf32>
    %295 = arith.mulf %289, %294 : vector<10x32xf32>
    %296 = arith.addf %295, %5 : vector<10x32xf32>
    %cst_52 = arith.constant dense<0.000000e+00> : vector<10xf32>
    %297 = vector.multi_reduction <add>, %296, %cst_52 [1] : vector<10x32xf32> to vector<10xf32>
    %298 = vector.shape_cast %297 : vector<10xf32> to vector<10x1xf32>
    %cst_53 = arith.constant 3.200000e+01 : f32
    %299 = vector.broadcast %cst_53 : f32 to vector<10x1xf32>
    %300 = arith.divf %298, %299 : vector<10x1xf32>
    %301 = vector.broadcast %300 : vector<10x1xf32> to vector<10x32xf32>
    %302 = arith.subf %296, %301 : vector<10x32xf32>
    %303 = arith.mulf %302, %302 : vector<10x32xf32>
    %cst_54 = arith.constant dense<0.000000e+00> : vector<10xf32>
    %304 = vector.multi_reduction <add>, %303, %cst_54 [1] : vector<10x32xf32> to vector<10xf32>
    %305 = vector.shape_cast %304 : vector<10xf32> to vector<10x1xf32>
    %cst_55 = arith.constant 3.200000e+01 : f32
    %306 = vector.broadcast %cst_55 : f32 to vector<10x1xf32>
    %307 = arith.divf %305, %306 : vector<10x1xf32>
    %308 = vector.broadcast %300 : vector<10x1xf32> to vector<10x32xf32>
    %309 = arith.subf %296, %308 : vector<10x32xf32>
    %cst_56 = arith.constant 9.99999974E-6 : f32
    %310 = vector.broadcast %cst_56 : f32 to vector<10x1xf32>
    %311 = arith.addf %307, %310 : vector<10x1xf32>
    %312 = math.rsqrt %311 : vector<10x1xf32>
    %313 = vector.broadcast %312 : vector<10x1xf32> to vector<10x32xf32>
    %314 = arith.mulf %309, %313 : vector<10x32xf32>
    %c1 = arith.constant 1 : index
    %c0_57 = arith.constant 0 : index
    %c0_58 = arith.constant 0 : index
    %315 = vector.load %arg4[%c1, %c0_57, %c0_58] : memref<2x1x32xf32, #tpu.memory_space<vmem>>, vector<1x1x32xf32>
    %316 = vector.shape_cast %315 : vector<1x1x32xf32> to vector<1x32xf32>
    %317 = vector.broadcast %316 : vector<1x32xf32> to vector<10x32xf32>
    %318 = arith.mulf %314, %317 : vector<10x32xf32>
    %c1_59 = arith.constant 1 : index
    %c0_60 = arith.constant 0 : index
    %c0_61 = arith.constant 0 : index
    %319 = vector.load %arg5[%c1_59, %c0_60, %c0_61] : memref<2x1x32xf32, #tpu.memory_space<vmem>>, vector<1x1x32xf32>
    %320 = vector.shape_cast %319 : vector<1x1x32xf32> to vector<1x32xf32>
    %321 = vector.broadcast %320 : vector<1x32xf32> to vector<10x32xf32>
    %322 = arith.addf %318, %321 : vector<10x32xf32>
    %c1_62 = arith.constant 1 : index
    %c0_63 = arith.constant 0 : index
    %c0_64 = arith.constant 0 : index
    %323 = vector.load %arg6[%c1_62, %c0_63, %c0_64] : memref<2x32x96xf32, #tpu.memory_space<vmem>>, vector<1x32x96xf32>
    %324 = vector.shape_cast %323 : vector<1x32x96xf32> to vector<32x96xf32>
    %cst_65 = arith.constant dense<0.000000e+00> : vector<10x96xf32>
    %325 = tpu.matmul %322, %324, %cst_65 {dimension_numbers = #tpu.dot_dimension_numbers<[1], [0], [0], [1], [0, 0, 1, 1], [], []>} : vector<10x32xf32>, vector<32x96xf32>, vector<10x96xf32> -> vector<10x96xf32>
    %c1_66 = arith.constant 1 : index
    %c0_67 = arith.constant 0 : index
    %c0_68 = arith.constant 0 : index
    %326 = vector.load %arg7[%c1_66, %c0_67, %c0_68] : memref<2x1x96xf32, #tpu.memory_space<vmem>>, vector<1x1x96xf32>
    %327 = vector.shape_cast %326 : vector<1x1x96xf32> to vector<1x96xf32>
    %328 = vector.broadcast %327 : vector<1x96xf32> to vector<10x96xf32>
    %329 = arith.addf %325, %328 : vector<10x96xf32>
    %330 = vector.extract_strided_slice %329 {offsets = [0, 0], sizes = [10, 32], strides = [1, 1]} : vector<10x96xf32> to vector<10x32xf32>
    %331 = vector.extract_strided_slice %329 {offsets = [0, 32], sizes = [10, 64], strides = [1, 1]} : vector<10x96xf32> to vector<10x64xf32>
    %cst_69 = arith.constant 0.000000e+00 : f32
    %332 = vector.broadcast %cst_69 : f32 to vector<10x64xf32>
    %333 = arith.maximumf %331, %332 : vector<10x64xf32>
    %334 = math.absf %331 : vector<10x64xf32>
    %cst_70 = arith.constant 0.000000e+00 : f32
    %335 = vector.broadcast %cst_70 : f32 to vector<10x64xf32>
    %336 = arith.subf %335, %334 : vector<10x64xf32>
    %337 = math.exp %336 : vector<10x64xf32>
    %cst_71 = arith.constant 1.000000e+00 : f32
    %338 = vector.broadcast %cst_71 : f32 to vector<10x64xf32>
    %339 = arith.addf %338, %337 : vector<10x64xf32>
    %340 = math.log %339 : vector<10x64xf32>
    %341 = arith.addf %333, %340 : vector<10x64xf32>
    %c1_72 = arith.constant 1 : index
    %c0_73 = arith.constant 0 : index
    %c0_74 = arith.constant 0 : index
    %342 = vector.load %arg8[%c1_72, %c0_73, %c0_74] : memref<2x64x96xf32, #tpu.memory_space<vmem>>, vector<1x64x96xf32>
    %343 = vector.shape_cast %342 : vector<1x64x96xf32> to vector<64x96xf32>
    %cst_75 = arith.constant dense<0.000000e+00> : vector<10x96xf32>
    %344 = tpu.matmul %341, %343, %cst_75 {dimension_numbers = #tpu.dot_dimension_numbers<[1], [0], [0], [1], [0, 0, 1, 1], [], []>} : vector<10x64xf32>, vector<64x96xf32>, vector<10x96xf32> -> vector<10x96xf32>
    %c1_76 = arith.constant 1 : index
    %c0_77 = arith.constant 0 : index
    %c0_78 = arith.constant 0 : index
    %345 = vector.load %arg9[%c1_76, %c0_77, %c0_78] : memref<2x1x96xf32, #tpu.memory_space<vmem>>, vector<1x1x96xf32>
    %346 = vector.shape_cast %345 : vector<1x1x96xf32> to vector<1x96xf32>
    %347 = vector.broadcast %346 : vector<1x96xf32> to vector<10x96xf32>
    %348 = arith.addf %344, %347 : vector<10x96xf32>
    %349 = vector.extract_strided_slice %348 {offsets = [0, 0], sizes = [10, 64], strides = [1, 1]} : vector<10x96xf32> to vector<10x64xf32>
    %cst_79 = arith.constant 0.000000e+00 : f32
    %350 = vector.broadcast %cst_79 : f32 to vector<10x64xf32>
    %351 = arith.maximumf %349, %350 : vector<10x64xf32>
    %352 = math.absf %349 : vector<10x64xf32>
    %cst_80 = arith.constant 0.000000e+00 : f32
    %353 = vector.broadcast %cst_80 : f32 to vector<10x64xf32>
    %354 = arith.subf %353, %352 : vector<10x64xf32>
    %355 = math.exp %354 : vector<10x64xf32>
    %cst_81 = arith.constant 1.000000e+00 : f32
    %356 = vector.broadcast %cst_81 : f32 to vector<10x64xf32>
    %357 = arith.addf %356, %355 : vector<10x64xf32>
    %358 = math.log %357 : vector<10x64xf32>
    %359 = arith.addf %351, %358 : vector<10x64xf32>
    %360 = vector.extract_strided_slice %348 {offsets = [0, 64], sizes = [10, 16], strides = [1, 1]} : vector<10x96xf32> to vector<10x16xf32>
    %361 = vector.extract_strided_slice %348 {offsets = [0, 80], sizes = [10, 16], strides = [1, 1]} : vector<10x96xf32> to vector<10x16xf32>
    %c1_82 = arith.constant 1 : index
    %c0_83 = arith.constant 0 : index
    %c0_84 = arith.constant 0 : index
    %362 = vector.load %arg10[%c1_82, %c0_83, %c0_84] : memref<2x8x32xf32, #tpu.memory_space<vmem>>, vector<1x8x32xf32>
    %363 = vector.shape_cast %362 : vector<1x8x32xf32> to vector<8x32xf32>
    %364 = math.exp %363 : vector<8x32xf32>
    %cst_85 = arith.constant 0.000000e+00 : f32
    %365 = vector.broadcast %cst_85 : f32 to vector<8x32xf32>
    %366 = arith.subf %365, %364 : vector<8x32xf32>
    %367 = tpu.concatenate %366, %366 in 1 : vector<8x32xf32>, vector<8x32xf32> -> vector<8x64xf32>
    %cst_86 = arith.constant 0.000000e+00 : f32
    %368 = vector.broadcast %cst_86 : f32 to vector<2x8x64xf32>
    %369 = vector.extract_strided_slice %359 {offsets = [0, 0], sizes = [2, 64], strides = [1, 1]} : vector<10x64xf32> to vector<2x64xf32>
    %370 = vector.extract_strided_slice %341 {offsets = [0, 0], sizes = [2, 64], strides = [1, 1]} : vector<10x64xf32> to vector<2x64xf32>
    %371 = vector.extract_strided_slice %360 {offsets = [0, 0], sizes = [2, 16], strides = [1, 1]} : vector<10x16xf32> to vector<2x16xf32>
    %372 = vector.extract_strided_slice %361 {offsets = [0, 0], sizes = [2, 16], strides = [1, 1]} : vector<10x16xf32> to vector<2x16xf32>
    %373 = vector.shape_cast %369 : vector<2x64xf32> to vector<2x1x64xf32>
    %374 = vector.shape_cast %367 : vector<8x64xf32> to vector<1x8x64xf32>
    %375 = vector.broadcast %373 : vector<2x1x64xf32> to vector<2x8x64xf32>
    %376 = vector.broadcast %374 : vector<1x8x64xf32> to vector<2x8x64xf32>
    %377 = arith.mulf %375, %376 : vector<2x8x64xf32>
    %378 = math.exp %377 : vector<2x8x64xf32>
    %379 = arith.mulf %369, %370 : vector<2x64xf32>
    %380 = vector.extract_strided_slice %379 {offsets = [0, 0], sizes = [2, 32], strides = [1, 1]} : vector<2x64xf32> to vector<2x32xf32>
    %381 = vector.shape_cast %380 : vector<2x32xf32> to vector<2x1x32xf32>
    %382 = vector.extract_strided_slice %371 {offsets = [0, 0], sizes = [2, 8], strides = [1, 1]} : vector<2x16xf32> to vector<2x8xf32>
    %383 = vector.shape_cast %382 : vector<2x8xf32> to vector<2x8x1xf32>
    %384 = vector.broadcast %381 : vector<2x1x32xf32> to vector<2x8x32xf32>
    %385 = vector.broadcast %383 : vector<2x8x1xf32> to vector<2x8x32xf32>
    %386 = arith.mulf %384, %385 : vector<2x8x32xf32>
    %387 = vector.extract_strided_slice %379 {offsets = [0, 32], sizes = [2, 32], strides = [1, 1]} : vector<2x64xf32> to vector<2x32xf32>
    %388 = vector.shape_cast %387 : vector<2x32xf32> to vector<2x1x32xf32>
    %389 = vector.extract_strided_slice %371 {offsets = [0, 8], sizes = [2, 8], strides = [1, 1]} : vector<2x16xf32> to vector<2x8xf32>
    %390 = vector.shape_cast %389 : vector<2x8xf32> to vector<2x8x1xf32>
    %391 = vector.broadcast %388 : vector<2x1x32xf32> to vector<2x8x32xf32>
    %392 = vector.broadcast %390 : vector<2x8x1xf32> to vector<2x8x32xf32>
    %393 = arith.mulf %391, %392 : vector<2x8x32xf32>
    %394 = tpu.concatenate %386, %393 in 2 : vector<2x8x32xf32>, vector<2x8x32xf32> -> vector<2x8x64xf32>
    %395 = arith.mulf %378, %368 : vector<2x8x64xf32>
    %396 = arith.addf %395, %394 : vector<2x8x64xf32>
    %397 = vector.extract_strided_slice %396 {offsets = [0, 0, 0], sizes = [2, 8, 32], strides = [1, 1, 1]} : vector<2x8x64xf32> to vector<2x8x32xf32>
    %398 = vector.extract_strided_slice %372 {offsets = [0, 0], sizes = [2, 8], strides = [1, 1]} : vector<2x16xf32> to vector<2x8xf32>
    %399 = vector.shape_cast %398 : vector<2x8xf32> to vector<2x8x1xf32>
    %400 = vector.broadcast %399 : vector<2x8x1xf32> to vector<2x8x32xf32>
    %401 = arith.mulf %397, %400 : vector<2x8x32xf32>
    %402 = vector.extract_strided_slice %396 {offsets = [0, 0, 32], sizes = [2, 8, 32], strides = [1, 1, 1]} : vector<2x8x64xf32> to vector<2x8x32xf32>
    %403 = vector.extract_strided_slice %372 {offsets = [0, 8], sizes = [2, 8], strides = [1, 1]} : vector<2x16xf32> to vector<2x8xf32>
    %404 = vector.shape_cast %403 : vector<2x8xf32> to vector<2x8x1xf32>
    %405 = vector.broadcast %404 : vector<2x8x1xf32> to vector<2x8x32xf32>
    %406 = arith.mulf %402, %405 : vector<2x8x32xf32>
    %407 = arith.addf %401, %406 : vector<2x8x32xf32>
    %cst_87 = arith.constant dense<0.000000e+00> : vector<2x32xf32>
    %408 = vector.multi_reduction <add>, %407, %cst_87 [1] : vector<2x8x32xf32> to vector<2x32xf32>
    %409 = vector.extract_strided_slice %359 {offsets = [2, 0], sizes = [2, 64], strides = [1, 1]} : vector<10x64xf32> to vector<2x64xf32>
    %410 = vector.extract_strided_slice %341 {offsets = [2, 0], sizes = [2, 64], strides = [1, 1]} : vector<10x64xf32> to vector<2x64xf32>
    %411 = vector.extract_strided_slice %360 {offsets = [2, 0], sizes = [2, 16], strides = [1, 1]} : vector<10x16xf32> to vector<2x16xf32>
    %412 = vector.extract_strided_slice %361 {offsets = [2, 0], sizes = [2, 16], strides = [1, 1]} : vector<10x16xf32> to vector<2x16xf32>
    %413 = vector.shape_cast %409 : vector<2x64xf32> to vector<2x1x64xf32>
    %414 = vector.shape_cast %367 : vector<8x64xf32> to vector<1x8x64xf32>
    %415 = vector.broadcast %413 : vector<2x1x64xf32> to vector<2x8x64xf32>
    %416 = vector.broadcast %414 : vector<1x8x64xf32> to vector<2x8x64xf32>
    %417 = arith.mulf %415, %416 : vector<2x8x64xf32>
    %418 = math.exp %417 : vector<2x8x64xf32>
    %419 = arith.mulf %409, %410 : vector<2x64xf32>
    %420 = vector.extract_strided_slice %419 {offsets = [0, 0], sizes = [2, 32], strides = [1, 1]} : vector<2x64xf32> to vector<2x32xf32>
    %421 = vector.shape_cast %420 : vector<2x32xf32> to vector<2x1x32xf32>
    %422 = vector.extract_strided_slice %411 {offsets = [0, 0], sizes = [2, 8], strides = [1, 1]} : vector<2x16xf32> to vector<2x8xf32>
    %423 = vector.shape_cast %422 : vector<2x8xf32> to vector<2x8x1xf32>
    %424 = vector.broadcast %421 : vector<2x1x32xf32> to vector<2x8x32xf32>
    %425 = vector.broadcast %423 : vector<2x8x1xf32> to vector<2x8x32xf32>
    %426 = arith.mulf %424, %425 : vector<2x8x32xf32>
    %427 = vector.extract_strided_slice %419 {offsets = [0, 32], sizes = [2, 32], strides = [1, 1]} : vector<2x64xf32> to vector<2x32xf32>
    %428 = vector.shape_cast %427 : vector<2x32xf32> to vector<2x1x32xf32>
    %429 = vector.extract_strided_slice %411 {offsets = [0, 8], sizes = [2, 8], strides = [1, 1]} : vector<2x16xf32> to vector<2x8xf32>
    %430 = vector.shape_cast %429 : vector<2x8xf32> to vector<2x8x1xf32>
    %431 = vector.broadcast %428 : vector<2x1x32xf32> to vector<2x8x32xf32>
    %432 = vector.broadcast %430 : vector<2x8x1xf32> to vector<2x8x32xf32>
    %433 = arith.mulf %431, %432 : vector<2x8x32xf32>
    %434 = tpu.concatenate %426, %433 in 2 : vector<2x8x32xf32>, vector<2x8x32xf32> -> vector<2x8x64xf32>
    %435 = arith.mulf %418, %396 : vector<2x8x64xf32>
    %436 = arith.addf %435, %434 : vector<2x8x64xf32>
    %437 = vector.extract_strided_slice %436 {offsets = [0, 0, 0], sizes = [2, 8, 32], strides = [1, 1, 1]} : vector<2x8x64xf32> to vector<2x8x32xf32>
    %438 = vector.extract_strided_slice %412 {offsets = [0, 0], sizes = [2, 8], strides = [1, 1]} : vector<2x16xf32> to vector<2x8xf32>
    %439 = vector.shape_cast %438 : vector<2x8xf32> to vector<2x8x1xf32>
    %440 = vector.broadcast %439 : vector<2x8x1xf32> to vector<2x8x32xf32>
    %441 = arith.mulf %437, %440 : vector<2x8x32xf32>
    %442 = vector.extract_strided_slice %436 {offsets = [0, 0, 32], sizes = [2, 8, 32], strides = [1, 1, 1]} : vector<2x8x64xf32> to vector<2x8x32xf32>
    %443 = vector.extract_strided_slice %412 {offsets = [0, 8], sizes = [2, 8], strides = [1, 1]} : vector<2x16xf32> to vector<2x8xf32>
    %444 = vector.shape_cast %443 : vector<2x8xf32> to vector<2x8x1xf32>
    %445 = vector.broadcast %444 : vector<2x8x1xf32> to vector<2x8x32xf32>
    %446 = arith.mulf %442, %445 : vector<2x8x32xf32>
    %447 = arith.addf %441, %446 : vector<2x8x32xf32>
    %cst_88 = arith.constant dense<0.000000e+00> : vector<2x32xf32>
    %448 = vector.multi_reduction <add>, %447, %cst_88 [1] : vector<2x8x32xf32> to vector<2x32xf32>
    %449 = vector.extract_strided_slice %359 {offsets = [4, 0], sizes = [2, 64], strides = [1, 1]} : vector<10x64xf32> to vector<2x64xf32>
    %450 = vector.extract_strided_slice %341 {offsets = [4, 0], sizes = [2, 64], strides = [1, 1]} : vector<10x64xf32> to vector<2x64xf32>
    %451 = vector.extract_strided_slice %360 {offsets = [4, 0], sizes = [2, 16], strides = [1, 1]} : vector<10x16xf32> to vector<2x16xf32>
    %452 = vector.extract_strided_slice %361 {offsets = [4, 0], sizes = [2, 16], strides = [1, 1]} : vector<10x16xf32> to vector<2x16xf32>
    %453 = vector.shape_cast %449 : vector<2x64xf32> to vector<2x1x64xf32>
    %454 = vector.shape_cast %367 : vector<8x64xf32> to vector<1x8x64xf32>
    %455 = vector.broadcast %453 : vector<2x1x64xf32> to vector<2x8x64xf32>
    %456 = vector.broadcast %454 : vector<1x8x64xf32> to vector<2x8x64xf32>
    %457 = arith.mulf %455, %456 : vector<2x8x64xf32>
    %458 = math.exp %457 : vector<2x8x64xf32>
    %459 = arith.mulf %449, %450 : vector<2x64xf32>
    %460 = vector.extract_strided_slice %459 {offsets = [0, 0], sizes = [2, 32], strides = [1, 1]} : vector<2x64xf32> to vector<2x32xf32>
    %461 = vector.shape_cast %460 : vector<2x32xf32> to vector<2x1x32xf32>
    %462 = vector.extract_strided_slice %451 {offsets = [0, 0], sizes = [2, 8], strides = [1, 1]} : vector<2x16xf32> to vector<2x8xf32>
    %463 = vector.shape_cast %462 : vector<2x8xf32> to vector<2x8x1xf32>
    %464 = vector.broadcast %461 : vector<2x1x32xf32> to vector<2x8x32xf32>
    %465 = vector.broadcast %463 : vector<2x8x1xf32> to vector<2x8x32xf32>
    %466 = arith.mulf %464, %465 : vector<2x8x32xf32>
    %467 = vector.extract_strided_slice %459 {offsets = [0, 32], sizes = [2, 32], strides = [1, 1]} : vector<2x64xf32> to vector<2x32xf32>
    %468 = vector.shape_cast %467 : vector<2x32xf32> to vector<2x1x32xf32>
    %469 = vector.extract_strided_slice %451 {offsets = [0, 8], sizes = [2, 8], strides = [1, 1]} : vector<2x16xf32> to vector<2x8xf32>
    %470 = vector.shape_cast %469 : vector<2x8xf32> to vector<2x8x1xf32>
    %471 = vector.broadcast %468 : vector<2x1x32xf32> to vector<2x8x32xf32>
    %472 = vector.broadcast %470 : vector<2x8x1xf32> to vector<2x8x32xf32>
    %473 = arith.mulf %471, %472 : vector<2x8x32xf32>
    %474 = tpu.concatenate %466, %473 in 2 : vector<2x8x32xf32>, vector<2x8x32xf32> -> vector<2x8x64xf32>
    %475 = arith.mulf %458, %436 : vector<2x8x64xf32>
    %476 = arith.addf %475, %474 : vector<2x8x64xf32>
    %477 = vector.extract_strided_slice %476 {offsets = [0, 0, 0], sizes = [2, 8, 32], strides = [1, 1, 1]} : vector<2x8x64xf32> to vector<2x8x32xf32>
    %478 = vector.extract_strided_slice %452 {offsets = [0, 0], sizes = [2, 8], strides = [1, 1]} : vector<2x16xf32> to vector<2x8xf32>
    %479 = vector.shape_cast %478 : vector<2x8xf32> to vector<2x8x1xf32>
    %480 = vector.broadcast %479 : vector<2x8x1xf32> to vector<2x8x32xf32>
    %481 = arith.mulf %477, %480 : vector<2x8x32xf32>
    %482 = vector.extract_strided_slice %476 {offsets = [0, 0, 32], sizes = [2, 8, 32], strides = [1, 1, 1]} : vector<2x8x64xf32> to vector<2x8x32xf32>
    %483 = vector.extract_strided_slice %452 {offsets = [0, 8], sizes = [2, 8], strides = [1, 1]} : vector<2x16xf32> to vector<2x8xf32>
    %484 = vector.shape_cast %483 : vector<2x8xf32> to vector<2x8x1xf32>
    %485 = vector.broadcast %484 : vector<2x8x1xf32> to vector<2x8x32xf32>
    %486 = arith.mulf %482, %485 : vector<2x8x32xf32>
    %487 = arith.addf %481, %486 : vector<2x8x32xf32>
    %cst_89 = arith.constant dense<0.000000e+00> : vector<2x32xf32>
    %488 = vector.multi_reduction <add>, %487, %cst_89 [1] : vector<2x8x32xf32> to vector<2x32xf32>
    %489 = vector.extract_strided_slice %359 {offsets = [6, 0], sizes = [2, 64], strides = [1, 1]} : vector<10x64xf32> to vector<2x64xf32>
    %490 = vector.extract_strided_slice %341 {offsets = [6, 0], sizes = [2, 64], strides = [1, 1]} : vector<10x64xf32> to vector<2x64xf32>
    %491 = vector.extract_strided_slice %360 {offsets = [6, 0], sizes = [2, 16], strides = [1, 1]} : vector<10x16xf32> to vector<2x16xf32>
    %492 = vector.extract_strided_slice %361 {offsets = [6, 0], sizes = [2, 16], strides = [1, 1]} : vector<10x16xf32> to vector<2x16xf32>
    %493 = vector.shape_cast %489 : vector<2x64xf32> to vector<2x1x64xf32>
    %494 = vector.shape_cast %367 : vector<8x64xf32> to vector<1x8x64xf32>
    %495 = vector.broadcast %493 : vector<2x1x64xf32> to vector<2x8x64xf32>
    %496 = vector.broadcast %494 : vector<1x8x64xf32> to vector<2x8x64xf32>
    %497 = arith.mulf %495, %496 : vector<2x8x64xf32>
    %498 = math.exp %497 : vector<2x8x64xf32>
    %499 = arith.mulf %489, %490 : vector<2x64xf32>
    %500 = vector.extract_strided_slice %499 {offsets = [0, 0], sizes = [2, 32], strides = [1, 1]} : vector<2x64xf32> to vector<2x32xf32>
    %501 = vector.shape_cast %500 : vector<2x32xf32> to vector<2x1x32xf32>
    %502 = vector.extract_strided_slice %491 {offsets = [0, 0], sizes = [2, 8], strides = [1, 1]} : vector<2x16xf32> to vector<2x8xf32>
    %503 = vector.shape_cast %502 : vector<2x8xf32> to vector<2x8x1xf32>
    %504 = vector.broadcast %501 : vector<2x1x32xf32> to vector<2x8x32xf32>
    %505 = vector.broadcast %503 : vector<2x8x1xf32> to vector<2x8x32xf32>
    %506 = arith.mulf %504, %505 : vector<2x8x32xf32>
    %507 = vector.extract_strided_slice %499 {offsets = [0, 32], sizes = [2, 32], strides = [1, 1]} : vector<2x64xf32> to vector<2x32xf32>
    %508 = vector.shape_cast %507 : vector<2x32xf32> to vector<2x1x32xf32>
    %509 = vector.extract_strided_slice %491 {offsets = [0, 8], sizes = [2, 8], strides = [1, 1]} : vector<2x16xf32> to vector<2x8xf32>
    %510 = vector.shape_cast %509 : vector<2x8xf32> to vector<2x8x1xf32>
    %511 = vector.broadcast %508 : vector<2x1x32xf32> to vector<2x8x32xf32>
    %512 = vector.broadcast %510 : vector<2x8x1xf32> to vector<2x8x32xf32>
    %513 = arith.mulf %511, %512 : vector<2x8x32xf32>
    %514 = tpu.concatenate %506, %513 in 2 : vector<2x8x32xf32>, vector<2x8x32xf32> -> vector<2x8x64xf32>
    %515 = arith.mulf %498, %476 : vector<2x8x64xf32>
    %516 = arith.addf %515, %514 : vector<2x8x64xf32>
    %517 = vector.extract_strided_slice %516 {offsets = [0, 0, 0], sizes = [2, 8, 32], strides = [1, 1, 1]} : vector<2x8x64xf32> to vector<2x8x32xf32>
    %518 = vector.extract_strided_slice %492 {offsets = [0, 0], sizes = [2, 8], strides = [1, 1]} : vector<2x16xf32> to vector<2x8xf32>
    %519 = vector.shape_cast %518 : vector<2x8xf32> to vector<2x8x1xf32>
    %520 = vector.broadcast %519 : vector<2x8x1xf32> to vector<2x8x32xf32>
    %521 = arith.mulf %517, %520 : vector<2x8x32xf32>
    %522 = vector.extract_strided_slice %516 {offsets = [0, 0, 32], sizes = [2, 8, 32], strides = [1, 1, 1]} : vector<2x8x64xf32> to vector<2x8x32xf32>
    %523 = vector.extract_strided_slice %492 {offsets = [0, 8], sizes = [2, 8], strides = [1, 1]} : vector<2x16xf32> to vector<2x8xf32>
    %524 = vector.shape_cast %523 : vector<2x8xf32> to vector<2x8x1xf32>
    %525 = vector.broadcast %524 : vector<2x8x1xf32> to vector<2x8x32xf32>
    %526 = arith.mulf %522, %525 : vector<2x8x32xf32>
    %527 = arith.addf %521, %526 : vector<2x8x32xf32>
    %cst_90 = arith.constant dense<0.000000e+00> : vector<2x32xf32>
    %528 = vector.multi_reduction <add>, %527, %cst_90 [1] : vector<2x8x32xf32> to vector<2x32xf32>
    %529 = vector.extract_strided_slice %359 {offsets = [8, 0], sizes = [2, 64], strides = [1, 1]} : vector<10x64xf32> to vector<2x64xf32>
    %530 = vector.extract_strided_slice %341 {offsets = [8, 0], sizes = [2, 64], strides = [1, 1]} : vector<10x64xf32> to vector<2x64xf32>
    %531 = vector.extract_strided_slice %360 {offsets = [8, 0], sizes = [2, 16], strides = [1, 1]} : vector<10x16xf32> to vector<2x16xf32>
    %532 = vector.extract_strided_slice %361 {offsets = [8, 0], sizes = [2, 16], strides = [1, 1]} : vector<10x16xf32> to vector<2x16xf32>
    %533 = vector.shape_cast %529 : vector<2x64xf32> to vector<2x1x64xf32>
    %534 = vector.shape_cast %367 : vector<8x64xf32> to vector<1x8x64xf32>
    %535 = vector.broadcast %533 : vector<2x1x64xf32> to vector<2x8x64xf32>
    %536 = vector.broadcast %534 : vector<1x8x64xf32> to vector<2x8x64xf32>
    %537 = arith.mulf %535, %536 : vector<2x8x64xf32>
    %538 = math.exp %537 : vector<2x8x64xf32>
    %539 = arith.mulf %529, %530 : vector<2x64xf32>
    %540 = vector.extract_strided_slice %539 {offsets = [0, 0], sizes = [2, 32], strides = [1, 1]} : vector<2x64xf32> to vector<2x32xf32>
    %541 = vector.shape_cast %540 : vector<2x32xf32> to vector<2x1x32xf32>
    %542 = vector.extract_strided_slice %531 {offsets = [0, 0], sizes = [2, 8], strides = [1, 1]} : vector<2x16xf32> to vector<2x8xf32>
    %543 = vector.shape_cast %542 : vector<2x8xf32> to vector<2x8x1xf32>
    %544 = vector.broadcast %541 : vector<2x1x32xf32> to vector<2x8x32xf32>
    %545 = vector.broadcast %543 : vector<2x8x1xf32> to vector<2x8x32xf32>
    %546 = arith.mulf %544, %545 : vector<2x8x32xf32>
    %547 = vector.extract_strided_slice %539 {offsets = [0, 32], sizes = [2, 32], strides = [1, 1]} : vector<2x64xf32> to vector<2x32xf32>
    %548 = vector.shape_cast %547 : vector<2x32xf32> to vector<2x1x32xf32>
    %549 = vector.extract_strided_slice %531 {offsets = [0, 8], sizes = [2, 8], strides = [1, 1]} : vector<2x16xf32> to vector<2x8xf32>
    %550 = vector.shape_cast %549 : vector<2x8xf32> to vector<2x8x1xf32>
    %551 = vector.broadcast %548 : vector<2x1x32xf32> to vector<2x8x32xf32>
    %552 = vector.broadcast %550 : vector<2x8x1xf32> to vector<2x8x32xf32>
    %553 = arith.mulf %551, %552 : vector<2x8x32xf32>
    %554 = tpu.concatenate %546, %553 in 2 : vector<2x8x32xf32>, vector<2x8x32xf32> -> vector<2x8x64xf32>
    %555 = arith.mulf %538, %516 : vector<2x8x64xf32>
    %556 = arith.addf %555, %554 : vector<2x8x64xf32>
    %557 = vector.extract_strided_slice %556 {offsets = [0, 0, 0], sizes = [2, 8, 32], strides = [1, 1, 1]} : vector<2x8x64xf32> to vector<2x8x32xf32>
    %558 = vector.extract_strided_slice %532 {offsets = [0, 0], sizes = [2, 8], strides = [1, 1]} : vector<2x16xf32> to vector<2x8xf32>
    %559 = vector.shape_cast %558 : vector<2x8xf32> to vector<2x8x1xf32>
    %560 = vector.broadcast %559 : vector<2x8x1xf32> to vector<2x8x32xf32>
    %561 = arith.mulf %557, %560 : vector<2x8x32xf32>
    %562 = vector.extract_strided_slice %556 {offsets = [0, 0, 32], sizes = [2, 8, 32], strides = [1, 1, 1]} : vector<2x8x64xf32> to vector<2x8x32xf32>
    %563 = vector.extract_strided_slice %532 {offsets = [0, 8], sizes = [2, 8], strides = [1, 1]} : vector<2x16xf32> to vector<2x8xf32>
    %564 = vector.shape_cast %563 : vector<2x8xf32> to vector<2x8x1xf32>
    %565 = vector.broadcast %564 : vector<2x8x1xf32> to vector<2x8x32xf32>
    %566 = arith.mulf %562, %565 : vector<2x8x32xf32>
    %567 = arith.addf %561, %566 : vector<2x8x32xf32>
    %cst_91 = arith.constant dense<0.000000e+00> : vector<2x32xf32>
    %568 = vector.multi_reduction <add>, %567, %cst_91 [1] : vector<2x8x32xf32> to vector<2x32xf32>
    %569 = tpu.concatenate %408, %448, %488, %528, %568 in 0 : vector<2x32xf32>, vector<2x32xf32>, vector<2x32xf32>, vector<2x32xf32>, vector<2x32xf32> -> vector<10x32xf32>
    %570 = vector.extract_strided_slice %341 {offsets = [0, 0], sizes = [10, 32], strides = [1, 1]} : vector<10x64xf32> to vector<10x32xf32>
    %571 = vector.extract_strided_slice %341 {offsets = [0, 32], sizes = [10, 32], strides = [1, 1]} : vector<10x64xf32> to vector<10x32xf32>
    %572 = arith.addf %570, %571 : vector<10x32xf32>
    %cst_92 = arith.constant 0.000000e+00 : f32
    %573 = vector.broadcast %cst_92 : f32 to vector<10x32xf32>
    %574 = arith.subf %573, %330 : vector<10x32xf32>
    %575 = math.exp %574 : vector<10x32xf32>
    %cst_93 = arith.constant 1.000000e+00 : f32
    %576 = vector.broadcast %cst_93 : f32 to vector<10x32xf32>
    %577 = arith.addf %576, %575 : vector<10x32xf32>
    %cst_94 = arith.constant 1.000000e+00 : f32
    %578 = vector.broadcast %cst_94 : f32 to vector<10x32xf32>
    %579 = arith.divf %578, %577 : vector<10x32xf32>
    %580 = arith.mulf %330, %579 : vector<10x32xf32>
    %c1_95 = arith.constant 1 : index
    %c0_96 = arith.constant 0 : index
    %c0_97 = arith.constant 0 : index
    %581 = vector.load %arg11[%c1_95, %c0_96, %c0_97] : memref<2x1x32xf32, #tpu.memory_space<vmem>>, vector<1x1x32xf32>
    %582 = vector.shape_cast %581 : vector<1x1x32xf32> to vector<1x32xf32>
    %583 = vector.broadcast %582 : vector<1x32xf32> to vector<10x32xf32>
    %584 = arith.mulf %583, %572 : vector<10x32xf32>
    %585 = arith.addf %569, %584 : vector<10x32xf32>
    %586 = arith.mulf %580, %585 : vector<10x32xf32>
    %587 = arith.addf %586, %296 : vector<10x32xf32>
    %588 = vector.extract_strided_slice %587 {offsets = [0, 0], sizes = [2, 32], strides = [1, 1]} : vector<10x32xf32> to vector<2x32xf32>
    %589 = vector.extract_strided_slice %587 {offsets = [2, 0], sizes = [2, 32], strides = [1, 1]} : vector<10x32xf32> to vector<2x32xf32>
    %590 = arith.addf %588, %589 : vector<2x32xf32>
    %591 = vector.extract_strided_slice %587 {offsets = [4, 0], sizes = [2, 32], strides = [1, 1]} : vector<10x32xf32> to vector<2x32xf32>
    %592 = arith.addf %590, %591 : vector<2x32xf32>
    %593 = vector.extract_strided_slice %587 {offsets = [6, 0], sizes = [2, 32], strides = [1, 1]} : vector<10x32xf32> to vector<2x32xf32>
    %594 = arith.addf %592, %593 : vector<2x32xf32>
    %595 = vector.extract_strided_slice %587 {offsets = [8, 0], sizes = [2, 32], strides = [1, 1]} : vector<10x32xf32> to vector<2x32xf32>
    %596 = arith.addf %594, %595 : vector<2x32xf32>
    %cst_98 = arith.constant 2.000000e-01 : f32
    %597 = vector.broadcast %cst_98 : f32 to vector<2x32xf32>
    %598 = arith.mulf %596, %597 : vector<2x32xf32>
    %cst_99 = arith.constant dense<0.000000e+00> : vector<2xf32>
    %599 = vector.multi_reduction <add>, %598, %cst_99 [1] : vector<2x32xf32> to vector<2xf32>
    %600 = vector.shape_cast %599 : vector<2xf32> to vector<2x1xf32>
    %cst_100 = arith.constant 3.200000e+01 : f32
    %601 = vector.broadcast %cst_100 : f32 to vector<2x1xf32>
    %602 = arith.divf %600, %601 : vector<2x1xf32>
    %603 = vector.broadcast %602 : vector<2x1xf32> to vector<2x32xf32>
    %604 = arith.subf %598, %603 : vector<2x32xf32>
    %605 = arith.mulf %604, %604 : vector<2x32xf32>
    %cst_101 = arith.constant dense<0.000000e+00> : vector<2xf32>
    %606 = vector.multi_reduction <add>, %605, %cst_101 [1] : vector<2x32xf32> to vector<2xf32>
    %607 = vector.shape_cast %606 : vector<2xf32> to vector<2x1xf32>
    %cst_102 = arith.constant 3.200000e+01 : f32
    %608 = vector.broadcast %cst_102 : f32 to vector<2x1xf32>
    %609 = arith.divf %607, %608 : vector<2x1xf32>
    %610 = vector.broadcast %602 : vector<2x1xf32> to vector<2x32xf32>
    %611 = arith.subf %598, %610 : vector<2x32xf32>
    %cst_103 = arith.constant 9.99999974E-6 : f32
    %612 = vector.broadcast %cst_103 : f32 to vector<2x1xf32>
    %613 = arith.addf %609, %612 : vector<2x1xf32>
    %614 = math.rsqrt %613 : vector<2x1xf32>
    %615 = vector.broadcast %614 : vector<2x1xf32> to vector<2x32xf32>
    %616 = arith.mulf %611, %615 : vector<2x32xf32>
    %c0_104 = arith.constant 0 : index
    %c0_105 = arith.constant 0 : index
    %617 = vector.load %arg12[%c0_104, %c0_105] : memref<1x32xf32, #tpu.memory_space<vmem>>, vector<1x32xf32>
    %618 = vector.broadcast %617 : vector<1x32xf32> to vector<2x32xf32>
    %619 = arith.mulf %616, %618 : vector<2x32xf32>
    %c0_106 = arith.constant 0 : index
    %c0_107 = arith.constant 0 : index
    %620 = vector.load %arg13[%c0_106, %c0_107] : memref<1x32xf32, #tpu.memory_space<vmem>>, vector<1x32xf32>
    %621 = vector.broadcast %620 : vector<1x32xf32> to vector<2x32xf32>
    %622 = arith.addf %619, %621 : vector<2x32xf32>
    %c0_108 = arith.constant 0 : index
    %c0_109 = arith.constant 0 : index
    %623 = vector.load %arg14[%c0_108, %c0_109] : memref<32x4xf32, #tpu.memory_space<vmem>>, vector<32x4xf32>
    %cst_110 = arith.constant dense<0.000000e+00> : vector<2x4xf32>
    %624 = tpu.matmul %622, %623, %cst_110 {dimension_numbers = #tpu.dot_dimension_numbers<[1], [0], [0], [1], [0, 0, 1, 1], [], []>} : vector<2x32xf32>, vector<32x4xf32>, vector<2x4xf32> -> vector<2x4xf32>
    %c0_111 = arith.constant 0 : index
    %c0_112 = arith.constant 0 : index
    %625 = vector.load %arg15[%c0_111, %c0_112] : memref<1x4xf32, #tpu.memory_space<vmem>>, vector<1x4xf32>
    %626 = vector.broadcast %625 : vector<1x4xf32> to vector<2x4xf32>
    %627 = arith.addf %624, %626 : vector<2x4xf32>
    %c0_113 = arith.constant 0 : index
    %c0_114 = arith.constant 0 : index
    %628 = vector.load %arg16[%c0_113, %c0_114] : memref<2x4xf32, #tpu.memory_space<vmem>>, vector<2x4xf32>
    tpu.vector_store %arg16[%c0_113, %c0_114], %627 {strides = array<i32>} : memref<2x4xf32, #tpu.memory_space<vmem>>, vector<2x4xf32>,
    return
  }
  func.func @transform_0(%arg0: i32) -> (i32, i32) {
    %c0_i32 = arith.constant 0 : i32
    %c0_i32_0 = arith.constant 0 : i32
    %c0_i32_1 = arith.constant 0 : i32
    return %c0_i32, %c0_i32_0 : i32, i32
  }
  func.func @transform_1(%arg0: i32) -> (i32, i32) {
    %c0_i32 = arith.constant 0 : i32
    %c0_i32_0 = arith.constant 0 : i32
    %c0_i32_1 = arith.constant 0 : i32
    return %c0_i32, %c0_i32_0 : i32, i32
  }
  func.func @transform_2(%arg0: i32) -> (i32, i32) {
    %c0_i32 = arith.constant 0 : i32
    %c0_i32_0 = arith.constant 0 : i32
    %c0_i32_1 = arith.constant 0 : i32
    return %c0_i32, %c0_i32_0 : i32, i32
  }
  func.func @transform_3(%arg0: i32) -> (i32, i32, i32) {
    %c0_i32 = arith.constant 0 : i32
    %c0_i32_0 = arith.constant 0 : i32
    %c0_i32_1 = arith.constant 0 : i32
    %c0_i32_2 = arith.constant 0 : i32
    return %c0_i32, %c0_i32_0, %c0_i32_1 : i32, i32, i32
  }
  func.func @transform_4(%arg0: i32) -> (i32, i32, i32) {
    %c0_i32 = arith.constant 0 : i32
    %c0_i32_0 = arith.constant 0 : i32
    %c0_i32_1 = arith.constant 0 : i32
    %c0_i32_2 = arith.constant 0 : i32
    return %c0_i32, %c0_i32_0, %c0_i32_1 : i32, i32, i32
  }
  func.func @transform_5(%arg0: i32) -> (i32, i32, i32) {
    %c0_i32 = arith.constant 0 : i32
    %c0_i32_0 = arith.constant 0 : i32
    %c0_i32_1 = arith.constant 0 : i32
    %c0_i32_2 = arith.constant 0 : i32
    return %c0_i32, %c0_i32_0, %c0_i32_1 : i32, i32, i32
  }
  func.func @transform_6(%arg0: i32) -> (i32, i32, i32) {
    %c0_i32 = arith.constant 0 : i32
    %c0_i32_0 = arith.constant 0 : i32
    %c0_i32_1 = arith.constant 0 : i32
    %c0_i32_2 = arith.constant 0 : i32
    return %c0_i32, %c0_i32_0, %c0_i32_1 : i32, i32, i32
  }
  func.func @transform_7(%arg0: i32) -> (i32, i32, i32) {
    %c0_i32 = arith.constant 0 : i32
    %c0_i32_0 = arith.constant 0 : i32
    %c0_i32_1 = arith.constant 0 : i32
    %c0_i32_2 = arith.constant 0 : i32
    return %c0_i32, %c0_i32_0, %c0_i32_1 : i32, i32, i32
  }
  func.func @transform_8(%arg0: i32) -> (i32, i32, i32) {
    %c0_i32 = arith.constant 0 : i32
    %c0_i32_0 = arith.constant 0 : i32
    %c0_i32_1 = arith.constant 0 : i32
    %c0_i32_2 = arith.constant 0 : i32
    return %c0_i32, %c0_i32_0, %c0_i32_1 : i32, i32, i32
  }
  func.func @transform_9(%arg0: i32) -> (i32, i32, i32) {
    %c0_i32 = arith.constant 0 : i32
    %c0_i32_0 = arith.constant 0 : i32
    %c0_i32_1 = arith.constant 0 : i32
    %c0_i32_2 = arith.constant 0 : i32
    return %c0_i32, %c0_i32_0, %c0_i32_1 : i32, i32, i32
  }
  func.func @transform_10(%arg0: i32) -> (i32, i32, i32) {
    %c0_i32 = arith.constant 0 : i32
    %c0_i32_0 = arith.constant 0 : i32
    %c0_i32_1 = arith.constant 0 : i32
    %c0_i32_2 = arith.constant 0 : i32
    return %c0_i32, %c0_i32_0, %c0_i32_1 : i32, i32, i32
  }
  func.func @transform_11(%arg0: i32) -> (i32, i32) {
    %c0_i32 = arith.constant 0 : i32
    %c0_i32_0 = arith.constant 0 : i32
    %c0_i32_1 = arith.constant 0 : i32
    return %c0_i32, %c0_i32_0 : i32, i32
  }
  func.func @transform_12(%arg0: i32) -> (i32, i32) {
    %c0_i32 = arith.constant 0 : i32
    %c0_i32_0 = arith.constant 0 : i32
    %c0_i32_1 = arith.constant 0 : i32
    return %c0_i32, %c0_i32_0 : i32, i32
  }
  func.func @transform_13(%arg0: i32) -> (i32, i32) {
    %c0_i32 = arith.constant 0 : i32
    %c0_i32_0 = arith.constant 0 : i32
    %c0_i32_1 = arith.constant 0 : i32
    return %c0_i32, %c0_i32_0 : i32, i32
  }
  func.func @transform_14(%arg0: i32) -> (i32, i32) {
    %c0_i32 = arith.constant 0 : i32
    %c0_i32_0 = arith.constant 0 : i32
    %c0_i32_1 = arith.constant 0 : i32
    return %c0_i32, %c0_i32_0 : i32, i32
  }
  func.func @transform_15(%arg0: i32) -> (i32, i32) {
    %c0_i32 = arith.constant 0 : i32
    %c0_i32_0 = arith.constant 0 : i32
    %c0_i32_1 = arith.constant 0 : i32
    return %c0_i32, %c0_i32_0 : i32, i32
  }
}

</mosaic_0001>

<bundles_post_ra>
// kernel: sub.1
= control target key start
LH: loop header
LB: loop body
LE: loop exit
PB: predicated region body
PF: predicated region fallthrough
CT: control target
= control target key end

     0   :  { %s34_s0 = inlined_call_operand.vmem [shape: f32[1,32], index: 0, kind: input, shape index: {}]   ;;  %s35_s1 = inlined_call_operand.vmem [shape: f32[1,32], index: 1, kind: input, shape index: {}]   ;;  %s36_s2 = inlined_call_operand.vmem [shape: f32[1,32], index: 2, kind: output, shape index: {}]  }
   0x1   :  { %v3_v0 = vld [vmem:[%s34_s0] sm:$0x1] }
   0x2   :  { %v4_v1 = vld [vmem:[%s35_s1] sm:$0x1] }
   0x3   :  { %v7_v2 = vsub.f32 %v3_v0, %v4_v1 }
   0x5   :  { %9 = vst [vmem:[%s36_s2] sm:$0x1] %v7_v2 }

// kernel: vim_forward.1
= control target key start
LH: loop header
LB: loop body
LE: loop exit
PB: predicated region body
PF: predicated region fallthrough
CT: control target
= control target key end

     0   :  { %v2641_v1 = vmov 0.0   ;;  %vm87_vm0 = vcmask 531456   ;;  %s3497_s0 = inlined_call_operand.vmem [shape: f32[10,193], index: 0, kind: input, shape index: {}]   ;;  %s3498_s1 = inlined_call_operand.vmem [shape: f32[193,32], index: 1, kind: input, shape index: {}]   ;;  %s3499_s2 = inlined_call_operand.vmem [shape: f32[1,32], index: 2, kind: input, shape index: {}]   ;;  %s3500_s3 = inlined_call_operand.vmem [shape: f32[2,1,32], index: 3, kind: input, shape index: {}]   ;;  %s3501_s4 = inlined_call_operand.vmem [shape: f32[2,1,32], index: 4, kind: input, shape index: {}]   ;;  %s3502_s5 = inlined_call_operand.vmem [shape: f32[2,32,96], index: 5, kind: input, shape index: {}]   ;;  %s3503_s6 = inlined_call_operand.vmem [shape: f32[2,1,96], index: 6, kind: input, shape index: {}]   ;;  %s3504_s7 = inlined_call_operand.vmem [shape: f32[2,64,96], index: 7, kind: input, shape index: {}]   ;;  %s3505_s8 = inlined_call_operand.vmem [shape: f32[2,1,96], index: 8, kind: input, shape index: {}]   ;;  %s3506_s9 = inlined_call_operand.vmem [shape: f32[2,8,32], index: 9, kind: input, shape index: {}]   ;;  %s3507_s10 = inlined_call_operand.vmem [shape: f32[2,1,32], index: 10, kind: input, shape index: {}]   ;;  %s3508_s11 = inlined_call_operand.vmem [shape: f32[1,32], index: 11, kind: input, shape index: {}]   ;;  %s3509_s12 = inlined_call_operand.vmem [shape: f32[1,32], index: 12, kind: input, shape index: {}]   ;;  %s3510_s13 = inlined_call_operand.vmem [shape: f32[32,4], index: 13, kind: input, shape index: {}]   ;;  %s3511_s14 = inlined_call_operand.vmem [shape: f32[1,4], index: 14, kind: input, shape index: {}]   ;;  %s3512_s15 = inlined_call_operand.hbm [shape: f32[2,4], index: 15, kind: output, shape index: {}]  }
   0x1   :  { %v70_v0 = vld [vmem:[%s3498_s1 + $0x78] sm:$0xff]  ;;  %98 = vmatprep.subr.mxu0 %v2641_v1  ;;  %v69_v2 = vld [vmem:[%s3498_s1 + $0x70] sm:$0xff]  ;;  %v68_v3 = vld [vmem:[%s3498_s1 + $0x68] sm:$0xff] }
   0x2   :  { %99 = vmatpush1.msra.mxu0 %v70_v0  ;;  %v67_v4 = vld [vmem:[%s3498_s1 + $0x60] sm:$0xff]  ;;  %v66_v5 = vld [vmem:[%s3498_s1 + $0x58] sm:$0xff]  ;;  %v52_v6 = vld [vmem:[%s3497_s0 + $0x8] sm:$0xff] }
   0x3   :  { %100 = vmatprep.subr.mxu0 %v2641_v1  ;;  %v65_v7 = vld [vmem:[%s3498_s1 + $0x50] sm:$0xff]  ;;  %2361 = vmatprep.mubr.msk.f32.mxu0 %vm87_vm0, %v52_v6 }
   0x4   :  { %101 = vmatpush1.msra.mxu0 %v69_v2 }
   0x5   :  { %102 = vmatprep.subr.mxu0 %v2641_v1 }
   0x6   :  { %103 = vmatpush1.msra.mxu0 %v68_v3 }
   0x7   :  { %104 = vmatprep.subr.mxu0 %v2641_v1 }
   0x8   :  { %105 = vmatpush1.msra.mxu0 %v67_v4 }
   0x9   :  { %106 = vmatprep.subr.mxu0 %v2641_v1 }
   0xa   :  { %107 = vmatpush1.msra.mxu0 %v66_v5 }
   0xb   :  { %20 = vsyncpa [#allocation3], 0  ;;  %108 = vmatprep.subr.mxu0 %v2641_v1  ;;  %v64_v8 = vld [vmem:[%s3498_s1 + $0x48] sm:$0xff]  ;;  %v63_v9 = vld [vmem:[%s3498_s1 + $0x40] sm:$0xff]  ;;  %vm94_vm1 = vcmask 1040384   ;;  %vm173_vm2 = vcmask 261120  }
   0xc   :  { %109 = vmatpush1.msra.mxu0 %v65_v7  ;;  %v62_v10 = vld [vmem:[%s3498_s1 + $0x38] sm:$0xff]  ;;  %v61_v11 = vld [vmem:[%s3498_s1 + $0x30] sm:$0xff]  ;;  %v60_v12 = vld [vmem:[%s3498_s1 + $0x28] sm:$0xff]  ;;  %vm177_vm3 = vcmask 254976   ;;  %s2642_s29 = smov 96   ;;  %s2643_s30 = smov 32  }
   0xd   :  { %110 = vmatprep.subr.mxu0 %v2641_v1  ;;  %v59_v13 = vld [vmem:[%s3498_s1 + $0x20] sm:$0xff]  ;;  %v58_v14 = vld [vmem:[%s3498_s1 + $0x18] sm:$0xff]  ;;  %v57_v15 = vld [vmem:[%s3498_s1 + $0x10] sm:$0xff]  ;;  %vm351_vm4 = vcmask 523264   ;;  %vm1130_vm5 = vcmask 1041409   ;;  %vm1135_vm6 = vcmask 1043459  }
   0xe   :  { %111 = vmatpush1.msra.mxu0 %v64_v8  ;;  %v56_v16 = vld [vmem:[%s3498_s1 + $0x8] sm:$0xff]  ;;  %v55_v17 = vld [vmem:[%s3498_s1] sm:$0xff]  ;;  %v78_v19 = vld [vmem:[%s3498_s1 + $0xb8] sm:$0xff]  ;;  %vm1152_vm7 = vcmask 1041408   ;;  %vm1140_vm8 = vcmask 1045509   ;;  %vm1154_vm9 = vcmask 1043456  }
   0xf   :  { %112 = vmatprep.subr.mxu0 %v2641_v1  ;;  %v79_v18 = vld [vmem:[%s3498_s1 + $0xc0] sm:$0x1]  ;;  %v77_v20 = vld [vmem:[%s3498_s1 + $0xb0] sm:$0xff]  ;;  %v76_v21 = vld [vmem:[%s3498_s1 + $0xa8] sm:$0xff]  ;;  %vm1145_vm10 = vcmask 1047559   ;;  %vm1156_vm11 = vcmask 1045504  }
  0x10   :  { %113 = vmatpush1.msra.mxu0 %v63_v9  ;;  %v75_v22 = vld [vmem:[%s3498_s1 + $0xa0] sm:$0xff]  ;;  %v74_v23 = vld [vmem:[%s3498_s1 + $0x98] sm:$0xff]  ;;  %v73_v24 = vld [vmem:[%s3498_s1 + $0x90] sm:$0xff]  ;;  %vm2645_vm12 = vmmov 0   ;;  %s2646_s21 = smov [#allocation2]   ;;  %vm2343_vm13 = vcmask 25600  }
  0x11   :  { %114 = vmatprep.subr.mxu0 %v2641_v1  ;;  %v72_v25 = vld [vmem:[%s3498_s1 + $0x88] sm:$0xff]  ;;  %v71_v26 = vld [vmem:[%s3498_s1 + $0x80] sm:$0xff]  ;;  %v54_v28 = vld [vmem:[%s3497_s0 + $0x18] sm:$0x3]  ;;  %s2351_s22 = sshll.u32 %s2646_s21, 4  ;;  %s2352_s22 = int_to_ptr.vmem [resolvable:$true] %s2351_s22 }
  0x12   :  { %115 = vmatpush1.msra.mxu0 %v62_v10  ;;  %v51_v27 = vld [vmem:[%s3497_s0] sm:$0xff]  ;;  %v53_v29 = vld [vmem:[%s3497_s0 + $0x10] sm:$0x3]  ;;  %v223_v49 = vld [vmem:[%s3502_s5 + $0x18] sm:$0xff]  ;;  %p2624_p1 = scmp.lt.s32.totalorder %s2352_s22, %s2352_s22 }
  0x13   :  { %116 = vmatprep.subr.mxu0 %v2641_v1  ;;  %v2359_v30 = vld [vmem:[%s3499_s2] ss:$0 sm:$0xff]  ;;  %v222_v50 = vld [vmem:[%s3502_s5 + $0x10] sm:$0xff]  ;;  %2440 = vmatprep.subr.mxu1 %v223_v49  ;;  %v221_v51 = vld [vmem:[%s3502_s5 + $0x8] sm:$0xff] }
  0x14   :  { %117 = vmatpush1.msra.mxu0 %v61_v11  ;;  %2441 = vmatpush3.msra.mxu1 %v223_v49  ;;  %v220_v52 = vld [vmem:[%s3502_s5] sm:$0xff]  ;;  %v337_v6 = vld [vmem:[%s3504_s7 + $0x38] sm:$0xff]  ;;  %v336_v7 = vld [vmem:[%s3504_s7 + $0x30] sm:$0xff] }
  0x15   :  { %118 = vmatprep.subr.mxu0 %v2641_v1  ;;  %2442 = vmatprep.subr.mxu1 %v222_v50  ;;  %v2363_v60 = vld [vmem:[%s3500_s3] ss:$0 sm:$0xff]  ;;  %v335_v8 = vld [vmem:[%s3504_s7 + $0x28] sm:$0xff]  ;;  %v333_v10 = vld [vmem:[%s3504_s7 + $0x18] sm:$0xff] }
  0x16   :  { %119 = vmatpush1.msra.mxu0 %v60_v12  ;;  %2443 = vmatpush3.msra.mxu1 %v222_v50  ;;  %v2364_v62 = vld [vmem:[%s3501_s4] ss:$0 sm:$0xff]  ;;  %v332_v11 = vld [vmem:[%s3504_s7 + $0x10] sm:$0xff]  ;;  %v331_v12 = vld [vmem:[%s3504_s7 + $0x8] sm:$0xff] }
  0x17   :  { %120 = vmatprep.subr.mxu0 %v2641_v1  ;;  %2444 = vmatprep.subr.mxu1 %v221_v51  ;;  %v334_v9 = vld [vmem:[%s3504_s7 + $0x20] sm:$0xff] }
  0x18   :  { %121 = vmatpush1.msra.mxu0 %v59_v13  ;;  %2445 = vmatpush3.msra.mxu1 %v221_v51  ;;  %v2365_v13 = vld [vmem:[%s3503_s6] ss:$0 sm:$0xff] }
  0x19   :  { %122 = vmatprep.subr.mxu0 %v2641_v1  ;;  %2446 = vmatprep.subr.mxu1 %v220_v52 }
  0x1a   :  { %123 = vmatpush1.msra.mxu0 %v58_v14  ;;  %2447 = vmatpush3.msra.mxu1 %v220_v52 }
  0x1b   :  { %124 = vmatprep.subr.mxu0 %v2641_v1  ;;  %2451 = vmatprep.subr.mxu1 %v337_v6 }
  0x1c   :  { %125 = vmatpush1.msra.mxu0 %v57_v15 }
  0x1d   :  { %126 = vmatprep.subr.mxu0 %v2641_v1 }
  0x1e   :  { %127 = vmatpush1.msra.mxu0 %v56_v16 }
  0x1f   :  { %128 = vmatprep.subr.mxu0 %v2641_v1 }
  0x20   :  { %129 = vmatpush1.msra.mxu0 %v55_v17 }
  0x21   :  { %144 = vmatprep.subr.mxu0 %v2641_v1 }
  0x22   :  { %2360 = vmatpush2.msk.msra.mxu0 %vm94_vm1, %v79_v18 }
  0x23   :  { %146 = vmatprep.subr.mxu0 %v2641_v1 }
  0x24   :  { %147 = vmatpush2.msra.mxu0 %v78_v19 }
  0x25   :  { %148 = vmatprep.subr.mxu0 %v2641_v1 }
  0x26   :  { %149 = vmatpush2.msra.mxu0 %v77_v20 }
  0x27   :  { %150 = vmatprep.subr.mxu0 %v2641_v1 }
  0x28   :  { %151 = vmatpush2.msra.mxu0 %v76_v21 }
  0x29   :  { %152 = vmatprep.subr.mxu0 %v2641_v1 }
  0x2a   :  { %153 = vmatpush2.msra.mxu0 %v75_v22 }
  0x2b   :  { %154 = vmatprep.subr.mxu0 %v2641_v1 }
  0x2c   :  { %155 = vmatpush2.msra.mxu0 %v74_v23 }
  0x2d   :  { %156 = vmatprep.subr.mxu0 %v2641_v1 }
  0x2e   :  { %157 = vmatpush2.msra.mxu0 %v73_v24 }
  0x2f   :  { %158 = vmatprep.subr.mxu0 %v2641_v1 }
  0x30   :  { %159 = vmatpush2.msra.mxu0 %v72_v25 }
  0x31   :  { %160 = vmatprep.subr.mxu0 %v2641_v1 }
  0x32   :  { %161 = vmatpush2.msra.mxu0 %v71_v26 }
  0x33   :  { %163 = vmatmul.mubr.f32.vlgmr.msra.gmra.mxu0 %v51_v27 }
  0x34   :  { %2362 = vmatprep.mubr.msk.f32.mxu0 %vm87_vm0, %v54_v28  ;;  %v330_v28 = vld [vmem:[%s3504_s7] sm:$0xff] }
  0x37   :  { %168 = vmatmul.mubr.f32.gmra.mxu0 %v53_v29  ;;  %v449_v29 = vld [vmem:[%s3506_s9] sm:$0xff] }
  0xf3   :  { %v164_v31 = vpop.f32.mrf.mxu0 }
  0xf4   :  { %v2844_v32 = vadd.f32 %v2359_v30, %v164_v31 }
  0xf5   :  { %v166_v33 = vpop.f32.mrf.mxu0 }
  0xf6   :  { %v174_v34 = vsel %vm173_vm2, %v2844_v32, 0.0 }
  0xf7   :  { %v169_v35 = vpop.f32.mrf.mxu0  ;;  %175 = vadd.xlane.f32.xlu0 %v174_v34 }
  0xf8   :  { %v2848_v36 = vadd.f32 %v2359_v30, %v169_v35  ;;  %v450_v30 = vmul.f32 1.442695, %v449_v29 }
  0xf9   :  { %v171_v37 = vpop.f32.mrf.mxu0 }
  0xfa   :  { %v178_v38 = vsel %vm177_vm3, %v2848_v36, 0.0 }
  0xfb   :  { %179 = vadd.xlane.f32.xlu0 %v178_v38 }
 0x180   :  { %v176_v39 = vpop.xlane.xlu0 %175 }
 0x181   :  { %v182_v40 = vmul.f32 0.03125, %v176_v39 }
 0x183   :  { %v184_v41 = vsub.f32 %v2844_v32, %v182_v40 }
 0x184   :  { %v180_v42 = vpop.xlane.xlu0 %179 }
 0x185   :  { %v183_v43 = vmul.f32 0.03125, %v180_v42  ;;  %v186_v44 = vmul.f32 %v184_v41, %v184_v41 }
 0x187   :  { %v185_v45 = vsub.f32 %v2848_v36, %v183_v43  ;;  %v188_v46 = vsel %vm173_vm2, %v186_v44, 0.0 }
 0x188   :  { %189 = vadd.xlane.f32.xlu1 %v188_v46 }
 0x189   :  { %v187_v47 = vmul.f32 %v185_v45, %v185_v45 }
 0x18b   :  { %v191_v48 = vsel %vm177_vm3, %v187_v47, 0.0  ;;  %v2368_v47 = vld [vmem:[%s3505_s8] ss:$0 sm:$0xff] }
 0x18c   :  { %192 = vadd.xlane.f32.xlu1 %v191_v48 }
 0x211   :  { %v190_v53 = vpop.xlane.xlu1 %189 }
 0x212   :  { %v194_v54 = vmul.f32 0.03125, %v190_v53 }
 0x214   :  { %v196_v55 = vadd.f32 1e-05, %v194_v54 }
 0x215   :  { %v193_v56 = vpop.xlane.xlu1 %192 }
 0x216   :  { %2517 = vrsqrt.f32 %v196_v55  ;;  %v195_v57 = vmul.f32 0.03125, %v193_v56 }
 0x218   :  { %v197_v58 = vadd.f32 1e-05, %v195_v57 }
 0x21a   :  { %2519 = vrsqrt.f32 %v197_v58 }
 0x223   :  { %v2518_v59 = vpop.eup %2517 }
 0x224   :  { %v200_v61 = vmul.f32 %v2518_v59, %v184_v41 }
 0x226   :  { %v209_v63 = vmul.f32 %v2363_v60, %v200_v61 }
 0x227   :  { %v2520_v0 = vpop.eup %2519 }
 0x228   :  { %v201_v2 = vmul.f32 %v2520_v0, %v185_v45  ;;  %v218_v3 = vadd.f32 %v2364_v62, %v209_v63  ;;  %v462_v45 = vlaneseq }
 0x22a   :  { %v210_v4 = vmul.f32 %v2363_v60, %v201_v2  ;;  %2448 = vmatprep.mubr.msk.f32.mxu1 %vm173_vm2, %v218_v3  ;;  %v2936_v46 = vshrl.u32 %v462_v45, 7 }
 0x22c   :  { %v219_v5 = vadd.f32 %v2364_v62, %v210_v4  ;;  %v2942_v48 = vsub.s32 1, %v2936_v46  ;;  %v2945_v50 = vsub.s32 0, %v2936_v46  ;;  %v640_v58 = vsub.s32 3, %v2936_v46 }
 0x22d   :  { %v632_v59 = vsub.s32 2, %v2936_v46  ;;  %v790_v62 = vsub.s32 5, %v2936_v46  ;;  %v782_v63 = vsub.s32 4, %v2936_v46  ;;  %v898_v3 = vsub.s32 7, %v2936_v46 }
 0x22e   :  { %2449 = vmatmul.mubr.msk.f32.vlgmr.msra.gmra.mxu1 %vm173_vm2, %v219_v5  ;;  %v890_v4 = vsub.s32 6, %v2936_v46 }
 0x22f   :  { %2452 = vmatpush3.msra.mxu1 %v337_v6 }
 0x230   :  { %2453 = vmatprep.subr.mxu1 %v336_v7 }
 0x231   :  { %2454 = vmatpush3.msra.mxu1 %v336_v7 }
 0x232   :  { %2455 = vmatprep.subr.mxu1 %v335_v8 }
 0x233   :  { %2456 = vmatpush3.msra.mxu1 %v335_v8 }
 0x234   :  { %2457 = vmatprep.subr.mxu1 %v334_v9 }
 0x235   :  { %2458 = vmatpush3.msra.mxu1 %v334_v9 }
 0x236   :  { %2459 = vmatprep.subr.mxu1 %v333_v10 }
 0x237   :  { %2460 = vmatpush3.msra.mxu1 %v333_v10 }
 0x238   :  { %2461 = vmatprep.subr.mxu1 %v332_v11 }
 0x239   :  { %2462 = vmatpush3.msra.mxu1 %v332_v11 }
 0x23a   :  { %2463 = vmatprep.subr.mxu1 %v331_v12 }
 0x23b   :  { %2464 = vmatpush3.msra.mxu1 %v331_v12 }
 0x23c   :  { %2465 = vmatprep.subr.mxu1 %v330_v28 }
 0x23d   :  { %2466 = vmatpush3.msra.mxu1 %v330_v28 }
 0x2ee   :  { %v2450_v14 = vpop.f32.mrf.mxu1 }
 0x2ef   :  { %v2900_v15 = vadd.f32 %v2450_v14, %v2365_v13 }
 0x2f0   :  { %v303_v16 = vpop.f32.mrf.mxu1 }
 0x2f1   :  { %v315_v17 = vand.u32 2147483647, %v2900_v15  ;;  %v2903_v18 = vadd.f32 %v2365_v13, %v303_v16  ;;  %v313_v33 = vmax.f32 %v2900_v15, 0.0 }
 0x2f3   :  { %v317_v19 = vsub.f32 0.0, %v315_v17  ;;  %v314_v20 = vand.u32 2147483647, %v2903_v18  ;;  %v312_v38 = vmax.f32 %v2903_v18, 0.0  ;;  %v2644_v17 = vmov 1966171168  }
 0x2f5   :  { %v320_v21 = vmul.f32 1.442695, %v317_v19  ;;  %v316_v22 = vsub.f32 0.0, %v314_v20  ;;  %v460_v19 = vunpack.c.l.s4 %v2644_v17 }
 0x2f7   :  { %2521 = vpow2.f32 %v320_v21  ;;  %v318_v23 = vmul.f32 1.442695, %v316_v22 }
 0x2f9   :  { %2523 = vpow2.f32 %v318_v23  ;;  %v461_v23 = vunpack.c.0.s8 %v460_v19 }
 0x304   :  { %v2522_v24 = vpop.eup %2521 }
 0x305   :  { %v323_v25 = vadd.f32 1.0, %v2522_v24 }
 0x306   :  { %v2524_v26 = vpop.eup %2523 }
 0x307   :  { %2525 = vlog2.f32 %v323_v25  ;;  %v322_v27 = vadd.f32 1.0, %v2524_v26  ;;  %v2987_v26 = vsub.s32 %v461_v23, %v2936_v46 }
 0x309   :  { %2527 = vlog2.f32 %v322_v27 }
 0x30a   :  { %2529 = vpow2.f32 %v450_v30 }
 0x314   :  { %v2526_v31 = vpop.eup %2525 }
 0x315   :  { %v327_v34 = vmul.f32 0.6931472, %v2526_v31 }
 0x316   :  { %v2528_v35 = vpop.eup %2527 }
 0x317   :  { %v2913_v37 = vadd.f32 %v327_v34, %v313_v33  ;;  %v325_v39 = vmul.f32 0.6931472, %v2528_v35  ;;  %v2922_v41 = vpop.eup %2529 }
 0x318   :  { %v452_v42 = vsub.f32 0.0, %v2922_v41 }
 0x319   :  { %349 = vrot.lane.b32.xlu1 %v2913_v37, %s2642_s29  ;;  %v2918_v40 = vadd.f32 %v325_v39, %v312_v38 }
 0x31b   :  { %347 = vrot.lane.b32.xlu0 %v2918_v40, %s2642_s29 }
 0x31d   :  { %454 = vrot.lane.b32.xlu1 %v452_v42, %s2643_s30 }
 0x38b   :  { %v2930_v44 = vpop.permute.xlu1 %349 }
 0x38d   :  { %v2928_v43 = vpop.permute.xlu0 %347 }
 0x38e   :  { %2467 = vmatprep.mubr.msk.f32.mxu1 %vm351_vm4, %v2928_v43 }
 0x38f   :  { %2468 = vmatmul.mubr.msk.f32.vlgmr.msra.gmra.mxu1 %vm351_vm4, %v2930_v44  ;;  %v455_v34 = vpop.permute.xlu1 %454 }
 0x44f   :  { %v2469_v49 = vpop.f32.mrf.mxu1 }
 0x450   :  { %v2947_v51 = vadd.f32 %v2469_v49, %v2368_v47 }
 0x451   :  { %v422_v53 = vpop.f32.mrf.mxu1 }
 0x452   :  { %v1051_v52 = vrot.slane %v2947_v51, %v2942_v48  ;;  %v1043_v54 = vrot.slane %v2947_v51, %v2945_v50  ;;  %v2953_v55 = vadd.f32 %v2368_v47, %v422_v53  ;;  %v434_v10 = vand.u32 2147483647, %v2947_v51 }
 0x453   :  { %v2998_v47 = vsel %vm173_vm2, %v452_v42, %v455_v34  ;;  %v432_v49 = vmax.f32 %v2947_v51, 0.0 }
 0x454   :  { %1054 = vbcast.lane.b32.xlu0 %v1051_v52, 320  ;;  %1046 = vbcast.lane.b32.xlu1 %v1043_v54, 320  ;;  %v533_v56 = vrot.slane %v2953_v55, %v2942_v48  ;;  %v525_v57 = vrot.slane %v2953_v55, %v2945_v50  ;;  %v641_v60 = vrot.slane %v2953_v55, %v640_v58  ;;  %v433_v7 = vand.u32 2147483647, %v2953_v55 }
 0x455   :  { %v633_v61 = vrot.slane %v2953_v55, %v632_v59  ;;  %v791_v0 = vrot.slane %v2953_v55, %v790_v62  ;;  %v783_v2 = vrot.slane %v2953_v55, %v782_v63  ;;  %v899_v5 = vrot.slane %v2953_v55, %v898_v3 }
 0x456   :  { %v891_v6 = vrot.slane %v2953_v55, %v890_v4  ;;  %v435_v8 = vsub.f32 0.0, %v433_v7  ;;  %v436_v12 = vsub.f32 0.0, %v434_v10  ;;  %v431_v24 = vmax.f32 %v2953_v55, 0.0 }
 0x458   :  { %1074 = vbcast.lane.b32.xlu0 %v1051_v52, 328  ;;  %1070 = vbcast.lane.b32.xlu1 %v1043_v54, 328  ;;  %v437_v9 = vmul.f32 1.442695, %v435_v8  ;;  %v439_v14 = vmul.f32 1.442695, %v436_v12 }
 0x45a   :  { %2531 = vpow2.f32 %v437_v9 }
 0x45c   :  { %536 = vbcast.lane.b32.xlu0 %v533_v56, 320  ;;  %528 = vbcast.lane.b32.xlu1 %v525_v57, 320 }
 0x460   :  { %556 = vbcast.lane.b32.xlu0 %v533_v56, 328  ;;  %552 = vbcast.lane.b32.xlu1 %v525_v57, 328 }
 0x464   :  { %644 = vbcast.lane.b32.xlu0 %v641_v60, 320  ;;  %636 = vbcast.lane.b32.xlu1 %v633_v61, 320 }
 0x467   :  { %v2532_v11 = vpop.eup %2531 }
 0x468   :  { %664 = vbcast.lane.b32.xlu0 %v641_v60, 328  ;;  %660 = vbcast.lane.b32.xlu1 %v633_v61, 328  ;;  %v441_v13 = vadd.f32 1.0, %v2532_v11 }
 0x46a   :  { %2533 = vlog2.f32 %v441_v13 }
 0x46b   :  { %2535 = vpow2.f32 %v439_v14 }
 0x46c   :  { %794 = vbcast.lane.b32.xlu0 %v791_v0, 320  ;;  %786 = vbcast.lane.b32.xlu1 %v783_v2, 320 }
 0x470   :  { %814 = vbcast.lane.b32.xlu0 %v791_v0, 328  ;;  %810 = vbcast.lane.b32.xlu1 %v783_v2, 328 }
 0x474   :  { %902 = vbcast.lane.b32.xlu0 %v899_v5, 320  ;;  %894 = vbcast.lane.b32.xlu1 %v891_v6, 320 }
 0x477   :  { %v2534_v16 = vpop.eup %2533 }
 0x478   :  { %922 = vbcast.lane.b32.xlu0 %v899_v5, 328  ;;  %918 = vbcast.lane.b32.xlu1 %v891_v6, 328  ;;  %v2536_v20 = vpop.eup %2535  ;;  %v444_v21 = vmul.f32 0.6931472, %v2534_v16 }
 0x479   :  { %v442_v22 = vadd.f32 1.0, %v2536_v20 }
 0x47a   :  { %v447_v25 = vadd.f32 %v444_v21, %v431_v24 }
 0x47b   :  { %2537 = vlog2.f32 %v442_v22 }
 0x47c   :  { %582 = vbcast.lane.b32.xlu0 %v533_v56, 344  ;;  %578 = vbcast.lane.b32.xlu1 %v525_v57, 344  ;;  %v465_v27 = vrot.slane %v447_v25, %v2987_v26  ;;  %v718_v31 = vcombine.high %v447_v25, %v447_v25 }
 0x47e   :  { %v466_v28 = vcombine.high %v465_v27, %v465_v27  ;;  %v473_v30 = vrot.slane %v465_v27, %v2987_v26  ;;  %v725_v45 = vrot.slane %v718_v31, %v2987_v26 }
 0x480   :  { %690 = vbcast.lane.b32.xlu0 %v641_v60, 344  ;;  %686 = vbcast.lane.b32.xlu1 %v633_v61, 344  ;;  %v480_v29 = vrot.slane %v466_v28, %v2987_v26  ;;  %v484_v38 = vrot.slane %v473_v30, %v2945_v50  ;;  %v733_v8 = vrot.slane %v725_v45, %v2987_v26 }
 0x482   :  { %v488_v35 = vrot.slane %v480_v29, %v2945_v50  ;;  %v611_v53 = vcombine.high %v480_v29, %v480_v29  ;;  %v491_v55 = vmul.f32 %v484_v38, %v2998_v47  ;;  %v744_v17 = vrot.slane %v733_v8, %v2945_v50 }
 0x484   :  { %840 = vbcast.lane.b32.xlu0 %v791_v0, 344  ;;  %836 = vbcast.lane.b32.xlu1 %v783_v2, 344  ;;  %v619_v41 = vrot.slane %v611_v53, %v2945_v50  ;;  %v493_v51 = vmul.f32 1.442695, %v491_v55  ;;  %v751_v31 = vmul.f32 %v744_v17, %v2998_v47 }
 0x486   :  { %v623_v10 = vmul.f32 %v619_v41, %v2998_v47 }
 0x488   :  { %948 = vbcast.lane.b32.xlu0 %v899_v5, 344  ;;  %944 = vbcast.lane.b32.xlu1 %v891_v6, 344  ;;  %v2538_v33 = vpop.eup %2537  ;;  %v626_v20 = vmul.f32 1.442695, %v623_v10 }
 0x489   :  { %v446_v39 = vmul.f32 0.6931472, %v2538_v33 }
 0x48c   :  { %1100 = vbcast.lane.b32.xlu0 %v1051_v52, 344  ;;  %1096 = vbcast.lane.b32.xlu1 %v1043_v54, 344 }
 0x490   :  { %1090 = vbcast.lane.b32.xlu0 %v1051_v52, 336  ;;  %1086 = vbcast.lane.b32.xlu1 %v1043_v54, 336  ;;  %v492_v52 = vmul.f32 %v488_v35, %v2998_v47  ;;  %v498_v54 = vmul.f32 %v447_v25, %v2928_v43  ;;  %v868_v25 = vcombine.high %v733_v8, %v733_v8 }
 0x492   :  { %v506_v42 = vrot.slane %v498_v54, %v2987_v26 }
 0x494   :  { %572 = vbcast.lane.b32.xlu0 %v533_v56, 336  ;;  %568 = vbcast.lane.b32.xlu1 %v525_v57, 336  ;;  %v610_v56 = vcombine.high %v473_v30, %v473_v30  ;;  %v448_v57 = vadd.f32 %v446_v39, %v432_v49  ;;  %v507_v12 = vcombine.high %v506_v42, %v506_v42 }
 0x495   :  { %v514_v28 = vrot.slane %v506_v42, %v2987_v26  ;;  %v757_v30 = vcombine.high %v498_v54, %v498_v54 }
 0x496   :  { %v521_v22 = vrot.slane %v507_v12, %v2987_v26 }
 0x497   :  { %v628_v42 = vcombine.high %v514_v28, %v514_v28 }
 0x498   :  { %680 = vbcast.lane.b32.xlu0 %v641_v60, 336  ;;  %676 = vbcast.lane.b32.xlu1 %v633_v61, 336  ;;  %v726_v60 = vcombine.high %v725_v45, %v725_v45  ;;  %v545_v38 = vrot.slane %v521_v22, %v2945_v50  ;;  %v873_v45 = vrot.slane %v868_v25, %v2945_v50 }
 0x499   :  { %v629_v55 = vcombine.high %v521_v22, %v521_v22  ;;  %v649_v22 = vrot.slane %v628_v42, %v2945_v50 }
 0x49a   :  { %v740_v7 = vrot.slane %v726_v60, %v2987_v26  ;;  %v753_v60 = vmul.f32 1.442695, %v751_v31  ;;  %v880_v10 = vmul.f32 %v873_v45, %v2998_v47 }
 0x49b   :  { %v653_v17 = vrot.slane %v629_v55, %v2945_v50 }
 0x49c   :  { %830 = vbcast.lane.b32.xlu0 %v791_v0, 336  ;;  %826 = vbcast.lane.b32.xlu1 %v783_v2, 336  ;;  %v495_v0 = vmul.f32 1.442695, %v492_v52  ;;  %v748_v16 = vrot.slane %v740_v7, %v2945_v50  ;;  %v869_v21 = vcombine.high %v740_v7, %v740_v7  ;;  %v541_v52 = vrot.slane %v514_v28, %v2945_v50 }
 0x49e   :  { %2539 = vpow2.f32 %v495_v0  ;;  %v752_v29 = vmul.f32 %v748_v16, %v2998_v47  ;;  %v877_v34 = vrot.slane %v869_v21, %v2945_v50 }
 0x49f   :  { %2541 = vpow2.f32 %v493_v51 }
 0x4a0   :  { %938 = vbcast.lane.b32.xlu0 %v899_v5, 336  ;;  %934 = vbcast.lane.b32.xlu1 %v891_v6, 336  ;;  %v615_v5 = vrot.slane %v610_v56, %v2945_v50  ;;  %v983_v6 = vrot.slane %v448_v57, %v2987_v26  ;;  %2543 = vpow2.f32 %v626_v20  ;;  %v755_v53 = vmul.f32 1.442695, %v752_v29 }
 0x4a1   :  { %v764_v56 = vrot.slane %v757_v30, %v2987_v26  ;;  %v881_v51 = vmul.f32 %v877_v34, %v2998_v47 }
 0x4a2   :  { %v622_v13 = vmul.f32 %v615_v5, %v2998_v47  ;;  %v984_v14 = vcombine.high %v983_v6, %v983_v6  ;;  %v991_v35 = vrot.slane %v983_v6, %v2987_v26 }
 0x4a3   :  { %v765_v20 = vcombine.high %v764_v56, %v764_v56 }
 0x4a4   :  { %v624_v24 = vmul.f32 1.442695, %v622_v13  ;;  %v998_v27 = vrot.slane %v984_v14, %v2987_v26  ;;  %v1002_v6 = vrot.slane %v991_v35, %v2945_v50  ;;  %v1016_v13 = vmul.f32 %v448_v57, %v2930_v44 }
 0x4a6   :  { %2545 = vpow2.f32 %v624_v24  ;;  %v1006_v49 = vrot.slane %v998_v27, %v2945_v50  ;;  %v884_v27 = vmul.f32 1.442695, %v881_v51  ;;  %v1009_v30 = vmul.f32 %v1002_v6, %v2998_v47 }
 0x4a7   :  { %2547 = vpow2.f32 %v755_v53  ;;  %v1024_v34 = vrot.slane %v1016_v13, %v2987_v26 }
 0x4a8   :  { %v1010_v16 = vmul.f32 %v1006_v49, %v2998_v47  ;;  %2549 = vpow2.f32 %v753_v60  ;;  %v1011_v60 = vmul.f32 1.442695, %v1009_v30 }
 0x4a9   :  { %2551 = vpow2.f32 %v884_v27  ;;  %v1025_v6 = vcombine.high %v1024_v34, %v1024_v34  ;;  %v1032_v30 = vrot.slane %v1024_v34, %v2987_v26 }
 0x4aa   :  { %v1013_v53 = vmul.f32 1.442695, %v1010_v16 }
 0x4ab   :  { %v2540_v5 = vpop.eup %2539 }
 0x4ac   :  { %v2542_v12 = vpop.eup %2541 }
 0x4ad   :  { %v562_v57 = vmul.f32 0.0, %v2542_v12 }
 0x4c6   :  { %v3004_v61 = vpop.permute.xlu0 %1054  ;;  %v3007_v2 = vpop.permute.xlu1 %1046 }
 0x4ca   :  { %v3014_v9 = vpop.permute.xlu0 %1074  ;;  %v3017_v11 = vpop.permute.xlu1 %1070 }
 0x4ce   :  { %v537_v19 = vpop.permute.xlu0 %536  ;;  %v529_v23 = vpop.permute.xlu1 %528 }
 0x4cf   :  { %v549_v7 = vmul.f32 %v545_v38, %v537_v19  ;;  %v548_v14 = vmul.f32 %v541_v52, %v529_v23  ;;  %v563_v19 = vmul.f32 0.0, %v2540_v5  ;;  %v882_v23 = vmul.f32 1.442695, %v880_v10 }
 0x4d1   :  { %2553 = vpow2.f32 %v882_v23 }
 0x4d2   :  { %v557_v33 = vpop.permute.xlu0 %556  ;;  %v553_v39 = vpop.permute.xlu1 %552  ;;  %2555 = vpow2.f32 %v1013_v53 }
 0x4d3   :  { %v559_v54 = vmul.f32 %v557_v33, %v545_v38  ;;  %v558_v0 = vmul.f32 %v553_v39, %v541_v52  ;;  %v779_v38 = vrot.slane %v765_v20, %v2987_v26  ;;  %v772_v52 = vrot.slane %v764_v56, %v2987_v26 }
 0x4d4   :  { %2557 = vpow2.f32 %v1011_v60 }
 0x4d5   :  { %v561_v21 = vsel %vm173_vm2, %v549_v7, %v559_v54  ;;  %v560_v25 = vsel %vm173_vm2, %v548_v14, %v558_v0  ;;  %v2544_v54 = vpop.eup %2543  ;;  %v803_v51 = vrot.slane %v779_v38, %v2945_v50  ;;  %v799_v56 = vrot.slane %v772_v52, %v2945_v50 }
 0x4d6   :  { %v645_v41 = vpop.permute.xlu0 %644  ;;  %v637_v8 = vpop.permute.xlu1 %636  ;;  %v3044_v33 = vadd.f32 %v563_v19, %v561_v21  ;;  %v3048_v39 = vadd.f32 %v562_v57, %v560_v25  ;;  %v886_v25 = vcombine.high %v772_v52, %v772_v52 }
 0x4d7   :  { %v657_v35 = vmul.f32 %v653_v17, %v645_v41  ;;  %v656_v45 = vmul.f32 %v649_v22, %v637_v8  ;;  %v2546_v0 = vpop.eup %2545 }
 0x4d8   :  { %v671_v42 = vmul.f32 %v2544_v54, %v3044_v33  ;;  %v670_v5 = vmul.f32 %v2546_v0, %v3048_v39  ;;  %v2548_v20 = vpop.eup %2547  ;;  %v1059_v0 = vrot.slane %v1032_v30, %v2945_v50 }
 0x4da   :  { %v665_v24 = vpop.permute.xlu0 %664  ;;  %v661_v29 = vpop.permute.xlu1 %660 }
 0x4db   :  { %v667_v28 = vmul.f32 %v665_v24, %v653_v17  ;;  %v666_v31 = vmul.f32 %v661_v29, %v649_v22  ;;  %v887_v22 = vcombine.high %v779_v38, %v779_v38  ;;  %v2550_v24 = vpop.eup %2549  ;;  %v1039_v29 = vrot.slane %v1025_v6, %v2987_v26 }
 0x4dc   :  { %v907_v38 = vrot.slane %v886_v25, %v2945_v50  ;;  %v2552_v52 = vpop.eup %2551 }
 0x4dd   :  { %v669_v47 = vsel %vm173_vm2, %v657_v35, %v667_v28  ;;  %v668_v41 = vsel %vm173_vm2, %v656_v45, %v666_v31  ;;  %v911_v35 = vrot.slane %v887_v22, %v2945_v50  ;;  %v1063_v53 = vrot.slane %v1039_v29, %v2945_v50 }
 0x4de   :  { %v795_v49 = vpop.permute.xlu0 %794  ;;  %v787_v55 = vpop.permute.xlu1 %786  ;;  %v3057_v8 = vadd.f32 %v671_v42, %v669_v47  ;;  %v3059_v14 = vadd.f32 %v670_v5, %v668_v41  ;;  %v1066_v22 = vmul.f32 %v1059_v0, %v3007_v2 }
 0x4df   :  { %v807_v10 = vmul.f32 %v803_v51, %v795_v49  ;;  %v806_v16 = vmul.f32 %v799_v56, %v787_v55  ;;  %v2554_v60 = vpop.eup %2553 }
 0x4e0   :  { %v821_v27 = vmul.f32 %v2548_v20, %v3057_v8  ;;  %v820_v23 = vmul.f32 %v2550_v24, %v3059_v14 }
 0x4e2   :  { %v815_v7 = vpop.permute.xlu0 %814  ;;  %v811_v13 = vpop.permute.xlu1 %810 }
 0x4e3   :  { %v817_v12 = vmul.f32 %v815_v7, %v803_v51  ;;  %v816_v17 = vmul.f32 %v811_v13, %v799_v56  ;;  %v1077_v51 = vmul.f32 %v3014_v9, %v1063_v53  ;;  %v1076_v56 = vmul.f32 %v3017_v11, %v1059_v0  ;;  %v2556_v13 = vpop.eup %2555 }
 0x4e4   :  { %v2558_v9 = vpop.eup %2557 }
 0x4e5   :  { %v819_v21 = vsel %vm173_vm2, %v807_v10, %v817_v12  ;;  %v818_v28 = vsel %vm173_vm2, %v806_v16, %v816_v17  ;;  %v1067_v16 = vmul.f32 %v1063_v53, %v3004_v61 }
 0x4e6   :  { %v903_v19 = vpop.permute.xlu0 %902  ;;  %v895_v57 = vpop.permute.xlu1 %894  ;;  %v3067_v31 = vadd.f32 %v821_v27, %v819_v21  ;;  %v3070_v45 = vadd.f32 %v820_v23, %v818_v28  ;;  %v1078_v28 = vsel %vm173_vm2, %v1066_v22, %v1076_v56  ;;  %v1160_v56 = vsub.f32 0.0, %v2903_v18 }
 0x4e7   :  { %v915_v54 = vmul.f32 %v911_v35, %v903_v19  ;;  %v914_v42 = vmul.f32 %v907_v38, %v895_v57  ;;  %v1079_v19 = vsel %vm173_vm2, %v1067_v16, %v1077_v51 }
 0x4e8   :  { %v929_v41 = vmul.f32 %v2552_v52, %v3067_v31  ;;  %v928_v6 = vmul.f32 %v2554_v60, %v3070_v45  ;;  %v1162_v16 = vmul.f32 1.442695, %v1160_v56 }
 0x4ea   :  { %v923_v49 = vpop.permute.xlu0 %922  ;;  %v919_v47 = vpop.permute.xlu1 %918 }
 0x4eb   :  { %v925_v55 = vmul.f32 %v923_v49, %v911_v35  ;;  %v924_v34 = vmul.f32 %v919_v47, %v907_v38 }
 0x4ed   :  { %v927_v5 = vsel %vm173_vm2, %v915_v54, %v925_v55  ;;  %v926_v7 = vsel %vm173_vm2, %v914_v42, %v924_v34  ;;  %v1159_v34 = vadd.f32 %v2930_v44, %v2913_v37 }
 0x4ee   :  { %v583_v10 = vpop.permute.xlu0 %582  ;;  %v3081_v12 = vadd.f32 %v929_v41, %v927_v5  ;;  %v579_v20 = vpop.permute.xlu1 %578  ;;  %v3085_v21 = vadd.f32 %v928_v6, %v926_v7  ;;  %v1158_v41 = vadd.f32 %v2928_v43, %v2918_v40  ;;  %v1161_v6 = vsub.f32 0.0, %v2900_v15 }
 0x4ef   :  { %v585_v17 = vmul.f32 %v583_v10, %v3044_v33  ;;  %v584_v24 = vmul.f32 %v579_v20, %v3048_v39 }
 0x4f0   :  { %v1081_v11 = vmul.f32 %v2556_v13, %v3081_v12  ;;  %v1080_v25 = vmul.f32 %v2558_v9, %v3085_v21  ;;  %v1164_v13 = vmul.f32 1.442695, %v1161_v6 }
 0x4f1   :  { %590 = vrot.lane.b32.xlu0 %v585_v17, %s2642_s29  ;;  %588 = vrot.lane.b32.xlu1 %v584_v24, %s2642_s29 }
 0x4f2   :  { %v691_v61 = vpop.permute.xlu0 %690  ;;  %v3094_v27 = vadd.f32 %v1081_v11, %v1079_v19  ;;  %v687_v2 = vpop.permute.xlu1 %686  ;;  %v3098_v57 = vadd.f32 %v1080_v25, %v1078_v28  ;;  %2559 = vpow2.f32 %v1164_v13 }
 0x4f3   :  { %v693_v29 = vmul.f32 %v691_v61, %v3057_v8  ;;  %v692_v23 = vmul.f32 %v687_v2, %v3059_v14  ;;  %2561 = vpow2.f32 %v1162_v16 }
 0x4f5   :  { %698 = vrot.lane.b32.xlu0 %v693_v29, %s2642_s29  ;;  %696 = vrot.lane.b32.xlu1 %v692_v23, %s2642_s29 }
 0x4f6   :  { %v841_v30 = vpop.permute.xlu0 %840  ;;  %v837_v38 = vpop.permute.xlu1 %836 }
 0x4f7   :  { %v843_v35 = vmul.f32 %v841_v30, %v3067_v31  ;;  %v842_v49 = vmul.f32 %v837_v38, %v3070_v45 }
 0x4f9   :  { %848 = vrot.lane.b32.xlu0 %v843_v35, %s2642_s29  ;;  %846 = vrot.lane.b32.xlu1 %v842_v49, %s2642_s29 }
 0x4fa   :  { %v949_v52 = vpop.permute.xlu0 %948  ;;  %v945_v54 = vpop.permute.xlu1 %944 }
 0x4fb   :  { %v951_v53 = vmul.f32 %v949_v52, %v3081_v12  ;;  %v950_v55 = vmul.f32 %v945_v54, %v3085_v21 }
 0x4fd   :  { %956 = vrot.lane.b32.xlu0 %v951_v53, %s2642_s29  ;;  %954 = vrot.lane.b32.xlu1 %v950_v55, %s2642_s29 }
 0x4fe   :  { %v1101_v47 = vpop.permute.xlu0 %1100  ;;  %v1097_v0 = vpop.permute.xlu1 %1096 }
 0x4ff   :  { %v1103_v60 = vmul.f32 %v1101_v47, %v3094_v27  ;;  %v1102_v42 = vmul.f32 %v1097_v0, %v3098_v57  ;;  %v2560_v9 = vpop.eup %2559 }
 0x500   :  { %v2562_v22 = vpop.eup %2561  ;;  %v1167_v25 = vadd.f32 1.0, %v2560_v9 }
 0x501   :  { %1108 = vrot.lane.b32.xlu0 %v1103_v60, %s2642_s29  ;;  %1106 = vrot.lane.b32.xlu1 %v1102_v42, %s2642_s29  ;;  %v1166_v29 = vadd.f32 1.0, %v2562_v22 }
 0x502   :  { %v1091_v51 = vpop.permute.xlu0 %1090  ;;  %v1087_v5 = vpop.permute.xlu1 %1086  ;;  %2563 = vrcp.f32 %v1167_v25 }
 0x503   :  { %2565 = vrcp.f32 %v1166_v29  ;;  %v1093_v47 = vmul.f32 %v1091_v51, %v3094_v27  ;;  %v1092_v56 = vmul.f32 %v1087_v5, %v3098_v57 }
 0x505   :  { %1185 = vrot.lane.b32.xlu0 %v1159_v34, %s2642_s29  ;;  %1183 = vrot.lane.b32.xlu1 %v1158_v41, %s2642_s29 }
 0x506   :  { %v573_v7 = vpop.permute.xlu0 %572  ;;  %v569_v10 = vpop.permute.xlu1 %568 }
 0x507   :  { %v575_v24 = vmul.f32 %v573_v7, %v3044_v33  ;;  %v574_v11 = vmul.f32 %v569_v10, %v3048_v39 }
 0x50a   :  { %v681_v17 = vpop.permute.xlu0 %680  ;;  %v677_v37 = vpop.permute.xlu1 %676 }
 0x50b   :  { %v683_v23 = vmul.f32 %v681_v17, %v3057_v8  ;;  %v682_v35 = vmul.f32 %v677_v37, %v3059_v14 }
 0x50e   :  { %v831_v44 = vpop.permute.xlu0 %830  ;;  %v827_v40 = vpop.permute.xlu1 %826 }
 0x50f   :  { %v833_v60 = vmul.f32 %v831_v44, %v3067_v31  ;;  %v832_v14 = vmul.f32 %v827_v40, %v3070_v45 }
 0x512   :  { %v939_v43 = vpop.permute.xlu0 %938  ;;  %v935_v20 = vpop.permute.xlu1 %934 }
 0x513   :  { %v941_v27 = vmul.f32 %v939_v43, %v3081_v12  ;;  %v940_v37 = vmul.f32 %v935_v20, %v3085_v21 }
 0x563   :  { %v591_v19 = vpop.permute.xlu0 %590  ;;  %v589_v61 = vpop.permute.xlu1 %588 }
 0x564   :  { %v595_v28 = vadd.f32 %v591_v19, %v575_v24  ;;  %v594_v2 = vadd.f32 %v589_v61, %v574_v11 }
 0x566   :  { %v603_v30 = vsel %vm173_vm2, %v595_v28, 0.0  ;;  %v596_v38 = vsel %vm173_vm2, %v594_v2, 0.0 }
 0x567   :  { %v604_v49 = vrot.slane %v603_v30, 4  ;;  %v699_v52 = vpop.permute.xlu0 %698  ;;  %v597_v33 = vrot.slane %v596_v38, 4  ;;  %v697_v53 = vpop.permute.xlu1 %696 }
 0x568   :  { %v703_v39 = vadd.f32 %v699_v52, %v683_v23  ;;  %v702_v55 = vadd.f32 %v697_v53, %v682_v35 }
 0x569   :  { %v605_v54 = vadd.f32 %v604_v49, %v603_v30  ;;  %v598_v8 = vadd.f32 %v597_v33, %v596_v38 }
 0x56a   :  { %v711_v0 = vsel %vm173_vm2, %v703_v39, 0.0  ;;  %v704_v34 = vsel %vm173_vm2, %v702_v55, 0.0 }
 0x56b   :  { %v606_v42 = vrot.slane %v605_v54, 2  ;;  %v712_v41 = vrot.slane %v711_v0, 4  ;;  %v849_v6 = vpop.permute.xlu0 %848  ;;  %v599_v7 = vrot.slane %v598_v8, 2  ;;  %v705_v10 = vrot.slane %v704_v34, 4  ;;  %v847_v13 = vpop.permute.xlu1 %846 }
 0x56c   :  { %v853_v16 = vadd.f32 %v849_v6, %v833_v60  ;;  %v852_v17 = vadd.f32 %v847_v13, %v832_v14 }
 0x56d   :  { %v607_v51 = vadd.f32 %v606_v42, %v605_v54  ;;  %v713_v31 = vadd.f32 %v712_v41, %v711_v0  ;;  %v600_v44 = vadd.f32 %v599_v7, %v598_v8  ;;  %v706_v45 = vadd.f32 %v705_v10, %v704_v34  ;;  %v2564_v8 = vpop.eup %2563 }
 0x56e   :  { %v861_v40 = vsel %vm173_vm2, %v853_v16, 0.0  ;;  %v854_v57 = vsel %vm173_vm2, %v852_v17, 0.0  ;;  %v2566_v41 = vpop.eup %2565 }
 0x56f   :  { %v608_v9 = vrot.slane %v607_v51, 1  ;;  %v714_v22 = vrot.slane %v713_v31, 2  ;;  %v862_v5 = vrot.slane %v861_v40, 4  ;;  %v957_v24 = vpop.permute.xlu0 %956  ;;  %v601_v11 = vrot.slane %v600_v44, 1  ;;  %v955_v43 = vpop.permute.xlu1 %954 }
 0x570   :  { %v707_v19 = vrot.slane %v706_v45, 2  ;;  %v855_v12 = vrot.slane %v854_v57, 4  ;;  %v961_v25 = vadd.f32 %v957_v24, %v941_v27  ;;  %v960_v28 = vadd.f32 %v955_v43, %v940_v37 }
 0x571   :  { %v609_v61 = vadd.f32 %v608_v9, %v607_v51  ;;  %v715_v21 = vadd.f32 %v714_v22, %v713_v31  ;;  %v863_v20 = vadd.f32 %v862_v5, %v861_v40  ;;  %v602_v29 = vadd.f32 %v601_v11, %v600_v44 }
 0x572   :  { %v708_v2 = vadd.f32 %v707_v19, %v706_v45  ;;  %v856_v23 = vadd.f32 %v855_v12, %v854_v57  ;;  %v969_v30 = vsel %vm173_vm2, %v961_v25, 0.0  ;;  %v962_v49 = vsel %vm173_vm2, %v960_v28, 0.0  ;;  %v2371_v28 = vld [vmem:[%s3507_s10] ss:$0 sm:$0xff] }
 0x573   :  { %v716_v35 = vrot.slane %v715_v21, 1  ;;  %v864_v38 = vrot.slane %v863_v20, 2  ;;  %v970_v52 = vrot.slane %v969_v30, 4  ;;  %v1109_v33 = vpop.permute.xlu0 %1108  ;;  %v963_v54 = vrot.slane %v962_v49, 4  ;;  %v1107_v55 = vpop.permute.xlu1 %1106 }
 0x574   :  { %v709_v53 = vrot.slane %v708_v2, 1  ;;  %v857_v39 = vrot.slane %v856_v23, 2  ;;  %v1113_v60 = vadd.f32 %v1109_v33, %v1093_v47  ;;  %v1112_v34 = vadd.f32 %v1107_v55, %v1092_v56 }
 0x575   :  { %v717_v0 = vadd.f32 %v716_v35, %v715_v21  ;;  %v865_v14 = vadd.f32 %v864_v38, %v863_v20  ;;  %v971_v42 = vadd.f32 %v970_v52, %v969_v30  ;;  %v964_v10 = vadd.f32 %v963_v54, %v962_v49 }
 0x576   :  { %v710_v6 = vadd.f32 %v709_v53, %v708_v2  ;;  %v858_v7 = vadd.f32 %v857_v39, %v856_v23  ;;  %v1121_v13 = vsel %vm173_vm2, %v1113_v60, 0.0  ;;  %v1114_v51 = vsel %vm173_vm2, %v1112_v34, 0.0 }
 0x577   :  { %v866_v16 = vrot.slane %v865_v14, 1  ;;  %v972_v27 = vrot.slane %v971_v42, 2  ;;  %v1122_v31 = vrot.slane %v1121_v13, 4  ;;  %v965_v37 = vrot.slane %v964_v10, 2  ;;  %v1186_v38 = vpop.permute.xlu0 %1185 }
 0x578   :  { %v859_v17 = vrot.slane %v858_v7, 1  ;;  %v1115_v44 = vrot.slane %v1114_v51, 4  ;;  %v1131_v56 = vsel %vm1130_vm5, %v609_v61, %v602_v29  ;;  %v1136_v5 = vsel %vm1135_vm6, %v717_v0, %v710_v6  ;;  %v1184_v29 = vpop.permute.xlu1 %1183 }
 0x579   :  { %v867_v47 = vadd.f32 %v866_v16, %v865_v14  ;;  %v973_v45 = vadd.f32 %v972_v27, %v971_v42  ;;  %v1123_v40 = vadd.f32 %v1122_v31, %v1121_v13  ;;  %v966_v22 = vadd.f32 %v965_v37, %v964_v10  ;;  %v2379_v37 = vld [vmem:[%s3502_s5 + $0x38] sm:$0xff] }
 0x57a   :  { %v860_v9 = vadd.f32 %v859_v17, %v858_v7  ;;  %v1116_v57 = vadd.f32 %v1115_v44, %v1114_v51  ;;  %v1153_v19 = vsel %vm1152_vm7, %v1131_v56, %v1136_v5  ;;  %v1189_v52 = vmul.f32 %v2371_v28, %v1184_v29  ;;  %v2378_v44 = vld [vmem:[%s3502_s5 + $0x30] sm:$0xff]  ;;  %2470 = vmatprep.subr.mxu1 %v2379_v37  ;;  %v2391_v29 = vld [vmem:[%s3504_s7 + $0x78] sm:$0xff] }
 0x57b   :  { %v974_v24 = vrot.slane %v973_v45, 1  ;;  %v1124_v11 = vrot.slane %v1123_v40, 2  ;;  %v967_v12 = vrot.slane %v966_v22, 1  ;;  %v1172_v54 = vmul.f32 %v2566_v41, %v2903_v18  ;;  %2471 = vmatpush3.msra.mxu1 %v2379_v37 }
 0x57c   :  { %v1117_v43 = vrot.slane %v1116_v57, 2  ;;  %v1141_v25 = vsel %vm1140_vm8, %v867_v47, %v860_v9  ;;  %v1190_v60 = vmul.f32 %v2371_v28, %v1186_v38  ;;  %v1173_v42 = vmul.f32 %v2564_v8, %v2900_v15  ;;  %v2377_v47 = vld [vmem:[%s3502_s5 + $0x28] sm:$0xff]  ;;  %2472 = vmatprep.subr.mxu1 %v2378_v44  ;;  %v2386_v38 = vld [vmem:[%s3504_s7 + $0x50] sm:$0xff] }
 0x57d   :  { %v975_v21 = vadd.f32 %v974_v24, %v973_v45  ;;  %v1125_v20 = vadd.f32 %v1124_v11, %v1123_v40  ;;  %v1155_v61 = vsel %vm1154_vm9, %v1153_v19, %v1141_v25  ;;  %v968_v2 = vadd.f32 %v967_v12, %v966_v22  ;;  %2473 = vmatpush3.msra.mxu1 %v2378_v44  ;;  %v2376_v45 = vld [vmem:[%s3502_s5 + $0x20] sm:$0xff] }
 0x57e   :  { %v1118_v23 = vadd.f32 %v1117_v43, %v1116_v57  ;;  %2474 = vmatprep.subr.mxu1 %v2377_v47  ;;  %v2373_v11 = vld [vmem:[%s3500_s3 + $0x1] ss:$0 sm:$0xff] }
 0x57f   :  { %v1126_v30 = vrot.slane %v1125_v20, 1  ;;  %v1146_v49 = vsel %vm1145_vm10, %v975_v21, %v968_v2  ;;  %2475 = vmatpush3.msra.mxu1 %v2377_v47  ;;  %v2375_v12 = vld [vmem:[%s3501_s4 + $0x1] ss:$0 sm:$0xff]  ;;  %v2390_v2 = vld [vmem:[%s3504_s7 + $0x70] sm:$0xff] }
 0x580   :  { %v1119_v35 = vrot.slane %v1118_v23, 1  ;;  %v1157_v53 = vsel %vm1156_vm11, %v1155_v61, %v1146_v49  ;;  %2476 = vmatprep.subr.mxu1 %v2376_v45  ;;  %v2385_v49 = vld [vmem:[%s3504_s7 + $0x48] sm:$0xff] }
 0x581   :  { %v1127_v33 = vadd.f32 %v1126_v30, %v1125_v20  ;;  %v1191_v55 = vadd.f32 %v1189_v52, %v1157_v53  ;;  %2477 = vmatpush3.msra.mxu1 %v2376_v45  ;;  %v2388_v30 = vld [vmem:[%s3504_s7 + $0x60] sm:$0xff] }
 0x582   :  { %v1120_v39 = vadd.f32 %v1119_v35, %v1118_v23  ;;  %2481 = vmatprep.subr.mxu1 %v2391_v29  ;;  %v2389_v23 = vld [vmem:[%s3504_s7 + $0x68] sm:$0xff]  ;;  %v2387_v35 = vld [vmem:[%s3504_s7 + $0x58] sm:$0xff]  ;;  %v2381_v52 = vld [vmem:[%s3503_s6 + $0x1] ss:$0 sm:$0xff] }
 0x583   :  { %v1193_v14 = vmul.f32 %v1191_v55, %v1172_v54 }
 0x584   :  { %v1150_v0 = vsel %vm1130_vm5, %v1127_v33, %v1120_v39 }
 0x585   :  { %v1192_v34 = vadd.f32 %v1190_v60, %v1150_v0  ;;  %v3157_v6 = vadd.f32 %v1193_v14, %v2844_v32 }
 0x587   :  { %v1194_v7 = vmul.f32 %v1192_v34, %v1173_v42  ;;  %v1197_v10 = vsel %vm173_vm2, %v3157_v6, 0.0 }
 0x588   :  { %1198 = vadd.xlane.f32.xlu1 %v1197_v10 }
 0x589   :  { %v3162_v13 = vadd.f32 %v1194_v7, %v2848_v36 }
 0x58b   :  { %v1200_v18 = vsel %vm177_vm3, %v3162_v13, 0.0 }
 0x58c   :  { %1201 = vadd.xlane.f32.xlu0 %v1200_v18 }
 0x611   :  { %v1199_v41 = vpop.xlane.xlu1 %1198 }
 0x612   :  { %v1203_v16 = vmul.f32 0.03125, %v1199_v41 }
 0x614   :  { %v1205_v15 = vsub.f32 %v3157_v6, %v1203_v16  ;;  %v2384_v16 = vld [vmem:[%s3504_s7 + $0x40] sm:$0xff] }
 0x615   :  { %v1202_v8 = vpop.xlane.xlu0 %1201 }
 0x616   :  { %v1204_v27 = vmul.f32 0.03125, %v1202_v8  ;;  %v1207_v32 = vmul.f32 %v1205_v15, %v1205_v15 }
 0x618   :  { %v1206_v51 = vsub.f32 %v3162_v13, %v1204_v27  ;;  %v1209_v31 = vsel %vm173_vm2, %v1207_v32, 0.0 }
 0x619   :  { %1210 = vadd.xlane.f32.xlu0 %v1209_v31 }
 0x61a   :  { %v1208_v17 = vmul.f32 %v1206_v51, %v1206_v51 }
 0x61c   :  { %v1212_v36 = vsel %vm177_vm3, %v1208_v17, 0.0 }
 0x61d   :  { %1213 = vadd.xlane.f32.xlu0 %v1212_v36 }
 0x6a2   :  { %v1211_v40 = vpop.xlane.xlu0 %1210 }
 0x6a3   :  { %v1215_v56 = vmul.f32 0.03125, %v1211_v40 }
 0x6a5   :  { %v1217_v9 = vadd.f32 1e-05, %v1215_v56 }
 0x6a6   :  { %v1214_v22 = vpop.xlane.xlu0 %1213 }
 0x6a7   :  { %2567 = vrsqrt.f32 %v1217_v9  ;;  %v1216_v57 = vmul.f32 0.03125, %v1214_v22  ;;  %v2393_v9 = vld [vmem:[%s3505_s8 + $0x1] ss:$0 sm:$0xff] }
 0x6a9   :  { %v1218_v5 = vadd.f32 1e-05, %v1216_v57 }
 0x6ab   :  { %2569 = vrsqrt.f32 %v1218_v5 }
 0x6b4   :  { %v2568_v24 = vpop.eup %2567 }
 0x6b5   :  { %v1221_v19 = vmul.f32 %v2568_v24, %v1205_v15  ;;  %v2396_v15 = vld [vmem:[%s3506_s9 + $0x8] sm:$0xff] }
 0x6b6   :  { %v1477_v8 = vmul.f32 1.442695, %v2396_v15 }
 0x6b7   :  { %v1231_v43 = vmul.f32 %v2373_v11, %v1221_v19 }
 0x6b8   :  { %v2570_v25 = vpop.eup %2569 }
 0x6b9   :  { %v1222_v21 = vmul.f32 %v2570_v25, %v1206_v51  ;;  %v1241_v20 = vadd.f32 %v2375_v12, %v1231_v43 }
 0x6bb   :  { %v1232_v28 = vmul.f32 %v2373_v11, %v1222_v21  ;;  %2478 = vmatprep.mubr.msk.f32.mxu1 %vm173_vm2, %v1241_v20 }
 0x6bd   :  { %v1242_v61 = vadd.f32 %v2375_v12, %v1232_v28 }
 0x6bf   :  { %2479 = vmatmul.mubr.msk.f32.vlgmr.msra.gmra.mxu1 %vm173_vm2, %v1242_v61 }
 0x6c0   :  { %2482 = vmatpush3.msra.mxu1 %v2391_v29 }
 0x6c1   :  { %2483 = vmatprep.subr.mxu1 %v2390_v2 }
 0x6c2   :  { %2484 = vmatpush3.msra.mxu1 %v2390_v2 }
 0x6c3   :  { %2485 = vmatprep.subr.mxu1 %v2389_v23 }
 0x6c4   :  { %2486 = vmatpush3.msra.mxu1 %v2389_v23 }
 0x6c5   :  { %2487 = vmatprep.subr.mxu1 %v2388_v30 }
 0x6c6   :  { %2488 = vmatpush3.msra.mxu1 %v2388_v30 }
 0x6c7   :  { %2489 = vmatprep.subr.mxu1 %v2387_v35 }
 0x6c8   :  { %2490 = vmatpush3.msra.mxu1 %v2387_v35 }
 0x6c9   :  { %2491 = vmatprep.subr.mxu1 %v2386_v38 }
 0x6ca   :  { %2492 = vmatpush3.msra.mxu1 %v2386_v38 }
 0x6cb   :  { %2493 = vmatprep.subr.mxu1 %v2385_v49 }
 0x6cc   :  { %2494 = vmatpush3.msra.mxu1 %v2385_v49 }
 0x6cd   :  { %2495 = vmatprep.subr.mxu1 %v2384_v16 }
 0x6ce   :  { %2496 = vmatpush3.msra.mxu1 %v2384_v16 }
 0x6cf   :  { %2500 = vmatprep.subr.mxu1 %v2641_v1 }
 0x77f   :  { %v2480_v33 = vpop.f32.mrf.mxu1 }
 0x780   :  { %v3214_v53 = vadd.f32 %v2480_v33, %v2381_v52 }
 0x781   :  { %v1328_v39 = vpop.f32.mrf.mxu1 }
 0x782   :  { %v1340_v54 = vand.u32 2147483647, %v3214_v53  ;;  %v3217_v55 = vadd.f32 %v2381_v52, %v1328_v39  ;;  %v1338_v32 = vmax.f32 %v3214_v53, 0.0 }
 0x784   :  { %v1342_v60 = vsub.f32 0.0, %v1340_v54  ;;  %v1339_v0 = vand.u32 2147483647, %v3217_v55  ;;  %v1337_v36 = vmax.f32 %v3217_v55, 0.0 }
 0x786   :  { %v1345_v14 = vmul.f32 1.442695, %v1342_v60  ;;  %v1341_v42 = vsub.f32 0.0, %v1339_v0 }
 0x788   :  { %2571 = vpow2.f32 %v1345_v14  ;;  %v1343_v34 = vmul.f32 1.442695, %v1341_v42 }
 0x78a   :  { %2573 = vpow2.f32 %v1343_v34 }
 0x795   :  { %v2572_v7 = vpop.eup %2571 }
 0x796   :  { %v1348_v10 = vadd.f32 1.0, %v2572_v7 }
 0x797   :  { %v2574_v18 = vpop.eup %2573 }
 0x798   :  { %2575 = vlog2.f32 %v1348_v10  ;;  %v1347_v41 = vadd.f32 1.0, %v2574_v18 }
 0x79a   :  { %2577 = vlog2.f32 %v1347_v41 }
 0x79b   :  { %2579 = vpow2.f32 %v1477_v8 }
 0x7a5   :  { %v2576_v27 = vpop.eup %2575 }
 0x7a6   :  { %v1352_v51 = vmul.f32 0.6931472, %v2576_v27 }
 0x7a7   :  { %v2578_v31 = vpop.eup %2577 }
 0x7a8   :  { %v3228_v17 = vadd.f32 %v1352_v51, %v1338_v32  ;;  %v1350_v37 = vmul.f32 0.6931472, %v2578_v31  ;;  %v3237_v47 = vpop.eup %2579 }
 0x7a9   :  { %v1479_v45 = vsub.f32 0.0, %v3237_v47 }
 0x7aa   :  { %1376 = vrot.lane.b32.xlu0 %v3228_v17, %s2642_s29  ;;  %v3233_v44 = vadd.f32 %v1350_v37, %v1337_v36 }
 0x7ac   :  { %1374 = vrot.lane.b32.xlu1 %v3233_v44, %s2642_s29 }
 0x7b0   :  { %1481 = vrot.lane.b32.xlu1 %v1479_v45, %s2643_s30 }
 0x81c   :  { %v3245_v56 = vpop.permute.xlu0 %1376 }
 0x81e   :  { %v3243_v40 = vpop.permute.xlu1 %1374 }
 0x81f   :  { %2497 = vmatprep.mubr.msk.f32.mxu1 %vm351_vm4, %v3243_v40 }
 0x820   :  { %2498 = vmatmul.mubr.msk.f32.vlgmr.msra.gmra.mxu1 %vm351_vm4, %v3245_v56 }
 0x821   :  { %2508 = vmatprep.mubr.msk.f32.mxu1 %vm2645_vm12, %v2641_v1 }
 0x822   :  { %v1482_v54 = vpop.permute.xlu1 %1481 }
 0x823   :  { %v3303_v14 = vsel %vm173_vm2, %v1479_v45, %v1482_v54 }
 0x8e0   :  { %v2499_v22 = vpop.f32.mrf.mxu1 }
 0x8e1   :  { %v3254_v57 = vadd.f32 %v2499_v22, %v2393_v9 }
 0x8e2   :  { %v1448_v5 = vpop.f32.mrf.mxu1 }
 0x8e3   :  { %v3256_v24 = vadd.f32 %v2393_v9, %v1448_v5  ;;  %v3260_v11 = vrot.slane %v3254_v57, %v2942_v48  ;;  %v3264_v19 = vrot.slane %v3254_v57, %v2945_v50  ;;  %v1460_v46 = vand.u32 2147483647, %v3254_v57 }
 0x8e4   :  { %v1458_v32 = vmax.f32 %v3254_v57, 0.0 }
 0x8e5   :  { %2081 = vbcast.lane.b32.xlu1 %v3260_v11, 320  ;;  %2073 = vbcast.lane.b32.xlu0 %v3264_v19, 320  ;;  %v1552_v12 = vrot.slane %v3256_v24, %v2945_v50  ;;  %v1560_v43 = vrot.slane %v3256_v24, %v2942_v48  ;;  %v1660_v25 = vrot.slane %v3256_v24, %v632_v59  ;;  %v1457_v35 = vmax.f32 %v3256_v24, 0.0 }
 0x8e6   :  { %v1668_v21 = vrot.slane %v3256_v24, %v640_v58  ;;  %v1810_v20 = vrot.slane %v3256_v24, %v782_v63  ;;  %v1818_v48 = vrot.slane %v3256_v24, %v790_v62  ;;  %v1918_v59 = vrot.slane %v3256_v24, %v890_v4 }
 0x8e7   :  { %v1926_v58 = vrot.slane %v3256_v24, %v898_v3  ;;  %v1459_v63 = vand.u32 2147483647, %v3256_v24  ;;  %v1462_v4 = vsub.f32 0.0, %v1460_v46 }
 0x8e9   :  { %1555 = vbcast.lane.b32.xlu1 %v1552_v12, 320  ;;  %1579 = vbcast.lane.b32.xlu0 %v1552_v12, 328  ;;  %v1461_v28 = vsub.f32 0.0, %v1459_v63  ;;  %v1465_v29 = vmul.f32 1.442695, %v1462_v4 }
 0x8eb   :  { %v1463_v62 = vmul.f32 1.442695, %v1461_v28 }
 0x8ed   :  { %1563 = vbcast.lane.b32.xlu1 %v1560_v43, 320  ;;  %1663 = vbcast.lane.b32.xlu0 %v1660_v25, 320  ;;  %2581 = vpow2.f32 %v1463_v62 }
 0x8f1   :  { %1583 = vbcast.lane.b32.xlu1 %v1560_v43, 328  ;;  %1687 = vbcast.lane.b32.xlu0 %v1660_v25, 328 }
 0x8f5   :  { %1671 = vbcast.lane.b32.xlu1 %v1668_v21, 320  ;;  %1813 = vbcast.lane.b32.xlu0 %v1810_v20, 320 }
 0x8f9   :  { %1691 = vbcast.lane.b32.xlu1 %v1668_v21, 328  ;;  %1837 = vbcast.lane.b32.xlu0 %v1810_v20, 328 }
 0x8fa   :  { %v2582_v3 = vpop.eup %2581 }
 0x8fb   :  { %v1467_v61 = vadd.f32 1.0, %v2582_v3 }
 0x8fd   :  { %1821 = vbcast.lane.b32.xlu1 %v1818_v48, 320  ;;  %1921 = vbcast.lane.b32.xlu0 %v1918_v59, 320  ;;  %2583 = vlog2.f32 %v1467_v61 }
 0x8fe   :  { %2585 = vpow2.f32 %v1465_v29 }
 0x901   :  { %1841 = vbcast.lane.b32.xlu1 %v1818_v48, 328  ;;  %1945 = vbcast.lane.b32.xlu0 %v1918_v59, 328 }
 0x905   :  { %1929 = vbcast.lane.b32.xlu1 %v1926_v58, 320  ;;  %1605 = vbcast.lane.b32.xlu0 %v1552_v12, 344 }
 0x909   :  { %1949 = vbcast.lane.b32.xlu1 %v1926_v58, 328  ;;  %1713 = vbcast.lane.b32.xlu0 %v1660_v25, 344 }
 0x90a   :  { %v2584_v2 = vpop.eup %2583 }
 0x90b   :  { %v1470_v23 = vmul.f32 0.6931472, %v2584_v2  ;;  %v2586_v30 = vpop.eup %2585 }
 0x90c   :  { %v1468_v38 = vadd.f32 1.0, %v2586_v30 }
 0x90d   :  { %1609 = vbcast.lane.b32.xlu1 %v1560_v43, 344  ;;  %1863 = vbcast.lane.b32.xlu0 %v1810_v20, 344  ;;  %v1473_v49 = vadd.f32 %v1470_v23, %v1457_v35 }
 0x90e   :  { %2587 = vlog2.f32 %v1468_v38 }
 0x90f   :  { %v1492_v52 = vrot.slane %v1473_v49, %v2987_v26  ;;  %v1745_v0 = vcombine.high %v1473_v49, %v1473_v49  ;;  %v1525_v27 = vmul.f32 %v1473_v49, %v3243_v40 }
 0x911   :  { %1717 = vbcast.lane.b32.xlu1 %v1668_v21, 344  ;;  %1971 = vbcast.lane.b32.xlu0 %v1918_v59, 344  ;;  %v1500_v33 = vrot.slane %v1492_v52, %v2987_v26  ;;  %v1493_v39 = vcombine.high %v1492_v52, %v1492_v52  ;;  %v1752_v18 = vrot.slane %v1745_v0, %v2987_v26 }
 0x912   :  { %v1533_v45 = vrot.slane %v1525_v27, %v2987_v26  ;;  %v1784_v23 = vcombine.high %v1525_v27, %v1525_v27 }
 0x913   :  { %v1511_v60 = vrot.slane %v1500_v33, %v2945_v50  ;;  %v1507_v42 = vrot.slane %v1493_v39, %v2987_v26  ;;  %v1637_v7 = vcombine.high %v1500_v33, %v1500_v33  ;;  %v1760_v51 = vrot.slane %v1752_v18, %v2987_v26 }
 0x914   :  { %v1753_v9 = vcombine.high %v1752_v18, %v1752_v18  ;;  %v1534_v46 = vcombine.high %v1533_v45, %v1533_v45 }
 0x915   :  { %1867 = vbcast.lane.b32.xlu1 %v1818_v48, 344  ;;  %2097 = vbcast.lane.b32.xlu0 %v3264_v19, 328  ;;  %v1518_v34 = vmul.f32 %v1511_v60, %v3303_v14  ;;  %v1515_v41 = vrot.slane %v1507_v42, %v2945_v50  ;;  %v1642_v8 = vrot.slane %v1637_v7, %v2945_v50 }
 0x916   :  { %v1638_v36 = vcombine.high %v1507_v42, %v1507_v42  ;;  %v1771_v22 = vrot.slane %v1760_v51, %v2945_v50  ;;  %v1548_v60 = vrot.slane %v1534_v46, %v2987_v26 }
 0x917   :  { %v1520_v15 = vmul.f32 1.442695, %v1518_v34  ;;  %v1519_v31 = vmul.f32 %v1515_v41, %v3303_v14  ;;  %v1649_v47 = vmul.f32 %v1642_v8, %v3303_v14 }
 0x918   :  { %v1646_v57 = vrot.slane %v1638_v36, %v2945_v50  ;;  %v1572_v27 = vrot.slane %v1548_v60, %v2945_v50 }
 0x919   :  { %1975 = vbcast.lane.b32.xlu1 %v1926_v58, 344  ;;  %2123 = vbcast.lane.b32.xlu0 %v3264_v19, 344  ;;  %2589 = vpow2.f32 %v1520_v15  ;;  %v1522_v24 = vmul.f32 1.442695, %v1519_v31 }
 0x91a   :  { %v1650_v63 = vmul.f32 %v1646_v57, %v3303_v14 }
 0x91b   :  { %v2588_v10 = vpop.eup %2587  ;;  %2591 = vpow2.f32 %v1522_v24 }
 0x91c   :  { %v1472_v16 = vmul.f32 0.6931472, %v2588_v10  ;;  %v1653_v33 = vmul.f32 1.442695, %v1650_v63  ;;  %v1791_v10 = vrot.slane %v1784_v23, %v2987_v26 }
 0x91d   :  { %2101 = vbcast.lane.b32.xlu1 %v3260_v11, 328  ;;  %1595 = vbcast.lane.b32.xlu0 %v1552_v12, 336 }
 0x91e   :  { %v3314_v37 = vadd.f32 %v1472_v16, %v1458_v32 }
 0x921   :  { %2127 = vbcast.lane.b32.xlu1 %v3260_v11, 344  ;;  %1703 = vbcast.lane.b32.xlu0 %v1660_v25, 336  ;;  %v1895_v25 = vcombine.high %v1760_v51, %v1760_v51 }
 0x923   :  { %v1900_v3 = vrot.slane %v1895_v25, %v2945_v50 }
 0x925   :  { %1599 = vbcast.lane.b32.xlu1 %v1560_v43, 336  ;;  %1853 = vbcast.lane.b32.xlu0 %v1810_v20, 336  ;;  %v2010_v43 = vrot.slane %v3314_v37, %v2987_v26  ;;  %v1541_v20 = vrot.slane %v1533_v45, %v2987_v26  ;;  %v1907_v0 = vmul.f32 %v1900_v3, %v3303_v14 }
 0x926   :  { %v2590_v42 = vpop.eup %2589  ;;  %v1792_v3 = vcombine.high %v1791_v10, %v1791_v10 }
 0x927   :  { %v2018_v28 = vrot.slane %v2010_v43, %v2987_v26  ;;  %v1568_v4 = vrot.slane %v1541_v20, %v2945_v50  ;;  %v2011_v29 = vcombine.high %v2010_v43, %v2010_v43  ;;  %v1655_v2 = vcombine.high %v1541_v20, %v1541_v20 }
 0x928   :  { %v1589_v51 = vmul.f32 0.0, %v2590_v42  ;;  %v1909_v31 = vmul.f32 1.442695, %v1907_v0  ;;  %v1799_v43 = vrot.slane %v1791_v10, %v2987_v26  ;;  %v2592_v20 = vpop.eup %2591 }
 0x929   :  { %1707 = vbcast.lane.b32.xlu1 %v1668_v21, 336  ;;  %1961 = vbcast.lane.b32.xlu0 %v1918_v59, 336  ;;  %v1651_v21 = vmul.f32 1.442695, %v1649_v47  ;;  %v1778_v59 = vmul.f32 %v1771_v22, %v3303_v14  ;;  %v2029_v39 = vrot.slane %v2018_v28, %v2945_v50  ;;  %v2025_v7 = vrot.slane %v2011_v29, %v2987_v26 }
 0x92a   :  { %v1676_v41 = vrot.slane %v1655_v2, %v2945_v50  ;;  %v1590_v2 = vmul.f32 0.0, %v2592_v20 }
 0x92b   :  { %2593 = vpow2.f32 %v1651_v21  ;;  %v1780_v30 = vmul.f32 1.442695, %v1778_v59  ;;  %v2036_v8 = vmul.f32 %v2029_v39, %v3303_v14  ;;  %v2033_v24 = vrot.slane %v2025_v7, %v2945_v50 }
 0x92d   :  { %1857 = vbcast.lane.b32.xlu1 %v1818_v48, 336  ;;  %v1767_v48 = vrot.slane %v1753_v9, %v2987_v26  ;;  %2595 = vpow2.f32 %v1780_v30  ;;  %v1656_v9 = vcombine.high %v1548_v60, %v1548_v60  ;;  %v2037_v30 = vmul.f32 %v2033_v24, %v3303_v14 }
 0x92e   :  { %2597 = vpow2.f32 %v1653_v33  ;;  %v1806_v60 = vrot.slane %v1792_v3, %v2987_v26 }
 0x92f   :  { %v1775_v61 = vrot.slane %v1767_v48, %v2945_v50  ;;  %v1896_v38 = vcombine.high %v1767_v48, %v1767_v48  ;;  %2599 = vpow2.f32 %v1909_v31  ;;  %v1680_v46 = vrot.slane %v1656_v9, %v2945_v50 }
 0x930   :  { %v2040_v10 = vmul.f32 1.442695, %v2037_v30 }
 0x931   :  { %1965 = vbcast.lane.b32.xlu1 %v1926_v58, 336  ;;  %v1779_v34 = vmul.f32 %v1775_v61, %v3303_v14  ;;  %v1904_v15 = vrot.slane %v1896_v38, %v2945_v50  ;;  %v1826_v61 = vrot.slane %v1799_v43, %v2945_v50 }
 0x933   :  { %v1782_v47 = vmul.f32 1.442695, %v1779_v34  ;;  %v1908_v21 = vmul.f32 %v1904_v15, %v3303_v14  ;;  %v1913_v34 = vcombine.high %v1799_v43, %v1799_v43 }
 0x935   :  { %2601 = vpow2.f32 %v1782_v47  ;;  %v1911_v23 = vmul.f32 1.442695, %v1908_v21  ;;  %v1914_v21 = vcombine.high %v1806_v60, %v1806_v60 }
 0x938   :  { %v2594_v63 = vpop.eup %2593 }
 0x93a   :  { %v2596_v0 = vpop.eup %2595 }
 0x93b   :  { %v2598_v14 = vpop.eup %2597 }
 0x93c   :  { %v2600_v9 = vpop.eup %2599 }
 0x942   :  { %v2602_v43 = vpop.eup %2601 }
 0x957   :  { %v3319_v5 = vpop.permute.xlu1 %2081  ;;  %v3322_v12 = vpop.permute.xlu0 %2073 }
 0x95b   :  { %v1556_v58 = vpop.permute.xlu1 %1555  ;;  %v1580_v62 = vpop.permute.xlu0 %1579 }
 0x95c   :  { %v1585_v35 = vmul.f32 %v1580_v62, %v1568_v4  ;;  %v1575_v49 = vmul.f32 %v1568_v4, %v1556_v58  ;;  %v2038_v58 = vmul.f32 1.442695, %v2036_v8  ;;  %v1830_v8 = vrot.slane %v1806_v60, %v2945_v50 }
 0x95e   :  { %v1587_v18 = vsel %vm173_vm2, %v1575_v49, %v1585_v35  ;;  %2603 = vpow2.f32 %v2038_v58 }
 0x95f   :  { %v1564_v52 = vpop.permute.xlu1 %1563  ;;  %v1664_v54 = vpop.permute.xlu0 %1663  ;;  %v3345_v22 = vadd.f32 %v1589_v51, %v1587_v18  ;;  %2605 = vpow2.f32 %v1911_v23 }
 0x960   :  { %v1683_v57 = vmul.f32 %v1676_v41, %v1664_v54  ;;  %v1576_v48 = vmul.f32 %v1572_v27, %v1564_v52  ;;  %2607 = vpow2.f32 %v2040_v10 }
 0x961   :  { %v1697_v4 = vmul.f32 %v2594_v63, %v3345_v22 }
 0x963   :  { %v1584_v16 = vpop.permute.xlu1 %1583  ;;  %v1688_v32 = vpop.permute.xlu0 %1687 }
 0x964   :  { %v1693_v36 = vmul.f32 %v1688_v32, %v1676_v41  ;;  %v1586_v45 = vmul.f32 %v1584_v16, %v1572_v27  ;;  %v1934_v32 = vrot.slane %v1913_v34, %v2945_v50 }
 0x966   :  { %v1695_v28 = vsel %vm173_vm2, %v1683_v57, %v1693_v36  ;;  %v1588_v62 = vsel %vm173_vm2, %v1576_v48, %v1586_v45 }
 0x967   :  { %v1672_v25 = vpop.permute.xlu1 %1671  ;;  %v1814_v59 = vpop.permute.xlu0 %1813  ;;  %v3356_v49 = vadd.f32 %v1697_v4, %v1695_v28  ;;  %v3358_v39 = vadd.f32 %v1590_v2, %v1588_v62  ;;  %v1938_v4 = vrot.slane %v1914_v21, %v2945_v50 }
 0x968   :  { %v1833_v52 = vmul.f32 %v1826_v61, %v1814_v59  ;;  %v1684_v54 = vmul.f32 %v1680_v46, %v1672_v25 }
 0x969   :  { %v1847_v16 = vmul.f32 %v2596_v0, %v3356_v49  ;;  %v1698_v15 = vmul.f32 %v2598_v14, %v3358_v39 }
 0x96b   :  { %v1692_v29 = vpop.permute.xlu1 %1691  ;;  %v1838_v35 = vpop.permute.xlu0 %1837 }
 0x96c   :  { %v1694_v38 = vmul.f32 %v1692_v29, %v1680_v46  ;;  %v1843_v33 = vmul.f32 %v1838_v35, %v1826_v61  ;;  %v2604_v62 = vpop.eup %2603  ;;  %v2043_v29 = vmul.f32 %v3314_v37, %v3245_v56 }
 0x96d   :  { %v2606_v23 = vpop.eup %2605 }
 0x96e   :  { %v1845_v42 = vsel %vm173_vm2, %v1833_v52, %v1843_v33  ;;  %v1696_v18 = vsel %vm173_vm2, %v1684_v54, %v1694_v38  ;;  %v2051_v60 = vrot.slane %v2043_v29, %v2987_v26  ;;  %v2608_v37 = vpop.eup %2607 }
 0x96f   :  { %v1822_v7 = vpop.permute.xlu1 %1821  ;;  %v1922_v41 = vpop.permute.xlu0 %1921  ;;  %v3366_v27 = vadd.f32 %v1847_v16, %v1845_v42  ;;  %v3369_v31 = vadd.f32 %v1698_v15, %v1696_v18 }
 0x970   :  { %v1834_v36 = vmul.f32 %v1830_v8, %v1822_v7  ;;  %v1941_v24 = vmul.f32 %v1934_v32, %v1922_v41  ;;  %v2059_v18 = vrot.slane %v2051_v60, %v2987_v26 }
 0x971   :  { %v1955_v20 = vmul.f32 %v2600_v9, %v3366_v27  ;;  %v1848_v58 = vmul.f32 %v2602_v43, %v3369_v31 }
 0x973   :  { %v1842_v51 = vpop.permute.xlu1 %1841  ;;  %v1946_v47 = vpop.permute.xlu0 %1945 }
 0x974   :  { %v1844_v45 = vmul.f32 %v1842_v51, %v1830_v8  ;;  %v1951_v57 = vmul.f32 %v1946_v47, %v1934_v32  ;;  %v2052_v32 = vcombine.high %v2051_v60, %v2051_v60  ;;  %v2086_v51 = vrot.slane %v2059_v18, %v2945_v50 }
 0x976   :  { %v1846_v25 = vsel %vm173_vm2, %v1834_v36, %v1844_v45  ;;  %v1953_v48 = vsel %vm173_vm2, %v1941_v24, %v1951_v57  ;;  %v2093_v9 = vmul.f32 %v2086_v51, %v3322_v12  ;;  %v2066_v57 = vrot.slane %v2052_v32, %v2987_v26 }
 0x977   :  { %v1930_v59 = vpop.permute.xlu1 %1929  ;;  %v1606_v63 = vpop.permute.xlu0 %1605  ;;  %v3375_v28 = vadd.f32 %v1955_v20, %v1953_v48  ;;  %v3378_v3 = vadd.f32 %v1848_v58, %v1846_v25 }
 0x978   :  { %v1611_v46 = vmul.f32 %v1606_v63, %v3345_v22  ;;  %v1942_v30 = vmul.f32 %v1938_v4, %v1930_v59  ;;  %v2090_v59 = vrot.slane %v2066_v57, %v2945_v50  ;;  %v2178_v63 = vadd.f32 %v3243_v40, %v3233_v44 }
 0x979   :  { %v2107_v61 = vmul.f32 %v2604_v62, %v3375_v28  ;;  %v1956_v33 = vmul.f32 %v2606_v23, %v3378_v3 }
 0x97a   :  { %1615 = vrot.lane.b32.xlu0 %v1611_v46, %s2642_s29  ;;  %v2094_v26 = vmul.f32 %v2090_v59, %v3319_v5  ;;  %v2179_v5 = vadd.f32 %v3245_v56, %v3228_v17 }
 0x97b   :  { %v1950_v2 = vpop.permute.xlu1 %1949  ;;  %v1714_v35 = vpop.permute.xlu0 %1713 }
 0x97c   :  { %v1952_v38 = vmul.f32 %v1950_v2, %v1938_v4  ;;  %v1719_v52 = vmul.f32 %v1714_v35, %v3356_v49 }
 0x97e   :  { %v1954_v54 = vsel %vm173_vm2, %v1942_v30, %v1952_v38  ;;  %1723 = vrot.lane.b32.xlu0 %v1719_v52, %s2642_s29  ;;  %v2181_v38 = vsub.f32 0.0, %v3214_v53 }
 0x97f   :  { %v1610_v0 = vpop.permute.xlu1 %1609  ;;  %v3390_v42 = vadd.f32 %v1956_v33, %v1954_v54  ;;  %v1864_v34 = vpop.permute.xlu0 %1863 }
 0x980   :  { %v1612_v7 = vmul.f32 %v1610_v0, %v3358_v39  ;;  %v1869_v10 = vmul.f32 %v1864_v34, %v3366_v27  ;;  %v2184_v17 = vmul.f32 1.442695, %v2181_v38 }
 0x981   :  { %v2108_v14 = vmul.f32 %v2608_v37, %v3390_v42 }
 0x982   :  { %1617 = vrot.lane.b32.xlu1 %v1612_v7, %s2642_s29  ;;  %1873 = vrot.lane.b32.xlu0 %v1869_v10, %s2642_s29 }
 0x983   :  { %v1718_v41 = vpop.permute.xlu1 %1717  ;;  %v1972_v16 = vpop.permute.xlu0 %1971 }
 0x984   :  { %v1720_v15 = vmul.f32 %v1718_v41, %v3369_v31  ;;  %v1977_v8 = vmul.f32 %v1972_v16, %v3375_v28 }
 0x986   :  { %1725 = vrot.lane.b32.xlu1 %v1720_v15, %s2642_s29  ;;  %1981 = vrot.lane.b32.xlu0 %v1977_v8, %s2642_s29 }
 0x987   :  { %v1868_v36 = vpop.permute.xlu1 %1867  ;;  %v2098_v47 = vpop.permute.xlu0 %2097 }
 0x988   :  { %v1870_v45 = vmul.f32 %v1868_v36, %v3378_v3  ;;  %v2103_v24 = vmul.f32 %v2098_v47, %v2086_v51 }
 0x98a   :  { %1875 = vrot.lane.b32.xlu1 %v1870_v45, %s2642_s29  ;;  %2113 = vbcast.lane.b32.xlu0 %v3264_v19, 336  ;;  %v2105_v43 = vsel %vm173_vm2, %v2093_v9, %v2103_v24 }
 0x98b   :  { %v1976_v25 = vpop.permute.xlu1 %1975  ;;  %v2124_v21 = vpop.permute.xlu0 %2123  ;;  %v3409_v20 = vadd.f32 %v2107_v61, %v2105_v43 }
 0x98c   :  { %v1978_v48 = vmul.f32 %v1976_v25, %v3390_v42 }
 0x98d   :  { %v2129_v58 = vmul.f32 %v2124_v21, %v3409_v20 }
 0x98e   :  { %1983 = vrot.lane.b32.xlu1 %v1978_v48, %s2642_s29 }
 0x98f   :  { %v2102_v12 = vpop.permute.xlu1 %2101  ;;  %2133 = vrot.lane.b32.xlu0 %v2129_v58, %s2642_s29  ;;  %v1596_v61 = vpop.permute.xlu0 %1595 }
 0x990   :  { %v2104_v19 = vmul.f32 %v2102_v12, %v2090_v59  ;;  %v1601_v52 = vmul.f32 %v1596_v61, %v3345_v22 }
 0x992   :  { %2117 = vbcast.lane.b32.xlu1 %v3260_v11, 336  ;;  %v2106_v62 = vsel %vm173_vm2, %v2094_v26, %v2104_v19  ;;  %v2180_v11 = vsub.f32 0.0, %v3217_v55 }
 0x993   :  { %v3421_v46 = vadd.f32 %v2108_v14, %v2106_v62  ;;  %v2128_v50 = vpop.permute.xlu1 %2127  ;;  %2204 = vrot.lane.b32.xlu0 %v2178_v63, %s2642_s29  ;;  %v1704_v44 = vpop.permute.xlu0 %1703 }
 0x994   :  { %v2182_v23 = vmul.f32 1.442695, %v2180_v11  ;;  %v1709_v56 = vmul.f32 %v1704_v44, %v3356_v49 }
 0x995   :  { %v2130_v4 = vmul.f32 %v2128_v50, %v3421_v46 }
 0x996   :  { %2609 = vpow2.f32 %v2182_v23 }
 0x997   :  { %2135 = vrot.lane.b32.xlu1 %v2130_v4, %s2642_s29  ;;  %v1600_v40 = vpop.permute.xlu1 %1599  ;;  %v1854_v29 = vpop.permute.xlu0 %1853  ;;  %2611 = vpow2.f32 %v2184_v17 }
 0x998   :  { %v1602_v10 = vmul.f32 %v1600_v40, %v3358_v39  ;;  %v1859_v18 = vmul.f32 %v1854_v29, %v3366_v27 }
 0x99b   :  { %2206 = vrot.lane.b32.xlu1 %v2179_v5, %s2642_s29  ;;  %v1708_v2 = vpop.permute.xlu1 %1707  ;;  %v1962_v30 = vpop.permute.xlu0 %1961 }
 0x99c   :  { %v1710_v51 = vmul.f32 %v1708_v2, %v3369_v31  ;;  %v1967_v9 = vmul.f32 %v1962_v30, %v3375_v28 }
 0x99f   :  { %v1858_v35 = vpop.permute.xlu1 %1857 }
 0x9a0   :  { %v1860_v31 = vmul.f32 %v1858_v35, %v3378_v3 }
 0x9a3   :  { %v1966_v60 = vpop.permute.xlu1 %1965  ;;  %v2610_v45 = vpop.eup %2609 }
 0x9a4   :  { %v2186_v12 = vadd.f32 1.0, %v2610_v45  ;;  %v1968_v23 = vmul.f32 %v1966_v60, %v3390_v42  ;;  %v2612_v35 = vpop.eup %2611 }
 0x9a5   :  { %v2187_v42 = vadd.f32 1.0, %v2612_v35 }
 0x9a6   :  { %2613 = vrcp.f32 %v2186_v12 }
 0x9a7   :  { %2615 = vrcp.f32 %v2187_v42 }
 0x9ec   :  { %v1616_v33 = vpop.permute.xlu0 %1615 }
 0x9ed   :  { %v1621_v54 = vadd.f32 %v1616_v33, %v1601_v52 }
 0x9ef   :  { %v1623_v0 = vsel %vm173_vm2, %v1621_v54, 0.0 }
 0x9f0   :  { %v1624_v37 = vrot.slane %v1623_v0, 4  ;;  %v1724_v34 = vpop.permute.xlu0 %1723 }
 0x9f1   :  { %v1729_v7 = vadd.f32 %v1724_v34, %v1709_v56 }
 0x9f2   :  { %v1625_v14 = vadd.f32 %v1624_v37, %v1623_v0 }
 0x9f3   :  { %v1731_v41 = vsel %vm173_vm2, %v1729_v7, 0.0 }
 0x9f4   :  { %v1618_v22 = vpop.permute.xlu1 %1617  ;;  %v1732_v16 = vrot.slane %v1731_v41, 4  ;;  %v1874_v15 = vpop.permute.xlu0 %1873  ;;  %v1626_v32 = vrot.slane %v1625_v14, 2 }
 0x9f5   :  { %v1622_v8 = vadd.f32 %v1618_v22, %v1602_v10  ;;  %v1879_v49 = vadd.f32 %v1874_v15, %v1859_v18 }
 0x9f6   :  { %v1733_v36 = vadd.f32 %v1732_v16, %v1731_v41  ;;  %v1627_v48 = vadd.f32 %v1626_v32, %v1625_v14 }
 0x9f7   :  { %v1630_v47 = vsel %vm173_vm2, %v1622_v8, 0.0  ;;  %v1881_v39 = vsel %vm173_vm2, %v1879_v49, 0.0 }
 0x9f8   :  { %v1631_v24 = vrot.slane %v1630_v47, 4  ;;  %v1726_v27 = vpop.permute.xlu1 %1725  ;;  %v1734_v57 = vrot.slane %v1733_v36, 2  ;;  %v1882_v43 = vrot.slane %v1881_v39, 4  ;;  %v1982_v25 = vpop.permute.xlu0 %1981  ;;  %v1628_v11 = vrot.slane %v1627_v48, 1 }
 0x9f9   :  { %v1730_v21 = vadd.f32 %v1726_v27, %v1710_v51  ;;  %v1987_v58 = vadd.f32 %v1982_v25, %v1967_v9 }
 0x9fa   :  { %v1632_v59 = vadd.f32 %v1631_v24, %v1630_v47  ;;  %v1883_v26 = vadd.f32 %v1882_v43, %v1881_v39  ;;  %v1735_v63 = vadd.f32 %v1734_v57, %v1733_v36  ;;  %v1629_v7 = vadd.f32 %v1628_v11, %v1627_v48 }
 0x9fb   :  { %v1738_v19 = vsel %vm173_vm2, %v1730_v21, 0.0  ;;  %v1989_v28 = vsel %vm173_vm2, %v1987_v58, 0.0 }
 0x9fc   :  { %v1633_v62 = vrot.slane %v1632_v59, 2  ;;  %v1739_v50 = vrot.slane %v1738_v19, 4  ;;  %v1876_v4 = vpop.permute.xlu1 %1875  ;;  %v1884_v5 = vrot.slane %v1883_v26, 2  ;;  %v1990_v61 = vrot.slane %v1989_v28, 4  ;;  %v2114_v44 = vpop.permute.xlu0 %2113 }
 0x9fd   :  { %v1880_v40 = vadd.f32 %v1876_v4, %v1860_v31  ;;  %v1736_v38 = vrot.slane %v1735_v63, 1  ;;  %v2119_v37 = vmul.f32 %v2114_v44, %v3409_v20  ;;  %v2398_v4 = vld [vmem:[%s3507_s10 + $0x1] ss:$0 sm:$0xff] }
 0x9fe   :  { %v1634_v29 = vadd.f32 %v1633_v62, %v1632_v59  ;;  %v1740_v2 = vadd.f32 %v1739_v50, %v1738_v19  ;;  %v1991_v3 = vadd.f32 %v1990_v61, %v1989_v28  ;;  %v1885_v56 = vadd.f32 %v1884_v5, %v1883_v26  ;;  %v2614_v62 = vpop.eup %2613 }
 0x9ff   :  { %v1888_v30 = vsel %vm173_vm2, %v1880_v40, 0.0  ;;  %v1737_v51 = vadd.f32 %v1736_v38, %v1735_v63  ;;  %v2192_v38 = vmul.f32 %v2614_v62, %v3217_v55 }
 0xa00   :  { %v1635_v52 = vrot.slane %v1634_v29, 1  ;;  %v1741_v33 = vrot.slane %v1740_v2, 2  ;;  %v1889_v54 = vrot.slane %v1888_v30, 4  ;;  %v1984_v17 = vpop.permute.xlu1 %1983  ;;  %v1992_v0 = vrot.slane %v1991_v3, 2 }
 0xa01   :  { %v1988_v34 = vadd.f32 %v1984_v17, %v1968_v23  ;;  %v2134_v41 = vpop.permute.xlu0 %2133  ;;  %v1886_v36 = vrot.slane %v1885_v56, 1 }
 0xa02   :  { %v1636_v10 = vadd.f32 %v1635_v52, %v1634_v29  ;;  %v1742_v14 = vadd.f32 %v1741_v33, %v1740_v2  ;;  %v1890_v18 = vadd.f32 %v1889_v54, %v1888_v30  ;;  %v2139_v22 = vadd.f32 %v2134_v41, %v2119_v37  ;;  %v2616_v37 = vpop.eup %2615 }
 0xa03   :  { %v1996_v60 = vsel %vm173_vm2, %v1988_v34, 0.0  ;;  %v1993_v47 = vadd.f32 %v1992_v0, %v1991_v3  ;;  %v1887_v48 = vadd.f32 %v1886_v36, %v1885_v56  ;;  %v2193_v42 = vmul.f32 %v2616_v37, %v3214_v53 }
 0xa04   :  { %v1743_v16 = vrot.slane %v1742_v14, 1  ;;  %v1891_v15 = vrot.slane %v1890_v18, 2  ;;  %v1997_v8 = vrot.slane %v1996_v60, 4  ;;  %v2118_v32 = vpop.permute.xlu1 %2117  ;;  %v2157_v49 = vsel %vm1130_vm5, %v1636_v10, %v1629_v7 }
 0xa05   :  { %v2141_v20 = vsel %vm173_vm2, %v2139_v22, 0.0  ;;  %v2120_v27 = vmul.f32 %v2118_v32, %v3421_v46  ;;  %v1994_v12 = vrot.slane %v1993_v47, 1  ;;  %v2205_v5 = vpop.permute.xlu0 %2204 }
 0xa06   :  { %v1744_v45 = vadd.f32 %v1743_v16, %v1742_v14  ;;  %v1892_v9 = vadd.f32 %v1891_v15, %v1890_v18  ;;  %v1998_v39 = vadd.f32 %v1997_v8, %v1996_v60  ;;  %v2142_v24 = vrot.slane %v2141_v20, 4 }
 0xa07   :  { %v1995_v40 = vadd.f32 %v1994_v12, %v1993_v47  ;;  %v2210_v3 = vmul.f32 %v2398_v4, %v2205_v5 }
 0xa08   :  { %v1893_v57 = vrot.slane %v1892_v9, 1  ;;  %v1999_v43 = vrot.slane %v1998_v39, 2  ;;  %v2143_v25 = vadd.f32 %v2142_v24, %v2141_v20  ;;  %v2161_v21 = vsel %vm1135_vm6, %v1744_v45, %v1737_v51  ;;  %v2260_v24 = vld [vmem:[%s3510_s13 + $0x8] sm:$0xff] }
 0xa09   :  { %v2175_v59 = vsel %vm1152_vm7, %v2157_v49, %v2161_v21  ;;  %v2136_v58 = vpop.permute.xlu1 %2135 }
 0xa0a   :  { %v1894_v31 = vadd.f32 %v1893_v57, %v1892_v9  ;;  %v2000_v26 = vadd.f32 %v1999_v43, %v1998_v39  ;;  %v2140_v19 = vadd.f32 %v2136_v58, %v2120_v27  ;;  %v2144_v63 = vrot.slane %v2143_v25, 2  ;;  %v2262_v39 = vld [vmem:[%s3510_s13 + $0x18] sm:$0xff]  ;;  %v2259_v27 = vld [vmem:[%s3510_s13] sm:$0xff] }
 0xa0b   :  { %2501 = vmatpush3.msra.mxu1 %v2262_v39  ;;  %v2400_v58 = vld [vmem:[%s3509_s12] ss:$0 sm:$0xff] }
 0xa0c   :  { %v2001_v28 = vrot.slane %v2000_v26, 1  ;;  %v2165_v50 = vsel %vm1140_vm8, %v1894_v31, %v1887_v48  ;;  %v2148_v46 = vsel %vm173_vm2, %v2140_v19, 0.0  ;;  %v2145_v29 = vadd.f32 %v2144_v63, %v2143_v25  ;;  %2502 = vmatprep.subr.mxu1 %v2641_v1  ;;  %v2399_v48 = vld [vmem:[%s3508_s11] ss:$0 sm:$0xff]  ;;  %s2619_s11 = scalar_lea.vmem %s2352_s22, 32 }
 0xa0d   :  { %v2176_v61 = vsel %vm1154_vm9, %v2175_v59, %v2165_v50  ;;  %v2149_v44 = vrot.slane %v2148_v46, 4  ;;  %v2207_v0 = vpop.permute.xlu1 %2206  ;;  %p2620_p0 = scmp.ne.s32.totalorder %s2352_s22, %s2619_s11  ;;  %p2625_p2 = scmp.lt.s32.totalorder %s2619_s11, %s2619_s11 }
 0xa0e   :  { %v2002_v11 = vadd.f32 %v2001_v28, %v2000_v26  ;;  %v2146_v33 = vrot.slane %v2145_v29, 1  ;;  %v2211_v14 = vmul.f32 %v2398_v4, %v2207_v0 }
 0xa0f   :  { %v2150_v2 = vadd.f32 %v2149_v44, %v2148_v46  ;;  %p2626_p3 = por %p2625_p2, %p2624_p1 }
 0xa10   :  { %v2169_v23 = vsel %vm1145_vm10, %v2002_v11, %v1995_v40  ;;  %v2147_v7 = vadd.f32 %v2146_v33, %v2145_v29 }
 0xa11   :  { %v2177_v30 = vsel %vm1156_vm11, %v2176_v61, %v2169_v23  ;;  %v2151_v35 = vrot.slane %v2150_v2, 2  ;;  %p2627_p4 = pnand %p2626_p3, %p2620_p0 }
 0xa12   :  { %v2212_v52 = vadd.f32 %v2210_v3, %v2177_v30 }
 0xa13   :  { %v2152_v54 = vadd.f32 %v2151_v35, %v2150_v2 }
 0xa14   :  { %v2214_v17 = vmul.f32 %v2212_v52, %v2192_v38 }
 0xa15   :  { %v2153_v56 = vrot.slane %v2152_v54, 1 }
 0xa16   :  { %v2216_v34 = vadd.f32 %v2214_v17, %v3157_v6 }
 0xa17   :  { %v2154_v10 = vadd.f32 %v2153_v56, %v2152_v54 }
 0xa18   :  { %v2219_v18 = vrot.slane %v2216_v34, 2  ;;  %v2222_v55 = vrot.slane %v2216_v34, 4  ;;  %v2225_v8 = vrot.slane %v2216_v34, 6 }
 0xa19   :  { %v2173_v41 = vsel %vm1130_vm5, %v2154_v10, %v2147_v7 }
 0xa1a   :  { %v2213_v60 = vadd.f32 %v2211_v14, %v2173_v41  ;;  %v2221_v22 = vadd.f32 %v2219_v18, %v2216_v34 }
 0xa1c   :  { %v2215_v16 = vmul.f32 %v2213_v60, %v2193_v42  ;;  %v2224_v15 = vadd.f32 %v2222_v55, %v2221_v22 }
 0xa1e   :  { %v2217_v32 = vadd.f32 %v2215_v16, %v3162_v13  ;;  %v2227_v49 = vadd.f32 %v2225_v8, %v2224_v15  ;;  %v2261_v13 = vld [vmem:[%s3510_s13 + $0x10] sm:$0xff] }
 0xa1f   :  { %2503 = vmatpush3.msra.mxu1 %v2261_v13 }
 0xa20   :  { %v2228_v51 = vadd.f32 %v2227_v49, %v2217_v32  ;;  %2504 = vmatprep.subr.mxu1 %v2641_v1 }
 0xa21   :  { %2505 = vmatpush3.msra.mxu1 %v2260_v24 }
 0xa22   :  { %v2229_v36 = vmul.f32 0.2, %v2228_v51  ;;  %2506 = vmatprep.subr.mxu1 %v2641_v1  ;;  %v2401_v1 = vld [vmem:[%s3511_s14] ss:$0 sm:$0xff] }
 0xa23   :  { %2507 = vmatpush3.msra.mxu1 %v2259_v27 }
 0xa24   :  { %v2230_v6 = vsel %vm177_vm3, %v2229_v36, 0.0 }
 0xa25   :  { %2231 = vadd.xlane.f32.xlu0 %v2230_v6 }
 0xaae   :  { %v2232_v47 = vpop.xlane.xlu0 %2231 }
 0xaaf   :  { %v2233_v20 = vmul.f32 0.03125, %v2232_v47 }
 0xab1   :  { %v2234_v45 = vsub.f32 %v2229_v36, %v2233_v20 }
 0xab3   :  { %v2235_v9 = vmul.f32 %v2234_v45, %v2234_v45 }
 0xab5   :  { %v2236_v53 = vsel %vm177_vm3, %v2235_v9, 0.0 }
 0xab6   :  { %2237 = vadd.xlane.f32.xlu1 %v2236_v53 }
 0xb3f   :  { %v2238_v57 = vpop.xlane.xlu1 %2237 }
 0xb40   :  { %v2239_v43 = vmul.f32 0.03125, %v2238_v57 }
 0xb42   :  { %v2240_v25 = vadd.f32 1e-05, %v2239_v43 }
 0xb44   :  { %2617 = vrsqrt.f32 %v2240_v25 }
 0xb51   :  { %v2618_v21 = vpop.eup %2617 }
 0xb52   :  { %v2242_v59 = vmul.f32 %v2618_v21, %v2234_v45 }
 0xb54   :  { %v2250_v12 = vmul.f32 %v2399_v48, %v2242_v59 }
 0xb56   :  { %v2258_v31 = vadd.f32 %v2400_v58, %v2250_v12 }
 0xb58   :  { %2509 = vmatmul.mubr.msk.f32.vlgmr.msra.gmra.mxu1 %vm173_vm2, %v2258_v31 }
 0xc18   :  { %v2339_v26 = vpop.f32.mrf.mxu1 }
 0xc19   :  { %v2340_v19 = vadd.f32 %v2401_v1, %v2339_v26 }
 0xc1a   :  { %v2510_v63 = vpop.f32.mrf.mxu1 }
 0xc1b   :  { %2344 = vst.msk [vmem:[#allocation2] sm:$0x3] %vm2343_vm13, %v2340_v19 }
 0xc1c   :  { %2630 = shalt.err (!%p2627_p4)
}
 0xc1d   :  { %2354 = dma.vmem_to_hbm [thread:$0]  %s2352_s22, 32, %s3512_s15, [#allocation3]  }
 0xc1e   :  { %2639 = dma.done.wait [#allocation3], 32  }
 0xc1f   :  { %2640 = vsyncadd [#allocation3], 4294967264 }
 0xc20   :  { %2358 = vsyncpa [#allocation3], 1 }

</bundles_post_ra>
